<compile_context>
chip_gen: v6e
topology: v6e:2x2x1
jax: 0.10.0
libtpu: 0.0.40
codegen_flags: <defaults>
</compile_context>

<pallas_src>
import functools

import jax
import jax.numpy as jnp
from jax import lax
from jax.experimental import pallas as pl
from jax.experimental.pallas import tpu as pltpu


# --------------------- wrapper-built constant operands ---------------------- #

def _conv_lhs(w, b, in_h):
    """Banded LHS for conv-as-matmul.

    Rows: co*out_h + oh.  Columns: kj*stride + ci*in_h + h, where stride is
    ci_n*in_h rounded up to 8 (so the kernel-side RHS concat stays sublane
    aligned), plus a final bias column multiplying the RHS ones row.
    """
    co_n, ci_n, kh, kw = w.shape
    out_h = in_h - kh + 1
    piece = ci_n * in_h
    stride = piece + (-piece) % 8
    ncols = kw * stride + 1
    w = w.astype(jnp.float32)
    b = b.astype(jnp.float32)
    lhs = jnp.zeros((co_n * out_h, ncols), jnp.float32)
    oh = jnp.arange(out_h)
    rows2 = jnp.broadcast_to(oh[:, None], (out_h, kh))
    ki = jnp.arange(kh)
    for co in range(co_n):
        for ci in range(ci_n):
            for kj in range(kw):
                cols = kj * stride + ci * in_h + oh[:, None] + ki[None, :]
                vals = jnp.broadcast_to(w[co, ci, :, kj][None, :], (out_h, kh))
                lhs = lhs.at[co * out_h + rows2, cols].set(vals)
        lhs = lhs.at[co * out_h + oh, kw * stride].set(b[co])
    return lhs


def _pool_selectors(c_n, in_h):
    """Even/odd row selectors (c_n*out_h, c_n*in_h) for height max-pooling."""
    out_h = in_h // 2
    r = jnp.arange(c_n * out_h)
    even = (r // out_h) * in_h + 2 * (r % out_h)
    cols = jnp.arange(c_n * in_h)
    se = (cols[None, :] == even[:, None]).astype(jnp.float32)
    so = (cols[None, :] == (even + 1)[:, None]).astype(jnp.float32)
    return se, so


def _linear_lhs(w3, b3):
    """(10, 81) LHS: columns w*16 + c*5 + h (8-aligned per-w pieces) + bias col."""
    n_out = w3.shape[0]
    f = jnp.arange(75)
    c, rem = f // 25, f % 25
    h, w = rem // 5, rem % 5
    cols = w * 16 + c * 5 + h
    lhs = jnp.zeros((n_out, 81), jnp.float32)
    lhs = lhs.at[:, cols].set(w3.astype(jnp.float32))
    lhs = lhs.at[:, 80].set(b3.astype(jnp.float32))
    return lhs


# ----------------------------- Pallas kernel ------------------------------- #

def convnet_kernel(x_ref, lhs1_ref, s1e_ref, s1o_ref, lhs2_ref, s2e_ref, s2o_ref,
                   lhs3_ref, l1_ref, l2_ref, l3_ref, *, tb):
    f32 = jnp.float32

    def lrelu(v):                       # LeakyReLU(0.2): mul + max (2 VPU passes)
        return jnp.maximum(v, 0.2 * v)

    def pool_w(v, n_q):                 # max over adjacent width lane-tile pairs
        return jnp.concatenate(
            [jnp.maximum(v[:, (2 * q) * tb:(2 * q + 1) * tb],
                         v[:, (2 * q + 1) * tb:(2 * q + 2) * tb])
             for q in range(n_q)], axis=1)

    def pool_h(v, se, so):              # max over adjacent height (sublane) pairs, via MXU
        return jnp.maximum(jnp.dot(se, v, preferred_element_type=f32),
                           jnp.dot(so, v, preferred_element_type=f32))

    def conv_rhs(v, out_w):
        # Stack the 3 kj-shifted (lane-tile aligned) copies of v on sublanes,
        # padding each piece to an 8-aligned offset, and append a ones row so
        # the bias column of the banded LHS is applied by the same matmul.
        pad = (-v.shape[0]) % 8
        pieces = []
        for kj in range(3):
            pieces.append(v[:, kj * tb:(kj + out_w) * tb])
            if pad:
                pieces.append(jnp.zeros((pad, out_w * tb), f32))
        pieces.append(jnp.ones((1, out_w * tb), f32))
        return jnp.concatenate(pieces, axis=0)

    x2d = x_ref[0]                                              # (28, 28*TB): [h, w*TB+b]

    # ---- layer 1: Conv2d(1->4, 3x3, valid) + bias as ONE MXU matmul ----------
    rhs1 = conv_rhs(x2d, 26)                                    # (97, 26*TB)
    conv1 = jnp.dot(lhs1_ref[...], rhs1,
                    preferred_element_type=f32)                 # (104, 26*TB): [(co,oh),(ow,b)]
    # MaxPool2d(2) (W via lane-tile pairs, H via even/odd selector matmuls),
    # then LeakyReLU (monotone => commutes with max-pooling).
    pooled1 = lrelu(pool_h(pool_w(conv1, 13),
                           s1e_ref[...], s1o_ref[...]))         # (52, 13*TB): [(c,h),(w,b)]
    l1_ref[0] = pooled1                                         # single lane-dense store

    # ---- layer 2: Conv2d(4->3, 3x3, valid) + bias as ONE MXU matmul ----------
    rhs2 = conv_rhs(pooled1, 11)                                # (169, 11*TB)
    conv2 = jnp.dot(lhs2_ref[...], rhs2,
                    preferred_element_type=f32)                 # (33, 11*TB)
    pooled2 = lrelu(pool_h(pool_w(conv2, 5),
                           s2e_ref[...], s2o_ref[...]))         # (15, 5*TB)
    l2_ref[0] = pooled2

    # ---- layer 3: Linear(3*5*5 -> 10) as ONE MXU matmul ----------------------
    zrow = jnp.zeros((1, tb), f32)
    pieces = []
    for w in range(5):
        pieces.append(pooled2[:, w * tb:(w + 1) * tb])          # (15, TB)
        pieces.append(zrow)                                     # 8-aligned piece stride (16)
    pieces.append(jnp.ones((1, tb), f32))                       # bias row
    rhs3 = jnp.concatenate(pieces, axis=0)                      # (81, TB)
    l3_ref[...] = jnp.dot(lhs3_ref[...], rhs3,
                          preferred_element_type=f32)           # (10, TB)


# ----------------------------- wrapper -------------------------------------- #

def convnet_forward(x, params, *, tb=128):
    """x: (B, 1, 28, 28) float32. Returns (l1, l2, l3) matching the PyTorch module."""
    w1, b1, w2, b2, w3, b3 = params
    B = x.shape[0]
    n_blk = -(-B // tb)                 # ceil(B / tb); v7x prefers n_blk >= 2 when B allows
    Bp = n_blk * tb

    # Glue: zero-pad batch to TB multiple, pack each block as (28, 28*TB) with
    # [h, w*TB + b] (h on sublanes, (w, batch) on lanes).  These transposes are
    # kept only for NCHW API parity with the PyTorch module.
    xb = x.astype(jnp.float32).reshape(B, 28, 28)
    if Bp != B:
        xb = jnp.pad(xb, ((0, Bp - B), (0, 0), (0, 0)))
    xk = xb.reshape(n_blk, tb, 28, 28).transpose(0, 2, 3, 1).reshape(n_blk, 28, 28 * tb)

    lhs1 = _conv_lhs(w1, b1, 28)        # (104, 97)
    lhs2 = _conv_lhs(w2, b2, 13)        # (33, 169)
    s1e, s1o = _pool_selectors(4, 26)   # (52, 104)
    s2e, s2o = _pool_selectors(3, 11)   # (15, 33)
    lhs3 = _linear_lhs(w3, b3)          # (10, 81)

    def const(shape):
        return pl.BlockSpec(shape, lambda g: (0, 0))

    out_shape = (
        jax.ShapeDtypeStruct((n_blk, 52, 13 * tb), jnp.float32),
        jax.ShapeDtypeStruct((n_blk, 15, 5 * tb), jnp.float32),
        jax.ShapeDtypeStruct((10, Bp), jnp.float32),
    )

    grid_spec = pltpu.PrefetchScalarGridSpec(
        num_scalar_prefetch=0,
        grid=(n_blk,),
        in_specs=[
            pl.BlockSpec((1, 28, 28 * tb), lambda g: (g, 0, 0)),   # x block (batch on lanes)
            const((104, 97)),                                      # lhs1 (banded conv1 + bias)
            const((52, 104)), const((52, 104)),                    # pool-1 even/odd selectors
            const((33, 169)),                                      # lhs2 (banded conv2 + bias)
            const((15, 33)), const((15, 33)),                      # pool-2 even/odd selectors
            const((10, 81)),                                       # lhs3 (linear + bias)
        ],
        out_specs=(
            pl.BlockSpec((1, 52, 13 * tb), lambda g: (g, 0, 0)),
            pl.BlockSpec((1, 15, 5 * tb), lambda g: (g, 0, 0)),
            pl.BlockSpec((10, tb), lambda g: (0, g)),
        ),
    )

    l1k, l2k, l3k = pl.pallas_call(
        functools.partial(convnet_kernel, tb=tb),
        out_shape=out_shape,
        grid_spec=grid_spec,
        compiler_params=pltpu.CompilerParams(
            dimension_semantics=("parallel",),
            vmem_limit_bytes=32 * 1024 * 1024),
    )(xk, lhs1, s1e, s1o, lhs2, s2e, s2o, lhs3)

    # Glue: back to PyTorch NCHW layouts, drop batch padding.
    l1 = l1k.reshape(n_blk, 4, 13, 13, tb).transpose(0, 4, 1, 2, 3).reshape(Bp, 4, 13, 13)[:B]
    l2 = l2k.reshape(n_blk, 3, 5, 5, tb).transpose(0, 4, 1, 2, 3).reshape(Bp, 3, 5, 5)[:B]
    l3 = l3k.T[:B]
    return l1, l2, l3


# ----------------------------- plain-JAX reference --------------------------- #

def reference_forward(x, params):
    w1, b1, w2, b2, w3, b3 = params

    def conv(v, w, b):
        y = lax.conv_general_dilated(
            v, w, window_strides=(1, 1), padding="VALID",
            dimension_numbers=("NCHW", "OIHW", "NCHW"))
        return y + b[None, :, None, None]

    def lrelu(v):
        return jnp.where(v >= 0, v, 0.2 * v)

    def pool(v):
        B, C, H, W = v.shape
        Ho, Wo = H // 2, W // 2
        v = v[:, :, :Ho * 2, :Wo * 2].reshape(B, C, Ho, 2, Wo, 2)
        return v.max(axis=(3, 5))

    l1 = pool(lrelu(conv(x, w1, b1)))
    l2 = pool(lrelu(conv(l1, w2, b2)))
    l3 = l2.reshape(x.shape[0], -1) @ w3.T + b3
    return l1, l2, l3


# ----------------------------- main ------------------------------------------ #

if __name__ == "__main__":
    key = jax.random.PRNGKey(0)
    ks = jax.random.split(key, 7)

    # MNIST-like input implied by the module (28x28 -> 26 -> 13 -> 11 -> 5 => 3*5*5).
    x = jax.random.normal(ks[0], (2, 1, 28, 28), dtype=jnp.float32)

    w1 = jax.random.normal(ks[1], (4, 1, 3, 3), dtype=jnp.float32) * 0.2
    b1 = jax.random.normal(ks[2], (4,), dtype=jnp.float32) * 0.1
    w2 = jax.random.normal(ks[3], (3, 4, 3, 3), dtype=jnp.float32) * 0.2
    b2 = jax.random.normal(ks[4], (3,), dtype=jnp.float32) * 0.1
    w3 = jax.random.normal(ks[5], (10, 3 * 5 * 5), dtype=jnp.float32) * 0.1
    b3 = jax.random.normal(ks[6], (10,), dtype=jnp.float32) * 0.1
    params = (w1, b1, w2, b2, w3, b3)

    fwd = jax.jit(convnet_forward)
    l1, l2, l3 = fwd(x, params)
    jax.block_until_ready((l1, l2, l3))

    assert l1.shape == (2, 4, 13, 13)
    assert l2.shape == (2, 3, 5, 5)
    assert l3.shape == (2, 10)

    r1, r2, r3 = reference_forward(x, params)
    for got, ref, name in ((l1, r1, "l1"), (l2, r2, "l2"), (l3, r3, "l3")):
        if not jnp.allclose(got, ref, rtol=2e-2, atol=2e-2):
            raise AssertionError(f"mismatch in {name}")

    print("KERNEL_OK")
</pallas_src>

<mosaic_0001>
module attributes {stable_mosaic.version = 11 : i64} {
  func.func @convnet_kernel(%arg0: i32, %arg1: memref<1x28x3584xf32, #tpu.memory_space<vmem>>, %arg2: memref<104x97xf32, #tpu.memory_space<vmem>>, %arg3: memref<52x104xf32, #tpu.memory_space<vmem>>, %arg4: memref<52x104xf32, #tpu.memory_space<vmem>>, %arg5: memref<33x169xf32, #tpu.memory_space<vmem>>, %arg6: memref<15x33xf32, #tpu.memory_space<vmem>>, %arg7: memref<15x33xf32, #tpu.memory_space<vmem>>, %arg8: memref<10x81xf32, #tpu.memory_space<vmem>>, %arg9: memref<1x52x1664xf32, #tpu.memory_space<vmem>>, %arg10: memref<1x15x640xf32, #tpu.memory_space<vmem>>, %arg11: memref<10x128xf32, #tpu.memory_space<vmem>>) attributes {dimension_semantics = [#tpu.dimension_semantics<parallel>], iteration_bounds = array<i64: 1>, scalar_prefetch = 0 : i64, scratch_operands = 0 : i64, tpu.core_type = #tpu.core_type<tc>, window_params = [{transform_indices = @transform_0, window_bounds = array<i64: 1, 28, 3584>}, {pipeline_mode = #tpu.pipeline_mode<synchronous>, transform_indices = @transform_1, window_bounds = array<i64: 104, 97>}, {pipeline_mode = #tpu.pipeline_mode<synchronous>, transform_indices = @transform_2, window_bounds = array<i64: 52, 104>}, {pipeline_mode = #tpu.pipeline_mode<synchronous>, transform_indices = @transform_3, window_bounds = array<i64: 52, 104>}, {pipeline_mode = #tpu.pipeline_mode<synchronous>, transform_indices = @transform_4, window_bounds = array<i64: 33, 169>}, {pipeline_mode = #tpu.pipeline_mode<synchronous>, transform_indices = @transform_5, window_bounds = array<i64: 15, 33>}, {pipeline_mode = #tpu.pipeline_mode<synchronous>, transform_indices = @transform_6, window_bounds = array<i64: 15, 33>}, {pipeline_mode = #tpu.pipeline_mode<synchronous>, transform_indices = @transform_7, window_bounds = array<i64: 10, 81>}, {transform_indices = @transform_8, window_bounds = array<i64: 1, 52, 1664>}, {transform_indices = @transform_9, window_bounds = array<i64: 1, 15, 640>}, {transform_indices = @transform_10, window_bounds = array<i64: 10, 128>}]} {
    %c0 = arith.constant 0 : index
    %c0_0 = arith.constant 0 : index
    %c0_1 = arith.constant 0 : index
    %0 = vector.load %arg1[%c0, %c0_0, %c0_1] : memref<1x28x3584xf32, #tpu.memory_space<vmem>>, vector<1x28x3584xf32>
    %1 = vector.shape_cast %0 : vector<1x28x3584xf32> to vector<28x3584xf32>
    %2 = vector.extract_strided_slice %1 {offsets = [0, 0], sizes = [28, 3328], strides = [1, 1]} : vector<28x3584xf32> to vector<28x3328xf32>
    %cst = arith.constant 0.000000e+00 : f32
    %3 = vector.broadcast %cst : f32 to vector<4x3328xf32>
    %4 = vector.extract_strided_slice %1 {offsets = [0, 128], sizes = [28, 3328], strides = [1, 1]} : vector<28x3584xf32> to vector<28x3328xf32>
    %cst_2 = arith.constant 0.000000e+00 : f32
    %5 = vector.broadcast %cst_2 : f32 to vector<4x3328xf32>
    %6 = vector.extract_strided_slice %1 {offsets = [0, 256], sizes = [28, 3328], strides = [1, 1]} : vector<28x3584xf32> to vector<28x3328xf32>
    %cst_3 = arith.constant 0.000000e+00 : f32
    %7 = vector.broadcast %cst_3 : f32 to vector<4x3328xf32>
    %cst_4 = arith.constant 1.000000e+00 : f32
    %8 = vector.broadcast %cst_4 : f32 to vector<1x3328xf32>
    %9 = tpu.concatenate %2, %3, %4, %5, %6, %7, %8 in 0 : vector<28x3328xf32>, vector<4x3328xf32>, vector<28x3328xf32>, vector<4x3328xf32>, vector<28x3328xf32>, vector<4x3328xf32>, vector<1x3328xf32> -> vector<97x3328xf32>
    %c0_5 = arith.constant 0 : index
    %c0_6 = arith.constant 0 : index
    %10 = vector.load %arg2[%c0_5, %c0_6] : memref<104x97xf32, #tpu.memory_space<vmem>>, vector<104x97xf32>
    %cst_7 = arith.constant dense<0.000000e+00> : vector<104x3328xf32>
    %11 = tpu.matmul %10, %9, %cst_7 {dimension_numbers = #tpu.dot_dimension_numbers<[1], [0], [0], [1], [0, 0, 1, 1], [], []>} : vector<104x97xf32>, vector<97x3328xf32>, vector<104x3328xf32> -> vector<104x3328xf32>
    %12 = vector.extract_strided_slice %11 {offsets = [0, 0], sizes = [104, 128], strides = [1, 1]} : vector<104x3328xf32> to vector<104x128xf32>
    %13 = vector.extract_strided_slice %11 {offsets = [0, 128], sizes = [104, 128], strides = [1, 1]} : vector<104x3328xf32> to vector<104x128xf32>
    %14 = arith.maximumf %12, %13 : vector<104x128xf32>
    %15 = vector.extract_strided_slice %11 {offsets = [0, 256], sizes = [104, 128], strides = [1, 1]} : vector<104x3328xf32> to vector<104x128xf32>
    %16 = vector.extract_strided_slice %11 {offsets = [0, 384], sizes = [104, 128], strides = [1, 1]} : vector<104x3328xf32> to vector<104x128xf32>
    %17 = arith.maximumf %15, %16 : vector<104x128xf32>
    %18 = vector.extract_strided_slice %11 {offsets = [0, 512], sizes = [104, 128], strides = [1, 1]} : vector<104x3328xf32> to vector<104x128xf32>
    %19 = vector.extract_strided_slice %11 {offsets = [0, 640], sizes = [104, 128], strides = [1, 1]} : vector<104x3328xf32> to vector<104x128xf32>
    %20 = arith.maximumf %18, %19 : vector<104x128xf32>
    %21 = vector.extract_strided_slice %11 {offsets = [0, 768], sizes = [104, 128], strides = [1, 1]} : vector<104x3328xf32> to vector<104x128xf32>
    %22 = vector.extract_strided_slice %11 {offsets = [0, 896], sizes = [104, 128], strides = [1, 1]} : vector<104x3328xf32> to vector<104x128xf32>
    %23 = arith.maximumf %21, %22 : vector<104x128xf32>
    %24 = vector.extract_strided_slice %11 {offsets = [0, 1024], sizes = [104, 128], strides = [1, 1]} : vector<104x3328xf32> to vector<104x128xf32>
    %25 = vector.extract_strided_slice %11 {offsets = [0, 1152], sizes = [104, 128], strides = [1, 1]} : vector<104x3328xf32> to vector<104x128xf32>
    %26 = arith.maximumf %24, %25 : vector<104x128xf32>
    %27 = vector.extract_strided_slice %11 {offsets = [0, 1280], sizes = [104, 128], strides = [1, 1]} : vector<104x3328xf32> to vector<104x128xf32>
    %28 = vector.extract_strided_slice %11 {offsets = [0, 1408], sizes = [104, 128], strides = [1, 1]} : vector<104x3328xf32> to vector<104x128xf32>
    %29 = arith.maximumf %27, %28 : vector<104x128xf32>
    %30 = vector.extract_strided_slice %11 {offsets = [0, 1536], sizes = [104, 128], strides = [1, 1]} : vector<104x3328xf32> to vector<104x128xf32>
    %31 = vector.extract_strided_slice %11 {offsets = [0, 1664], sizes = [104, 128], strides = [1, 1]} : vector<104x3328xf32> to vector<104x128xf32>
    %32 = arith.maximumf %30, %31 : vector<104x128xf32>
    %33 = vector.extract_strided_slice %11 {offsets = [0, 1792], sizes = [104, 128], strides = [1, 1]} : vector<104x3328xf32> to vector<104x128xf32>
    %34 = vector.extract_strided_slice %11 {offsets = [0, 1920], sizes = [104, 128], strides = [1, 1]} : vector<104x3328xf32> to vector<104x128xf32>
    %35 = arith.maximumf %33, %34 : vector<104x128xf32>
    %36 = vector.extract_strided_slice %11 {offsets = [0, 2048], sizes = [104, 128], strides = [1, 1]} : vector<104x3328xf32> to vector<104x128xf32>
    %37 = vector.extract_strided_slice %11 {offsets = [0, 2176], sizes = [104, 128], strides = [1, 1]} : vector<104x3328xf32> to vector<104x128xf32>
    %38 = arith.maximumf %36, %37 : vector<104x128xf32>
    %39 = vector.extract_strided_slice %11 {offsets = [0, 2304], sizes = [104, 128], strides = [1, 1]} : vector<104x3328xf32> to vector<104x128xf32>
    %40 = vector.extract_strided_slice %11 {offsets = [0, 2432], sizes = [104, 128], strides = [1, 1]} : vector<104x3328xf32> to vector<104x128xf32>
    %41 = arith.maximumf %39, %40 : vector<104x128xf32>
    %42 = vector.extract_strided_slice %11 {offsets = [0, 2560], sizes = [104, 128], strides = [1, 1]} : vector<104x3328xf32> to vector<104x128xf32>
    %43 = vector.extract_strided_slice %11 {offsets = [0, 2688], sizes = [104, 128], strides = [1, 1]} : vector<104x3328xf32> to vector<104x128xf32>
    %44 = arith.maximumf %42, %43 : vector<104x128xf32>
    %45 = vector.extract_strided_slice %11 {offsets = [0, 2816], sizes = [104, 128], strides = [1, 1]} : vector<104x3328xf32> to vector<104x128xf32>
    %46 = vector.extract_strided_slice %11 {offsets = [0, 2944], sizes = [104, 128], strides = [1, 1]} : vector<104x3328xf32> to vector<104x128xf32>
    %47 = arith.maximumf %45, %46 : vector<104x128xf32>
    %48 = vector.extract_strided_slice %11 {offsets = [0, 3072], sizes = [104, 128], strides = [1, 1]} : vector<104x3328xf32> to vector<104x128xf32>
    %49 = vector.extract_strided_slice %11 {offsets = [0, 3200], sizes = [104, 128], strides = [1, 1]} : vector<104x3328xf32> to vector<104x128xf32>
    %50 = arith.maximumf %48, %49 : vector<104x128xf32>
    %51 = tpu.concatenate %14, %17, %20, %23, %26, %29, %32, %35, %38, %41, %44, %47, %50 in 1 : vector<104x128xf32>, vector<104x128xf32>, vector<104x128xf32>, vector<104x128xf32>, vector<104x128xf32>, vector<104x128xf32>, vector<104x128xf32>, vector<104x128xf32>, vector<104x128xf32>, vector<104x128xf32>, vector<104x128xf32>, vector<104x128xf32>, vector<104x128xf32> -> vector<104x1664xf32>
    %c0_8 = arith.constant 0 : index
    %c0_9 = arith.constant 0 : index
    %52 = vector.load %arg3[%c0_8, %c0_9] : memref<52x104xf32, #tpu.memory_space<vmem>>, vector<52x104xf32>
    %c0_10 = arith.constant 0 : index
    %c0_11 = arith.constant 0 : index
    %53 = vector.load %arg4[%c0_10, %c0_11] : memref<52x104xf32, #tpu.memory_space<vmem>>, vector<52x104xf32>
    %cst_12 = arith.constant dense<0.000000e+00> : vector<52x1664xf32>
    %54 = tpu.matmul %52, %51, %cst_12 {dimension_numbers = #tpu.dot_dimension_numbers<[1], [0], [0], [1], [0, 0, 1, 1], [], []>} : vector<52x104xf32>, vector<104x1664xf32>, vector<52x1664xf32> -> vector<52x1664xf32>
    %cst_13 = arith.constant dense<0.000000e+00> : vector<52x1664xf32>
    %55 = tpu.matmul %53, %51, %cst_13 {dimension_numbers = #tpu.dot_dimension_numbers<[1], [0], [0], [1], [0, 0, 1, 1], [], []>} : vector<52x104xf32>, vector<104x1664xf32>, vector<52x1664xf32> -> vector<52x1664xf32>
    %56 = arith.maximumf %54, %55 : vector<52x1664xf32>
    %cst_14 = arith.constant 2.000000e-01 : f32
    %57 = vector.broadcast %cst_14 : f32 to vector<52x1664xf32>
    %58 = arith.mulf %57, %56 : vector<52x1664xf32>
    %59 = arith.maximumf %56, %58 : vector<52x1664xf32>
    %c0_15 = arith.constant 0 : index
    %c0_16 = arith.constant 0 : index
    %c0_17 = arith.constant 0 : index
    %60 = vector.load %arg9[%c0_15, %c0_16, %c0_17] : memref<1x52x1664xf32, #tpu.memory_space<vmem>>, vector<1x52x1664xf32>
    %61 = vector.shape_cast %60 : vector<1x52x1664xf32> to vector<52x1664xf32>
    %62 = vector.shape_cast %59 : vector<52x1664xf32> to vector<1x52x1664xf32>
    tpu.vector_store %arg9[%c0_15, %c0_16, %c0_17], %62 {strides = array<i32>} : memref<1x52x1664xf32, #tpu.memory_space<vmem>>, vector<1x52x1664xf32>,
    %63 = vector.extract_strided_slice %59 {offsets = [0, 0], sizes = [52, 1408], strides = [1, 1]} : vector<52x1664xf32> to vector<52x1408xf32>
    %cst_18 = arith.constant 0.000000e+00 : f32
    %64 = vector.broadcast %cst_18 : f32 to vector<4x1408xf32>
    %65 = vector.extract_strided_slice %59 {offsets = [0, 128], sizes = [52, 1408], strides = [1, 1]} : vector<52x1664xf32> to vector<52x1408xf32>
    %cst_19 = arith.constant 0.000000e+00 : f32
    %66 = vector.broadcast %cst_19 : f32 to vector<4x1408xf32>
    %67 = vector.extract_strided_slice %59 {offsets = [0, 256], sizes = [52, 1408], strides = [1, 1]} : vector<52x1664xf32> to vector<52x1408xf32>
    %cst_20 = arith.constant 0.000000e+00 : f32
    %68 = vector.broadcast %cst_20 : f32 to vector<4x1408xf32>
    %cst_21 = arith.constant 1.000000e+00 : f32
    %69 = vector.broadcast %cst_21 : f32 to vector<1x1408xf32>
    %70 = tpu.concatenate %63, %64, %65, %66, %67, %68, %69 in 0 : vector<52x1408xf32>, vector<4x1408xf32>, vector<52x1408xf32>, vector<4x1408xf32>, vector<52x1408xf32>, vector<4x1408xf32>, vector<1x1408xf32> -> vector<169x1408xf32>
    %c0_22 = arith.constant 0 : index
    %c0_23 = arith.constant 0 : index
    %71 = vector.load %arg5[%c0_22, %c0_23] : memref<33x169xf32, #tpu.memory_space<vmem>>, vector<33x169xf32>
    %cst_24 = arith.constant dense<0.000000e+00> : vector<33x1408xf32>
    %72 = tpu.matmul %71, %70, %cst_24 {dimension_numbers = #tpu.dot_dimension_numbers<[1], [0], [0], [1], [0, 0, 1, 1], [], []>} : vector<33x169xf32>, vector<169x1408xf32>, vector<33x1408xf32> -> vector<33x1408xf32>
    %73 = vector.extract_strided_slice %72 {offsets = [0, 0], sizes = [33, 128], strides = [1, 1]} : vector<33x1408xf32> to vector<33x128xf32>
    %74 = vector.extract_strided_slice %72 {offsets = [0, 128], sizes = [33, 128], strides = [1, 1]} : vector<33x1408xf32> to vector<33x128xf32>
    %75 = arith.maximumf %73, %74 : vector<33x128xf32>
    %76 = vector.extract_strided_slice %72 {offsets = [0, 256], sizes = [33, 128], strides = [1, 1]} : vector<33x1408xf32> to vector<33x128xf32>
    %77 = vector.extract_strided_slice %72 {offsets = [0, 384], sizes = [33, 128], strides = [1, 1]} : vector<33x1408xf32> to vector<33x128xf32>
    %78 = arith.maximumf %76, %77 : vector<33x128xf32>
    %79 = vector.extract_strided_slice %72 {offsets = [0, 512], sizes = [33, 128], strides = [1, 1]} : vector<33x1408xf32> to vector<33x128xf32>
    %80 = vector.extract_strided_slice %72 {offsets = [0, 640], sizes = [33, 128], strides = [1, 1]} : vector<33x1408xf32> to vector<33x128xf32>
    %81 = arith.maximumf %79, %80 : vector<33x128xf32>
    %82 = vector.extract_strided_slice %72 {offsets = [0, 768], sizes = [33, 128], strides = [1, 1]} : vector<33x1408xf32> to vector<33x128xf32>
    %83 = vector.extract_strided_slice %72 {offsets = [0, 896], sizes = [33, 128], strides = [1, 1]} : vector<33x1408xf32> to vector<33x128xf32>
    %84 = arith.maximumf %82, %83 : vector<33x128xf32>
    %85 = vector.extract_strided_slice %72 {offsets = [0, 1024], sizes = [33, 128], strides = [1, 1]} : vector<33x1408xf32> to vector<33x128xf32>
    %86 = vector.extract_strided_slice %72 {offsets = [0, 1152], sizes = [33, 128], strides = [1, 1]} : vector<33x1408xf32> to vector<33x128xf32>
    %87 = arith.maximumf %85, %86 : vector<33x128xf32>
    %88 = tpu.concatenate %75, %78, %81, %84, %87 in 1 : vector<33x128xf32>, vector<33x128xf32>, vector<33x128xf32>, vector<33x128xf32>, vector<33x128xf32> -> vector<33x640xf32>
    %c0_25 = arith.constant 0 : index
    %c0_26 = arith.constant 0 : index
    %89 = vector.load %arg6[%c0_25, %c0_26] : memref<15x33xf32, #tpu.memory_space<vmem>>, vector<15x33xf32>
    %c0_27 = arith.constant 0 : index
    %c0_28 = arith.constant 0 : index
    %90 = vector.load %arg7[%c0_27, %c0_28] : memref<15x33xf32, #tpu.memory_space<vmem>>, vector<15x33xf32>
    %cst_29 = arith.constant dense<0.000000e+00> : vector<15x640xf32>
    %91 = tpu.matmul %89, %88, %cst_29 {dimension_numbers = #tpu.dot_dimension_numbers<[1], [0], [0], [1], [0, 0, 1, 1], [], []>} : vector<15x33xf32>, vector<33x640xf32>, vector<15x640xf32> -> vector<15x640xf32>
    %cst_30 = arith.constant dense<0.000000e+00> : vector<15x640xf32>
    %92 = tpu.matmul %90, %88, %cst_30 {dimension_numbers = #tpu.dot_dimension_numbers<[1], [0], [0], [1], [0, 0, 1, 1], [], []>} : vector<15x33xf32>, vector<33x640xf32>, vector<15x640xf32> -> vector<15x640xf32>
    %93 = arith.maximumf %91, %92 : vector<15x640xf32>
    %cst_31 = arith.constant 2.000000e-01 : f32
    %94 = vector.broadcast %cst_31 : f32 to vector<15x640xf32>
    %95 = arith.mulf %94, %93 : vector<15x640xf32>
    %96 = arith.maximumf %93, %95 : vector<15x640xf32>
    %c0_32 = arith.constant 0 : index
    %c0_33 = arith.constant 0 : index
    %c0_34 = arith.constant 0 : index
    %97 = vector.load %arg10[%c0_32, %c0_33, %c0_34] : memref<1x15x640xf32, #tpu.memory_space<vmem>>, vector<1x15x640xf32>
    %98 = vector.shape_cast %97 : vector<1x15x640xf32> to vector<15x640xf32>
    %99 = vector.shape_cast %96 : vector<15x640xf32> to vector<1x15x640xf32>
    tpu.vector_store %arg10[%c0_32, %c0_33, %c0_34], %99 {strides = array<i32>} : memref<1x15x640xf32, #tpu.memory_space<vmem>>, vector<1x15x640xf32>,
    %cst_35 = arith.constant 0.000000e+00 : f32
    %100 = vector.broadcast %cst_35 : f32 to vector<1x128xf32>
    %101 = vector.extract_strided_slice %96 {offsets = [0, 0], sizes = [15, 128], strides = [1, 1]} : vector<15x640xf32> to vector<15x128xf32>
    %102 = vector.extract_strided_slice %96 {offsets = [0, 128], sizes = [15, 128], strides = [1, 1]} : vector<15x640xf32> to vector<15x128xf32>
    %103 = vector.extract_strided_slice %96 {offsets = [0, 256], sizes = [15, 128], strides = [1, 1]} : vector<15x640xf32> to vector<15x128xf32>
    %104 = vector.extract_strided_slice %96 {offsets = [0, 384], sizes = [15, 128], strides = [1, 1]} : vector<15x640xf32> to vector<15x128xf32>
    %105 = vector.extract_strided_slice %96 {offsets = [0, 512], sizes = [15, 128], strides = [1, 1]} : vector<15x640xf32> to vector<15x128xf32>
    %cst_36 = arith.constant 1.000000e+00 : f32
    %106 = vector.broadcast %cst_36 : f32 to vector<1x128xf32>
    %107 = tpu.concatenate %101, %100, %102, %100, %103, %100, %104, %100, %105, %100, %106 in 0 : vector<15x128xf32>, vector<1x128xf32>, vector<15x128xf32>, vector<1x128xf32>, vector<15x128xf32>, vector<1x128xf32>, vector<15x128xf32>, vector<1x128xf32>, vector<15x128xf32>, vector<1x128xf32>, vector<1x128xf32> -> vector<81x128xf32>
    %c0_37 = arith.constant 0 : index
    %c0_38 = arith.constant 0 : index
    %108 = vector.load %arg8[%c0_37, %c0_38] : memref<10x81xf32, #tpu.memory_space<vmem>>, vector<10x81xf32>
    %cst_39 = arith.constant dense<0.000000e+00> : vector<10x128xf32>
    %109 = tpu.matmul %108, %107, %cst_39 {dimension_numbers = #tpu.dot_dimension_numbers<[1], [0], [0], [1], [0, 0, 1, 1], [], []>} : vector<10x81xf32>, vector<81x128xf32>, vector<10x128xf32> -> vector<10x128xf32>
    %c0_40 = arith.constant 0 : index
    %c0_41 = arith.constant 0 : index
    %110 = vector.load %arg11[%c0_40, %c0_41] : memref<10x128xf32, #tpu.memory_space<vmem>>, vector<10x128xf32>
    tpu.vector_store %arg11[%c0_40, %c0_41], %109 {strides = array<i32>} : memref<10x128xf32, #tpu.memory_space<vmem>>, vector<10x128xf32>,
    return
  }
  func.func @transform_0(%arg0: i32) -> (i32, i32, i32) {
    %c0_i32 = arith.constant 0 : i32
    %c0_i32_0 = arith.constant 0 : i32
    %c0_i32_1 = arith.constant 0 : i32
    return %arg0, %c0_i32, %c0_i32_0 : i32, i32, i32
  }
  func.func @transform_1(%arg0: i32) -> (i32, i32) {
    %c0_i32 = arith.constant 0 : i32
    %c0_i32_0 = arith.constant 0 : i32
    %c0_i32_1 = arith.constant 0 : i32
    return %c0_i32, %c0_i32_0 : i32, i32
  }
  func.func @transform_2(%arg0: i32) -> (i32, i32) {
    %c0_i32 = arith.constant 0 : i32
    %c0_i32_0 = arith.constant 0 : i32
    %c0_i32_1 = arith.constant 0 : i32
    return %c0_i32, %c0_i32_0 : i32, i32
  }
  func.func @transform_3(%arg0: i32) -> (i32, i32) {
    %c0_i32 = arith.constant 0 : i32
    %c0_i32_0 = arith.constant 0 : i32
    %c0_i32_1 = arith.constant 0 : i32
    return %c0_i32, %c0_i32_0 : i32, i32
  }
  func.func @transform_4(%arg0: i32) -> (i32, i32) {
    %c0_i32 = arith.constant 0 : i32
    %c0_i32_0 = arith.constant 0 : i32
    %c0_i32_1 = arith.constant 0 : i32
    return %c0_i32, %c0_i32_0 : i32, i32
  }
  func.func @transform_5(%arg0: i32) -> (i32, i32) {
    %c0_i32 = arith.constant 0 : i32
    %c0_i32_0 = arith.constant 0 : i32
    %c0_i32_1 = arith.constant 0 : i32
    return %c0_i32, %c0_i32_0 : i32, i32
  }
  func.func @transform_6(%arg0: i32) -> (i32, i32) {
    %c0_i32 = arith.constant 0 : i32
    %c0_i32_0 = arith.constant 0 : i32
    %c0_i32_1 = arith.constant 0 : i32
    return %c0_i32, %c0_i32_0 : i32, i32
  }
  func.func @transform_7(%arg0: i32) -> (i32, i32) {
    %c0_i32 = arith.constant 0 : i32
    %c0_i32_0 = arith.constant 0 : i32
    %c0_i32_1 = arith.constant 0 : i32
    return %c0_i32, %c0_i32_0 : i32, i32
  }
  func.func @transform_8(%arg0: i32) -> (i32, i32, i32) {
    %c0_i32 = arith.constant 0 : i32
    %c0_i32_0 = arith.constant 0 : i32
    %c0_i32_1 = arith.constant 0 : i32
    return %arg0, %c0_i32, %c0_i32_0 : i32, i32, i32
  }
  func.func @transform_9(%arg0: i32) -> (i32, i32, i32) {
    %c0_i32 = arith.constant 0 : i32
    %c0_i32_0 = arith.constant 0 : i32
    %c0_i32_1 = arith.constant 0 : i32
    return %arg0, %c0_i32, %c0_i32_0 : i32, i32, i32
  }
  func.func @transform_10(%arg0: i32) -> (i32, i32) {
    %c0_i32 = arith.constant 0 : i32
    %c0_i32_0 = arith.constant 0 : i32
    return %c0_i32, %arg0 : i32, i32
  }
}

</mosaic_0001>

<bundles_post_ra>
// kernel: convnet_forward.1
= control target key start
LH: loop header
LB: loop body
LE: loop exit
PB: predicated region body
PF: predicated region fallthrough
CT: control target
= control target key end

     0   :  { %vm226_vm0 = vcmask 1040384   ;;  %vm144_vm1 = vcmask 1043456   ;;  %v10709_v0 = vmov 1.0   ;;  %vm186_vm2 = vcmask 793600   ;;  %s10698_s0 = inlined_call_operand.vmem [shape: f32[1,28,3584], index: 0, kind: input, shape index: {}]   ;;  %s10699_s1 = inlined_call_operand.vmem [shape: f32[104,97], index: 1, kind: input, shape index: {}]   ;;  %s10700_s2 = inlined_call_operand.vmem [shape: f32[52,104], index: 2, kind: input, shape index: {}]   ;;  %s10701_s3 = inlined_call_operand.vmem [shape: f32[52,104], index: 3, kind: input, shape index: {}]   ;;  %s10702_s8 = inlined_call_operand.vmem [shape: f32[1,52,1664], index: 8, kind: output, shape index: {0}]   ;;  %s10703_s4 = inlined_call_operand.vmem [shape: f32[33,169], index: 4, kind: input, shape index: {}]   ;;  %s10704_s5 = inlined_call_operand.vmem [shape: f32[15,33], index: 5, kind: input, shape index: {}]   ;;  %s10705_s6 = inlined_call_operand.vmem [shape: f32[15,33], index: 6, kind: input, shape index: {}]   ;;  %s10706_s7 = inlined_call_operand.vmem [shape: f32[10,81], index: 7, kind: input, shape index: {}]   ;;  %s10707_s9 = inlined_call_operand.vmem [shape: f32[1,15,640], index: 9, kind: output, shape index: {1}]   ;;  %s10708_s10 = inlined_call_operand.vmem [shape: f32[10,128], index: 10, kind: output, shape index: {2}]  }
   0x1   :  { %5335 = vmatprep.subr.msk.mxu0 %vm226_vm0, %v10709_v0  ;;  %5356 = vmatprep.subr.msk.mxu1 %vm226_vm0, %v10709_v0  ;;  %v119_v1 = vld [vmem:[%s10698_s0 + $0x2b8] sm:$0xf]  ;;  %v6115_v2 = vld [vmem:[%s10698_s0 + $0x2c8] sm:$0xf]  ;;  %v118_v3 = vld [vmem:[%s10698_s0 + $0x2b0] sm:$0xf] }
   0x2   :  { %5336 = vmatpush1.msk.msra.mxu0 %vm226_vm0, %v10709_v0  ;;  %5357 = vmatpush1.msk.msra.mxu1 %vm226_vm0, %v10709_v0  ;;  %v6127_v4 = vld [vmem:[%s10698_s0 + $0x2c0] sm:$0xf]  ;;  %v91_v5 = vld [vmem:[%s10698_s0 + $0x1d8] sm:$0xff]  ;;  %v6135_v6 = vld [vmem:[%s10698_s0 + $0x1e8] sm:$0xff]  ;;  %v10718_v26 = vmov 0.0   ;;  %vm2272_vm3 = vcmask 850944  }
   0x3   :  { %5337 = vmatprep.subr.msk.mxu0 %vm144_vm1, %v119_v1  ;;  %5358 = vmatprep.subr.msk.mxu1 %vm144_vm1, %v6115_v2  ;;  %v90_v7 = vld [vmem:[%s10698_s0 + $0x1d0] sm:$0xff]  ;;  %v6146_v8 = vld [vmem:[%s10698_s0 + $0x1e0] sm:$0xff]  ;;  %v63_v9 = vld [vmem:[%s10698_s0 + $0xf8] sm:$0xff]  ;;  %vm6049_vm4 = vmmov 0   ;;  %vm4185_vm5 = vcmask 334848   ;;  %vm4705_vm6 = vcmask 269312  }
   0x4   :  { %5338 = vmatpush1.msk.msra.mxu0 %vm144_vm1, %v118_v3  ;;  %5359 = vmatpush1.msk.msra.mxu1 %vm144_vm1, %v6127_v4  ;;  %v6157_v10 = vld [vmem:[%s10698_s0 + $0x108] sm:$0xff]  ;;  %v62_v11 = vld [vmem:[%s10698_s0 + $0xf0] sm:$0xff]  ;;  %v6166_v12 = vld [vmem:[%s10698_s0 + $0x100] sm:$0xff]  ;;  %vm5239_vm7 = vcmask 662528   ;;  %vm5231_vm8 = vcmask 1046528  }
   0x5   :  { %240 = vmatprep.subr.mxu0 %v91_v5  ;;  %383 = vmatprep.subr.mxu1 %v6135_v6  ;;  %v35_v13 = vld [vmem:[%s10698_s0 + $0x18] sm:$0xff]  ;;  %v6175_v14 = vld [vmem:[%s10698_s0 + $0x28] sm:$0xff]  ;;  %v34_v15 = vld [vmem:[%s10698_s0 + $0x10] sm:$0xff] }
   0x6   :  { %241 = vmatpush1.msra.mxu0 %v90_v7  ;;  %384 = vmatpush1.msra.mxu1 %v6146_v8  ;;  %v6184_v16 = vld [vmem:[%s10698_s0 + $0x20] sm:$0xff]  ;;  %v117_v17 = vld [vmem:[%s10698_s0 + $0x2a8] sm:$0xf]  ;;  %v6239_v27 = vld [vmem:[%s10698_s0 + $0x2d8] sm:$0xf] }
   0x7   :  { %242 = vmatprep.subr.mxu0 %v63_v9  ;;  %385 = vmatprep.subr.mxu1 %v6157_v10  ;;  %v89_v18 = vld [vmem:[%s10698_s0 + $0x1c8] sm:$0xff]  ;;  %v116_v21 = vld [vmem:[%s10698_s0 + $0x2a0] sm:$0xf]  ;;  %v6257_v29 = vld [vmem:[%s10698_s0 + $0x2d0] sm:$0xf] }
   0x8   :  { %243 = vmatpush1.msra.mxu0 %v62_v11  ;;  %386 = vmatpush1.msra.mxu1 %v6166_v12  ;;  %v61_v19 = vld [vmem:[%s10698_s0 + $0xe8] sm:$0xff]  ;;  %v88_v22 = vld [vmem:[%s10698_s0 + $0x1c0] sm:$0xff]  ;;  %v6268_v30 = vld [vmem:[%s10698_s0 + $0x1f8] sm:$0xff] }
   0x9   :  { %244 = vmatprep.subr.mxu0 %v35_v13  ;;  %387 = vmatprep.subr.mxu1 %v6175_v14  ;;  %v33_v20 = vld [vmem:[%s10698_s0 + $0x8] sm:$0xff]  ;;  %v60_v23 = vld [vmem:[%s10698_s0 + $0xe0] sm:$0xff]  ;;  %v6280_v32 = vld [vmem:[%s10699_s1 + $0x10] sm:$0xff] }
   0xa   :  { %245 = vmatpush1.msra.mxu0 %v34_v15  ;;  %388 = vmatpush1.msra.mxu1 %v6184_v16  ;;  %v32_v24 = vld [vmem:[%s10698_s0] sm:$0xff]  ;;  %v6247_v28 = vld [vmem:[%s10699_s1 + $0x8] sm:$0xff]  ;;  %v6290_v33 = vld [vmem:[%s10698_s0 + $0x1f0] sm:$0xff] }
   0xb   :  { %5339 = vmatprep.subr.msk.mxu0 %vm144_vm1, %v118_v3  ;;  %5360 = vmatprep.subr.msk.mxu1 %vm144_vm1, %v6127_v4  ;;  %v6228_v25 = vld [vmem:[%s10699_s1] sm:$0xff]  ;;  %v6273_v31 = vld [vmem:[%s10698_s0 + $0x2e8] sm:$0xf]  ;;  %v6306_v35 = vld [vmem:[%s10698_s0 + $0x118] sm:$0xff] }
   0xc   :  { %5340 = vmatpush1.msk.msra.mxu0 %vm144_vm1, %v117_v17  ;;  %5361 = vmatpush1.msk.msra.mxu1 %vm144_vm1, %v119_v1  ;;  %v6297_v34 = vld [vmem:[%s10698_s0 + $0x2e0] sm:$0xf]  ;;  %v6311_v36 = vld [vmem:[%s10698_s0 + $0x208] sm:$0xff]  ;;  %v6318_v37 = vld [vmem:[%s10699_s1 + $0x18] sm:$0xff] }
   0xd   :  { %248 = vmatprep.subr.mxu0 %v90_v7  ;;  %391 = vmatprep.subr.mxu1 %v6146_v8  ;;  %v6327_v38 = vld [vmem:[%s10698_s0 + $0x110] sm:$0xff]  ;;  %v6333_v39 = vld [vmem:[%s10698_s0 + $0x200] sm:$0xff]  ;;  %v6342_v40 = vld [vmem:[%s10698_s0 + $0x38] sm:$0xff] }
   0xe   :  { %249 = vmatpush1.msra.mxu0 %v89_v18  ;;  %392 = vmatpush1.msra.mxu1 %v91_v5  ;;  %v6347_v41 = vld [vmem:[%s10698_s0 + $0x128] sm:$0xff]  ;;  %v6354_v42 = vld [vmem:[%s10699_s1 + $0x20] sm:$0xff]  ;;  %v6362_v43 = vld [vmem:[%s10698_s0 + $0x30] sm:$0xff] }
   0xf   :  { %250 = vmatprep.subr.mxu0 %v62_v11  ;;  %393 = vmatprep.subr.mxu1 %v6166_v12  ;;  %v6368_v44 = vld [vmem:[%s10698_s0 + $0x120] sm:$0xff]  ;;  %v6377_v45 = vld [vmem:[%s10698_s0 + $0x48] sm:$0xff]  ;;  %v6405_v48 = vld [vmem:[%s10699_s1 + $0x30] sm:$0xff] }
  0x10   :  { %251 = vmatpush1.msra.mxu0 %v61_v19  ;;  %394 = vmatpush1.msra.mxu1 %v63_v9  ;;  %v6384_v46 = vld [vmem:[%s10699_s1 + $0x28] sm:$0xff]  ;;  %v6394_v47 = vld [vmem:[%s10698_s0 + $0x40] sm:$0xff]  ;;  %v6422_v49 = vld [vmem:[%s10699_s1 + $0x38] sm:$0xff] }
  0x11   :  { %252 = vmatprep.subr.mxu0 %v34_v15  ;;  %395 = vmatprep.subr.mxu1 %v6184_v16  ;;  %v6438_v50 = vld [vmem:[%s10699_s1 + $0x40] sm:$0xff]  ;;  %v6453_v51 = vld [vmem:[%s10699_s1 + $0x48] sm:$0xff]  ;;  %v6469_v52 = vld [vmem:[%s10699_s1 + $0x50] sm:$0xff] }
  0x12   :  { %253 = vmatpush1.msra.mxu0 %v33_v20  ;;  %396 = vmatpush1.msra.mxu1 %v35_v13  ;;  %v6486_v53 = vld [vmem:[%s10699_s1 + $0x58] sm:$0xff]  ;;  %v6502_v54 = vld [vmem:[%s10699_s1 + $0x60] sm:$0xff]  ;;  %v6538_v56 = vld [vmem:[%s10698_s0 + $0x2f0] sm:$0xf] }
  0x13   :  { %5341 = vmatprep.subr.msk.mxu0 %vm144_vm1, %v117_v17  ;;  %5362 = vmatprep.subr.msk.mxu1 %vm144_vm1, %v119_v1  ;;  %v6525_v55 = vld [vmem:[%s10698_s0 + $0x2f8] sm:$0xf]  ;;  %v6554_v58 = vld [vmem:[%s10698_s0 + $0x308] sm:$0xf]  ;;  %v6566_v59 = vld [vmem:[%s10698_s0 + $0x210] sm:$0xff] }
  0x14   :  { %5342 = vmatpush1.msk.msra.mxu0 %vm144_vm1, %v116_v21  ;;  %5363 = vmatpush1.msk.msra.mxu1 %vm144_vm1, %v118_v3  ;;  %v6549_v57 = vld [vmem:[%s10698_s0 + $0x218] sm:$0xff]  ;;  %v6573_v60 = vld [vmem:[%s10698_s0 + $0x300] sm:$0xf]  ;;  %v6587_v62 = vld [vmem:[%s10698_s0 + $0x228] sm:$0xff] }
  0x15   :  { %256 = vmatprep.subr.mxu0 %v89_v18  ;;  %399 = vmatprep.subr.mxu1 %v91_v5  ;;  %v6582_v61 = vld [vmem:[%s10698_s0 + $0x138] sm:$0xff]  ;;  %v6598_v63 = vld [vmem:[%s10698_s0 + $0x130] sm:$0xff]  ;;  %v6604_v1 = vld [vmem:[%s10698_s0 + $0x220] sm:$0xff] }
  0x16   :  { %257 = vmatpush1.msra.mxu0 %v88_v22  ;;  %400 = vmatpush1.msra.mxu1 %v90_v7  ;;  %v6618_v3 = vld [vmem:[%s10698_s0 + $0x148] sm:$0xff]  ;;  %v6634_v5 = vld [vmem:[%s10698_s0 + $0x140] sm:$0xff]  ;;  %v6839_v18 = vld [vmem:[%s10698_s0 + $0x78] sm:$0xff] }
  0x17   :  { %258 = vmatprep.subr.mxu0 %v61_v19  ;;  %401 = vmatprep.subr.mxu1 %v63_v9  ;;  %v6655_v7 = vld [vmem:[%s10698_s0 + $0x60] sm:$0xff]  ;;  %v6764_v9 = vld [vmem:[%s10698_s0 + $0x310] sm:$0xf]  ;;  %v6844_v19 = vld [vmem:[%s10698_s0 + $0x168] sm:$0xff] }
  0x18   :  { %259 = vmatpush1.msra.mxu0 %v60_v23  ;;  %402 = vmatpush1.msra.mxu1 %v62_v11  ;;  %v6780_v11 = vld [vmem:[%s10698_s0 + $0x328] sm:$0xf]  ;;  %v6830_v17 = vld [vmem:[%s10698_s0 + $0x240] sm:$0xff] }
  0x19   :  { %260 = vmatprep.subr.mxu0 %v33_v20  ;;  %403 = vmatprep.subr.mxu1 %v35_v13  ;;  %v6799_v13 = vld [vmem:[%s10698_s0 + $0x320] sm:$0xf]  ;;  %v6854_v20 = vld [vmem:[%s10698_s0 + $0x70] sm:$0xff]  ;;  %v6869_v22 = vld [vmem:[%s10698_s0 + $0x88] sm:$0xff] }
  0x1a   :  { %261 = vmatpush1.msra.mxu0 %v32_v24  ;;  %294 = vmatprep.mubr.f32.mxu0 %v10718_v26  ;;  %v6860_v21 = vld [vmem:[%s10698_s0 + $0x160] sm:$0xff]  ;;  %v6977_v24 = vld [vmem:[%s10698_s0 + $0x338] sm:$0xf] }
  0x1b   :  { %404 = vmatpush1.msra.mxu1 %v34_v15  ;;  %437 = vmatprep.mubr.f32.mxu1 %v10718_v26  ;;  %v6813_v15 = vld [vmem:[%s10698_s0 + $0x248] sm:$0xff]  ;;  %v6881_v23 = vld [vmem:[%s10698_s0 + $0x80] sm:$0xff] }
  0x1c   :  { %5343 = vmatmul.mubr.msk.f32.vlgmr.msra.gmra.mxu0 %vm186_vm2, %v6228_v25  ;;  %5364 = vmatmul.mubr.msk.f32.vlgmr.msra.gmra.mxu1 %vm186_vm2, %v6228_v25 }
  0x1d   :  { %5377 = vmatprep.subr.msk.mxu0 %vm226_vm0, %v10709_v0  ;;  %300 = vmatprep.mubr.f32.mxu0 %v10718_v26 }
  0x1e   :  { %443 = vmatprep.mubr.f32.mxu1 %v10718_v26  ;;  %5378 = vmatpush1.msk.msra.mxu0 %vm226_vm0, %v10709_v0 }
  0x1f   :  { %5379 = vmatprep.subr.msk.mxu0 %vm144_vm1, %v6239_v27  ;;  %5398 = vmatprep.subr.msk.mxu1 %vm226_vm0, %v10709_v0 }
  0x20   :  { %5344 = vmatmul.mubr.msk.f32.gmra.mxu0 %vm186_vm2, %v6247_v28  ;;  %5365 = vmatmul.mubr.msk.f32.gmra.mxu1 %vm186_vm2, %v6247_v28 }
  0x21   :  { %306 = vmatprep.mubr.f32.mxu0 %v10718_v26  ;;  %449 = vmatprep.mubr.f32.mxu1 %v10718_v26 }
  0x22   :  { %5380 = vmatpush1.msk.msra.mxu0 %vm144_vm1, %v6257_v29  ;;  %5399 = vmatpush1.msk.msra.mxu1 %vm226_vm0, %v10709_v0 }
  0x23   :  { %526 = vmatprep.subr.mxu0 %v6268_v30  ;;  %5400 = vmatprep.subr.msk.mxu1 %vm144_vm1, %v6273_v31 }
  0x24   :  { %5345 = vmatmul.mubr.msk.f32.gmra.mxu0 %vm186_vm2, %v6280_v32  ;;  %5366 = vmatmul.mubr.msk.f32.gmra.mxu1 %vm186_vm2, %v6280_v32 }
  0x25   :  { %312 = vmatprep.mubr.f32.mxu0 %v10718_v26  ;;  %455 = vmatprep.mubr.f32.mxu1 %v10718_v26 }
  0x26   :  { %527 = vmatpush1.msra.mxu0 %v6290_v33  ;;  %5401 = vmatpush1.msk.msra.mxu1 %vm144_vm1, %v6297_v34 }
  0x27   :  { %528 = vmatprep.subr.mxu0 %v6306_v35  ;;  %669 = vmatprep.subr.mxu1 %v6311_v36 }
  0x28   :  { %5346 = vmatmul.mubr.msk.f32.gmra.mxu0 %vm186_vm2, %v6318_v37  ;;  %5367 = vmatmul.mubr.msk.f32.gmra.mxu1 %vm186_vm2, %v6318_v37 }
  0x29   :  { %318 = vmatprep.mubr.f32.mxu0 %v10718_v26  ;;  %461 = vmatprep.mubr.f32.mxu1 %v10718_v26 }
  0x2a   :  { %529 = vmatpush1.msra.mxu0 %v6327_v38  ;;  %670 = vmatpush1.msra.mxu1 %v6333_v39 }
  0x2b   :  { %530 = vmatprep.subr.mxu0 %v6342_v40  ;;  %671 = vmatprep.subr.mxu1 %v6347_v41 }
  0x2c   :  { %5347 = vmatmul.mubr.msk.f32.gmra.mxu0 %vm186_vm2, %v6354_v42  ;;  %5368 = vmatmul.mubr.msk.f32.gmra.mxu1 %vm186_vm2, %v6354_v42 }
  0x2d   :  { %324 = vmatprep.mubr.f32.mxu0 %v10718_v26  ;;  %467 = vmatprep.mubr.f32.mxu1 %v10718_v26 }
  0x2e   :  { %531 = vmatpush1.msra.mxu0 %v6362_v43  ;;  %672 = vmatpush1.msra.mxu1 %v6368_v44 }
  0x2f   :  { %5381 = vmatprep.subr.msk.mxu0 %vm144_vm1, %v6257_v29  ;;  %673 = vmatprep.subr.mxu1 %v6377_v45 }
  0x30   :  { %5348 = vmatmul.mubr.msk.f32.gmra.mxu0 %vm186_vm2, %v6384_v46  ;;  %5369 = vmatmul.mubr.msk.f32.gmra.mxu1 %vm186_vm2, %v6384_v46 }
  0x31   :  { %330 = vmatprep.mubr.f32.mxu0 %v10718_v26  ;;  %473 = vmatprep.mubr.f32.mxu1 %v10718_v26 }
  0x32   :  { %5382 = vmatpush1.msk.msra.mxu0 %vm144_vm1, %v6115_v2  ;;  %674 = vmatpush1.msra.mxu1 %v6394_v47 }
  0x33   :  { %534 = vmatprep.subr.mxu0 %v6290_v33  ;;  %5402 = vmatprep.subr.msk.mxu1 %vm144_vm1, %v6297_v34 }
  0x34   :  { %5349 = vmatmul.mubr.msk.f32.gmra.mxu0 %vm186_vm2, %v6405_v48  ;;  %5370 = vmatmul.mubr.msk.f32.gmra.mxu1 %vm186_vm2, %v6405_v48 }
  0x35   :  { %336 = vmatprep.mubr.f32.mxu0 %v10718_v26  ;;  %479 = vmatprep.mubr.f32.mxu1 %v10718_v26 }
  0x36   :  { %535 = vmatpush1.msra.mxu0 %v6135_v6  ;;  %5403 = vmatpush1.msk.msra.mxu1 %vm144_vm1, %v6239_v27 }
  0x37   :  { %536 = vmatprep.subr.mxu0 %v6327_v38  ;;  %677 = vmatprep.subr.mxu1 %v6333_v39 }
  0x38   :  { %5350 = vmatmul.mubr.msk.f32.gmra.mxu0 %vm186_vm2, %v6422_v49  ;;  %5371 = vmatmul.mubr.msk.f32.gmra.mxu1 %vm186_vm2, %v6422_v49 }
  0x39   :  { %342 = vmatprep.mubr.f32.mxu0 %v10718_v26  ;;  %485 = vmatprep.mubr.f32.mxu1 %v10718_v26 }
  0x3a   :  { %537 = vmatpush1.msra.mxu0 %v6157_v10  ;;  %678 = vmatpush1.msra.mxu1 %v6268_v30 }
  0x3b   :  { %538 = vmatprep.subr.mxu0 %v6362_v43  ;;  %679 = vmatprep.subr.mxu1 %v6368_v44 }
  0x3c   :  { %5351 = vmatmul.mubr.msk.f32.gmra.mxu0 %vm186_vm2, %v6438_v50  ;;  %5372 = vmatmul.mubr.msk.f32.gmra.mxu1 %vm186_vm2, %v6438_v50 }
  0x3d   :  { %348 = vmatprep.mubr.f32.mxu0 %v10718_v26  ;;  %491 = vmatprep.mubr.f32.mxu1 %v10718_v26 }
  0x3e   :  { %539 = vmatpush1.msra.mxu0 %v6175_v14  ;;  %680 = vmatpush1.msra.mxu1 %v6306_v35 }
  0x3f   :  { %5383 = vmatprep.subr.msk.mxu0 %vm144_vm1, %v6115_v2  ;;  %681 = vmatprep.subr.mxu1 %v6394_v47  ;;  %v6613_v2 = vld [vmem:[%s10698_s0 + $0x58] sm:$0xff] }
  0x40   :  { %5352 = vmatmul.mubr.msk.f32.gmra.mxu0 %vm186_vm2, %v6453_v51  ;;  %5373 = vmatmul.mubr.msk.f32.gmra.mxu1 %vm186_vm2, %v6453_v51 }
  0x41   :  { %354 = vmatprep.mubr.f32.mxu0 %v10718_v26  ;;  %497 = vmatprep.mubr.f32.mxu1 %v10718_v26 }
  0x42   :  { %5384 = vmatpush1.msk.msra.mxu0 %vm144_vm1, %v6127_v4  ;;  %682 = vmatpush1.msra.mxu1 %v6342_v40  ;;  %v6628_v4 = vld [vmem:[%s10698_s0 + $0x50] sm:$0xff] }
  0x43   :  { %542 = vmatprep.subr.mxu0 %v6135_v6  ;;  %5404 = vmatprep.subr.msk.mxu1 %vm144_vm1, %v6239_v27  ;;  %v6643_v6 = vld [vmem:[%s10698_s0 + $0x68] sm:$0xff]  ;;  %v7001_v27 = vld [vmem:[%s10698_s0 + $0x258] sm:$0xff] }
  0x44   :  { %5353 = vmatmul.mubr.msk.f32.gmra.mxu0 %vm186_vm2, %v6469_v52  ;;  %5374 = vmatmul.mubr.msk.f32.gmra.mxu1 %vm186_vm2, %v6469_v52 }
  0x45   :  { %360 = vmatprep.mubr.f32.mxu0 %v10718_v26  ;;  %503 = vmatprep.mubr.f32.mxu1 %v10718_v26 }
  0x46   :  { %543 = vmatpush1.msra.mxu0 %v6146_v8  ;;  %5405 = vmatpush1.msk.msra.mxu1 %vm144_vm1, %v6257_v29  ;;  %v6751_v8 = vld [vmem:[%s10698_s0 + $0x318] sm:$0xf]  ;;  %v7006_v29 = vld [vmem:[%s10698_s0 + $0x348] sm:$0xf] }
  0x47   :  { %544 = vmatprep.subr.mxu0 %v6157_v10  ;;  %685 = vmatprep.subr.mxu1 %v6268_v30  ;;  %v6775_v10 = vld [vmem:[%s10698_s0 + $0x238] sm:$0xff]  ;;  %v7025_v30 = vld [vmem:[%s10698_s0 + $0x340] sm:$0xf] }
  0x48   :  { %5354 = vmatmul.mubr.msk.f32.gmra.mxu0 %vm186_vm2, %v6486_v53  ;;  %5375 = vmatmul.mubr.msk.f32.gmra.mxu1 %vm186_vm2, %v6486_v53 }
  0x49   :  { %366 = vmatprep.mubr.f32.mxu0 %v10718_v26  ;;  %509 = vmatprep.mubr.f32.mxu1 %v10718_v26 }
  0x4a   :  { %545 = vmatpush1.msra.mxu0 %v6166_v12  ;;  %686 = vmatpush1.msra.mxu1 %v6290_v33  ;;  %v6792_v12 = vld [vmem:[%s10698_s0 + $0x230] sm:$0xff]  ;;  %v7039_v33 = vld [vmem:[%s10698_s0 + $0x268] sm:$0xff] }
  0x4b   :  { %687 = vmatprep.subr.mxu1 %v6306_v35  ;;  %546 = vmatprep.subr.mxu0 %v6175_v14  ;;  %v6808_v14 = vld [vmem:[%s10698_s0 + $0x158] sm:$0xff] }
  0x4c   :  { %5355 = vmatmul.mubr.msk.f32.gmra.mxu0 %vm186_vm2, %v6502_v54  ;;  %5376 = vmatmul.mubr.msk.f32.gmra.mxu1 %vm186_vm2, %v6502_v54  ;;  %v7065_v35 = vld [vmem:[%s10698_s0 + $0x98] sm:$0xff] }
  0x4d   :  { %688 = vmatpush1.msra.mxu1 %v6327_v38  ;;  %547 = vmatpush1.msra.mxu0 %v6184_v16  ;;  %v6824_v16 = vld [vmem:[%s10698_s0 + $0x150] sm:$0xff]  ;;  %v7086_v38 = vld [vmem:[%s10698_s0 + $0x180] sm:$0xff] }
  0x4e   :  { %689 = vmatprep.subr.mxu1 %v6342_v40  ;;  %580 = vmatprep.mubr.f32.mxu0 %v10718_v26  ;;  %v7107_v40 = vld [vmem:[%s10698_s0 + $0xa0] sm:$0xff] }
  0x4f   :  { %690 = vmatpush1.msra.mxu1 %v6362_v43  ;;  %723 = vmatprep.mubr.f32.mxu1 %v10718_v26 }
  0x50   :  { %5385 = vmatmul.mubr.msk.f32.vlgmr.msra.gmra.mxu0 %vm186_vm2, %v6228_v25  ;;  %5406 = vmatmul.mubr.msk.f32.vlgmr.msra.gmra.mxu1 %vm186_vm2, %v6228_v25 }
  0x51   :  { %5419 = vmatprep.subr.msk.mxu0 %vm226_vm0, %v10709_v0  ;;  %586 = vmatprep.mubr.f32.mxu0 %v10718_v26 }
  0x52   :  { %729 = vmatprep.mubr.f32.mxu1 %v10718_v26  ;;  %5420 = vmatpush1.msk.msra.mxu0 %vm226_vm0, %v10709_v0 }
  0x53   :  { %5421 = vmatprep.subr.msk.mxu0 %vm144_vm1, %v6525_v55  ;;  %5440 = vmatprep.subr.msk.mxu1 %vm226_vm0, %v10709_v0 }
  0x54   :  { %5386 = vmatmul.mubr.msk.f32.gmra.mxu0 %vm186_vm2, %v6247_v28  ;;  %5407 = vmatmul.mubr.msk.f32.gmra.mxu1 %vm186_vm2, %v6247_v28 }
  0x55   :  { %592 = vmatprep.mubr.f32.mxu0 %v10718_v26  ;;  %735 = vmatprep.mubr.f32.mxu1 %v10718_v26 }
  0x56   :  { %5422 = vmatpush1.msk.msra.mxu0 %vm144_vm1, %v6538_v56  ;;  %5441 = vmatpush1.msk.msra.mxu1 %vm226_vm0, %v10709_v0 }
  0x57   :  { %812 = vmatprep.subr.mxu0 %v6549_v57  ;;  %5442 = vmatprep.subr.msk.mxu1 %vm144_vm1, %v6554_v58 }
  0x58   :  { %5387 = vmatmul.mubr.msk.f32.gmra.mxu0 %vm186_vm2, %v6280_v32  ;;  %5408 = vmatmul.mubr.msk.f32.gmra.mxu1 %vm186_vm2, %v6280_v32 }
  0x59   :  { %598 = vmatprep.mubr.f32.mxu0 %v10718_v26  ;;  %741 = vmatprep.mubr.f32.mxu1 %v10718_v26 }
  0x5a   :  { %813 = vmatpush1.msra.mxu0 %v6566_v59  ;;  %5443 = vmatpush1.msk.msra.mxu1 %vm144_vm1, %v6573_v60 }
  0x5b   :  { %814 = vmatprep.subr.mxu0 %v6582_v61  ;;  %955 = vmatprep.subr.mxu1 %v6587_v62 }
  0x5c   :  { %5388 = vmatmul.mubr.msk.f32.gmra.mxu0 %vm186_vm2, %v6318_v37  ;;  %5409 = vmatmul.mubr.msk.f32.gmra.mxu1 %vm186_vm2, %v6318_v37 }
  0x5d   :  { %604 = vmatprep.mubr.f32.mxu0 %v10718_v26  ;;  %747 = vmatprep.mubr.f32.mxu1 %v10718_v26 }
  0x5e   :  { %815 = vmatpush1.msra.mxu0 %v6598_v63  ;;  %956 = vmatpush1.msra.mxu1 %v6604_v1 }
  0x5f   :  { %816 = vmatprep.subr.mxu0 %v6613_v2  ;;  %957 = vmatprep.subr.mxu1 %v6618_v3 }
  0x60   :  { %5389 = vmatmul.mubr.msk.f32.gmra.mxu0 %vm186_vm2, %v6354_v42  ;;  %5410 = vmatmul.mubr.msk.f32.gmra.mxu1 %vm186_vm2, %v6354_v42 }
  0x61   :  { %610 = vmatprep.mubr.f32.mxu0 %v10718_v26  ;;  %753 = vmatprep.mubr.f32.mxu1 %v10718_v26 }
  0x62   :  { %817 = vmatpush1.msra.mxu0 %v6628_v4  ;;  %958 = vmatpush1.msra.mxu1 %v6634_v5 }
  0x63   :  { %5423 = vmatprep.subr.msk.mxu0 %vm144_vm1, %v6538_v56  ;;  %959 = vmatprep.subr.mxu1 %v6643_v6 }
  0x64   :  { %5390 = vmatmul.mubr.msk.f32.gmra.mxu0 %vm186_vm2, %v6384_v46  ;;  %5411 = vmatmul.mubr.msk.f32.gmra.mxu1 %vm186_vm2, %v6384_v46 }
  0x65   :  { %616 = vmatprep.mubr.f32.mxu0 %v10718_v26  ;;  %759 = vmatprep.mubr.f32.mxu1 %v10718_v26 }
  0x66   :  { %5424 = vmatpush1.msk.msra.mxu0 %vm144_vm1, %v6273_v31  ;;  %960 = vmatpush1.msra.mxu1 %v6655_v7 }
  0x67   :  { %820 = vmatprep.subr.mxu0 %v6566_v59  ;;  %5444 = vmatprep.subr.msk.mxu1 %vm144_vm1, %v6573_v60 }
  0x68   :  { %5391 = vmatmul.mubr.msk.f32.gmra.mxu0 %vm186_vm2, %v6405_v48  ;;  %5412 = vmatmul.mubr.msk.f32.gmra.mxu1 %vm186_vm2, %v6405_v48 }
  0x69   :  { %622 = vmatprep.mubr.f32.mxu0 %v10718_v26  ;;  %765 = vmatprep.mubr.f32.mxu1 %v10718_v26 }
  0x6a   :  { %821 = vmatpush1.msra.mxu0 %v6311_v36  ;;  %5445 = vmatpush1.msk.msra.mxu1 %vm144_vm1, %v6525_v55 }
  0x6b   :  { %822 = vmatprep.subr.mxu0 %v6598_v63  ;;  %963 = vmatprep.subr.mxu1 %v6604_v1 }
  0x6c   :  { %5392 = vmatmul.mubr.msk.f32.gmra.mxu0 %vm186_vm2, %v6422_v49  ;;  %5413 = vmatmul.mubr.msk.f32.gmra.mxu1 %vm186_vm2, %v6422_v49 }
  0x6d   :  { %628 = vmatprep.mubr.f32.mxu0 %v10718_v26  ;;  %771 = vmatprep.mubr.f32.mxu1 %v10718_v26 }
  0x6e   :  { %823 = vmatpush1.msra.mxu0 %v6347_v41  ;;  %964 = vmatpush1.msra.mxu1 %v6549_v57 }
  0x6f   :  { %824 = vmatprep.subr.mxu0 %v6628_v4  ;;  %965 = vmatprep.subr.mxu1 %v6634_v5 }
  0x70   :  { %5393 = vmatmul.mubr.msk.f32.gmra.mxu0 %vm186_vm2, %v6438_v50  ;;  %5414 = vmatmul.mubr.msk.f32.gmra.mxu1 %vm186_vm2, %v6438_v50 }
  0x71   :  { %634 = vmatprep.mubr.f32.mxu0 %v10718_v26  ;;  %777 = vmatprep.mubr.f32.mxu1 %v10718_v26 }
  0x72   :  { %825 = vmatpush1.msra.mxu0 %v6377_v45  ;;  %966 = vmatpush1.msra.mxu1 %v6582_v61 }
  0x73   :  { %5425 = vmatprep.subr.msk.mxu0 %vm144_vm1, %v6273_v31  ;;  %967 = vmatprep.subr.mxu1 %v6655_v7  ;;  %v7034_v31 = vld [vmem:[%s10698_s0 + $0x178] sm:$0xff] }
  0x74   :  { %5394 = vmatmul.mubr.msk.f32.gmra.mxu0 %vm186_vm2, %v6453_v51  ;;  %5415 = vmatmul.mubr.msk.f32.gmra.mxu1 %vm186_vm2, %v6453_v51 }
  0x75   :  { %640 = vmatprep.mubr.f32.mxu0 %v10718_v26  ;;  %783 = vmatprep.mubr.f32.mxu1 %v10718_v26 }
  0x76   :  { %5426 = vmatpush1.msk.msra.mxu0 %vm144_vm1, %v6297_v34  ;;  %968 = vmatpush1.msra.mxu1 %v6613_v2  ;;  %v7056_v34 = vld [vmem:[%s10698_s0 + $0x260] sm:$0xff] }
  0x77   :  { %828 = vmatprep.subr.mxu0 %v6311_v36  ;;  %5446 = vmatprep.subr.msk.mxu1 %vm144_vm1, %v6525_v55  ;;  %v7070_v36 = vld [vmem:[%s10698_s0 + $0x188] sm:$0xff] }
  0x78   :  { %5395 = vmatmul.mubr.msk.f32.gmra.mxu0 %vm186_vm2, %v6469_v52  ;;  %5416 = vmatmul.mubr.msk.f32.gmra.mxu1 %vm186_vm2, %v6469_v52 }
  0x79   :  { %646 = vmatprep.mubr.f32.mxu0 %v10718_v26  ;;  %789 = vmatprep.mubr.f32.mxu1 %v10718_v26 }
  0x7a   :  { %829 = vmatpush1.msra.mxu0 %v6333_v39  ;;  %5447 = vmatpush1.msk.msra.mxu1 %vm144_vm1, %v6538_v56  ;;  %v7095_v39 = vld [vmem:[%s10698_s0 + $0xa8] sm:$0xff] }
  0x7b   :  { %830 = vmatprep.subr.mxu0 %v6347_v41  ;;  %971 = vmatprep.subr.mxu1 %v6549_v57 }
  0x7c   :  { %5396 = vmatmul.mubr.msk.f32.gmra.mxu0 %vm186_vm2, %v6486_v53  ;;  %5417 = vmatmul.mubr.msk.f32.gmra.mxu1 %vm186_vm2, %v6486_v53 }
  0x7d   :  { %652 = vmatprep.mubr.f32.mxu0 %v10718_v26  ;;  %795 = vmatprep.mubr.f32.mxu1 %v10718_v26 }
  0x7e   :  { %831 = vmatpush1.msra.mxu0 %v6368_v44  ;;  %972 = vmatpush1.msra.mxu1 %v6566_v59 }
  0x7f   :  { %973 = vmatprep.subr.mxu1 %v6582_v61  ;;  %832 = vmatprep.subr.mxu0 %v6377_v45 }
  0x80   :  { %5397 = vmatmul.mubr.msk.f32.gmra.mxu0 %vm186_vm2, %v6502_v54  ;;  %5418 = vmatmul.mubr.msk.f32.gmra.mxu1 %vm186_vm2, %v6502_v54 }
  0x81   :  { %974 = vmatpush1.msra.mxu1 %v6598_v63  ;;  %833 = vmatpush1.msra.mxu0 %v6394_v47 }
  0x82   :  { %975 = vmatprep.subr.mxu1 %v6613_v2  ;;  %866 = vmatprep.mubr.f32.mxu0 %v10718_v26 }
  0x83   :  { %976 = vmatpush1.msra.mxu1 %v6628_v4  ;;  %1009 = vmatprep.mubr.f32.mxu1 %v10718_v26  ;;  %v7215_v4 = vld [vmem:[%s10699_s1] sm:$0xff] }
  0x84   :  { %5427 = vmatmul.mubr.msk.f32.vlgmr.msra.gmra.mxu0 %vm186_vm2, %v6228_v25  ;;  %5448 = vmatmul.mubr.msk.f32.vlgmr.msra.gmra.mxu1 %vm186_vm2, %v6228_v25 }
  0x85   :  { %5461 = vmatprep.subr.msk.mxu0 %vm226_vm0, %v10709_v0  ;;  %872 = vmatprep.mubr.f32.mxu0 %v10718_v26 }
  0x86   :  { %1015 = vmatprep.mubr.f32.mxu1 %v10718_v26  ;;  %5462 = vmatpush1.msk.msra.mxu0 %vm226_vm0, %v10709_v0 }
  0x87   :  { %5463 = vmatprep.subr.msk.mxu0 %vm144_vm1, %v6751_v8  ;;  %5482 = vmatprep.subr.msk.mxu1 %vm226_vm0, %v10709_v0 }
  0x88   :  { %5428 = vmatmul.mubr.msk.f32.gmra.mxu0 %vm186_vm2, %v6247_v28  ;;  %5449 = vmatmul.mubr.msk.f32.gmra.mxu1 %vm186_vm2, %v6247_v28 }
  0x89   :  { %878 = vmatprep.mubr.f32.mxu0 %v10718_v26  ;;  %1021 = vmatprep.mubr.f32.mxu1 %v10718_v26 }
  0x8a   :  { %5464 = vmatpush1.msk.msra.mxu0 %vm144_vm1, %v6764_v9  ;;  %5483 = vmatpush1.msk.msra.mxu1 %vm226_vm0, %v10709_v0 }
  0x8b   :  { %1098 = vmatprep.subr.mxu0 %v6775_v10  ;;  %5484 = vmatprep.subr.msk.mxu1 %vm144_vm1, %v6780_v11 }
  0x8c   :  { %5429 = vmatmul.mubr.msk.f32.gmra.mxu0 %vm186_vm2, %v6280_v32  ;;  %5450 = vmatmul.mubr.msk.f32.gmra.mxu1 %vm186_vm2, %v6280_v32 }
  0x8d   :  { %884 = vmatprep.mubr.f32.mxu0 %v10718_v26  ;;  %1027 = vmatprep.mubr.f32.mxu1 %v10718_v26 }
  0x8e   :  { %1099 = vmatpush1.msra.mxu0 %v6792_v12  ;;  %5485 = vmatpush1.msk.msra.mxu1 %vm144_vm1, %v6799_v13 }
  0x8f   :  { %1100 = vmatprep.subr.mxu0 %v6808_v14  ;;  %1241 = vmatprep.subr.mxu1 %v6813_v15 }
  0x90   :  { %5430 = vmatmul.mubr.msk.f32.gmra.mxu0 %vm186_vm2, %v6318_v37  ;;  %5451 = vmatmul.mubr.msk.f32.gmra.mxu1 %vm186_vm2, %v6318_v37 }
  0x91   :  { %890 = vmatprep.mubr.f32.mxu0 %v10718_v26  ;;  %1033 = vmatprep.mubr.f32.mxu1 %v10718_v26 }
  0x92   :  { %1101 = vmatpush1.msra.mxu0 %v6824_v16  ;;  %1242 = vmatpush1.msra.mxu1 %v6830_v17 }
  0x93   :  { %1102 = vmatprep.subr.mxu0 %v6839_v18  ;;  %1243 = vmatprep.subr.mxu1 %v6844_v19 }
  0x94   :  { %5431 = vmatmul.mubr.msk.f32.gmra.mxu0 %vm186_vm2, %v6354_v42  ;;  %5452 = vmatmul.mubr.msk.f32.gmra.mxu1 %vm186_vm2, %v6354_v42 }
  0x95   :  { %896 = vmatprep.mubr.f32.mxu0 %v10718_v26  ;;  %1039 = vmatprep.mubr.f32.mxu1 %v10718_v26 }
  0x96   :  { %1103 = vmatpush1.msra.mxu0 %v6854_v20  ;;  %1244 = vmatpush1.msra.mxu1 %v6860_v21 }
  0x97   :  { %5465 = vmatprep.subr.msk.mxu0 %vm144_vm1, %v6764_v9  ;;  %1245 = vmatprep.subr.mxu1 %v6869_v22 }
  0x98   :  { %5432 = vmatmul.mubr.msk.f32.gmra.mxu0 %vm186_vm2, %v6384_v46  ;;  %5453 = vmatmul.mubr.msk.f32.gmra.mxu1 %vm186_vm2, %v6384_v46 }
  0x99   :  { %902 = vmatprep.mubr.f32.mxu0 %v10718_v26  ;;  %1045 = vmatprep.mubr.f32.mxu1 %v10718_v26 }
  0x9a   :  { %5466 = vmatpush1.msk.msra.mxu0 %vm144_vm1, %v6554_v58  ;;  %1246 = vmatpush1.msra.mxu1 %v6881_v23 }
  0x9b   :  { %1106 = vmatprep.subr.mxu0 %v6792_v12  ;;  %5486 = vmatprep.subr.msk.mxu1 %vm144_vm1, %v6799_v13 }
  0x9c   :  { %5433 = vmatmul.mubr.msk.f32.gmra.mxu0 %vm186_vm2, %v6405_v48  ;;  %5454 = vmatmul.mubr.msk.f32.gmra.mxu1 %vm186_vm2, %v6405_v48 }
  0x9d   :  { %908 = vmatprep.mubr.f32.mxu0 %v10718_v26  ;;  %1051 = vmatprep.mubr.f32.mxu1 %v10718_v26 }
  0x9e   :  { %1107 = vmatpush1.msra.mxu0 %v6587_v62  ;;  %5487 = vmatpush1.msk.msra.mxu1 %vm144_vm1, %v6751_v8 }
  0x9f   :  { %1108 = vmatprep.subr.mxu0 %v6824_v16  ;;  %1249 = vmatprep.subr.mxu1 %v6830_v17 }
  0xa0   :  { %5434 = vmatmul.mubr.msk.f32.gmra.mxu0 %vm186_vm2, %v6422_v49  ;;  %5455 = vmatmul.mubr.msk.f32.gmra.mxu1 %vm186_vm2, %v6422_v49 }
  0xa1   :  { %914 = vmatprep.mubr.f32.mxu0 %v10718_v26  ;;  %1057 = vmatprep.mubr.f32.mxu1 %v10718_v26 }
  0xa2   :  { %1109 = vmatpush1.msra.mxu0 %v6618_v3  ;;  %1250 = vmatpush1.msra.mxu1 %v6775_v10 }
  0xa3   :  { %1110 = vmatprep.subr.mxu0 %v6854_v20  ;;  %1251 = vmatprep.subr.mxu1 %v6860_v21 }
  0xa4   :  { %5435 = vmatmul.mubr.msk.f32.gmra.mxu0 %vm186_vm2, %v6438_v50  ;;  %5456 = vmatmul.mubr.msk.f32.gmra.mxu1 %vm186_vm2, %v6438_v50 }
  0xa5   :  { %920 = vmatprep.mubr.f32.mxu0 %v10718_v26  ;;  %1063 = vmatprep.mubr.f32.mxu1 %v10718_v26 }
  0xa6   :  { %1111 = vmatpush1.msra.mxu0 %v6643_v6  ;;  %1252 = vmatpush1.msra.mxu1 %v6808_v14 }
  0xa7   :  { %5467 = vmatprep.subr.msk.mxu0 %vm144_vm1, %v6554_v58  ;;  %1253 = vmatprep.subr.mxu1 %v6881_v23 }
  0xa8   :  { %5436 = vmatmul.mubr.msk.f32.gmra.mxu0 %vm186_vm2, %v6453_v51  ;;  %5457 = vmatmul.mubr.msk.f32.gmra.mxu1 %vm186_vm2, %v6453_v51 }
  0xa9   :  { %926 = vmatprep.mubr.f32.mxu0 %v10718_v26  ;;  %1069 = vmatprep.mubr.f32.mxu1 %v10718_v26 }
  0xaa   :  { %5468 = vmatpush1.msk.msra.mxu0 %vm144_vm1, %v6573_v60  ;;  %1254 = vmatpush1.msra.mxu1 %v6839_v18 }
  0xab   :  { %1114 = vmatprep.subr.mxu0 %v6587_v62  ;;  %5488 = vmatprep.subr.msk.mxu1 %vm144_vm1, %v6751_v8 }
  0xac   :  { %5437 = vmatmul.mubr.msk.f32.gmra.mxu0 %vm186_vm2, %v6469_v52  ;;  %5458 = vmatmul.mubr.msk.f32.gmra.mxu1 %vm186_vm2, %v6469_v52 }
  0xad   :  { %932 = vmatprep.mubr.f32.mxu0 %v10718_v26  ;;  %1075 = vmatprep.mubr.f32.mxu1 %v10718_v26 }
  0xae   :  { %1115 = vmatpush1.msra.mxu0 %v6604_v1  ;;  %5489 = vmatpush1.msk.msra.mxu1 %vm144_vm1, %v6764_v9 }
  0xaf   :  { %1116 = vmatprep.subr.mxu0 %v6618_v3  ;;  %1257 = vmatprep.subr.mxu1 %v6775_v10  ;;  %v7241_v10 = vld [vmem:[%s10698_s0 + $0x350] sm:$0xf] }
  0xb0   :  { %5438 = vmatmul.mubr.msk.f32.gmra.mxu0 %vm186_vm2, %v6486_v53  ;;  %5459 = vmatmul.mubr.msk.f32.gmra.mxu1 %vm186_vm2, %v6486_v53 }
  0xb1   :  { %938 = vmatprep.mubr.f32.mxu0 %v10718_v26  ;;  %1081 = vmatprep.mubr.f32.mxu1 %v10718_v26 }
  0xb2   :  { %1117 = vmatpush1.msra.mxu0 %v6634_v5  ;;  %1258 = vmatpush1.msra.mxu1 %v6792_v12  ;;  %v7224_v5 = vld [vmem:[%s10698_s0 + $0x358] sm:$0xf] }
  0xb3   :  { %1259 = vmatprep.subr.mxu1 %v6808_v14  ;;  %1118 = vmatprep.subr.mxu0 %v6643_v6  ;;  %v7261_v14 = vld [vmem:[%s10698_s0 + $0x278] sm:$0xff] }
  0xb4   :  { %5439 = vmatmul.mubr.msk.f32.gmra.mxu0 %vm186_vm2, %v6502_v54  ;;  %5460 = vmatmul.mubr.msk.f32.gmra.mxu1 %vm186_vm2, %v6502_v54 }
  0xb5   :  { %1260 = vmatpush1.msra.mxu1 %v6824_v16  ;;  %1119 = vmatpush1.msra.mxu0 %v6655_v7 }
  0xb6   :  { %1261 = vmatprep.subr.mxu1 %v6839_v18  ;;  %1152 = vmatprep.mubr.f32.mxu0 %v10718_v26  ;;  %v7282_v18 = vld [vmem:[%s10698_s0 + $0x270] sm:$0xff] }
  0xb7   :  { %1262 = vmatpush1.msra.mxu1 %v6854_v20  ;;  %1295 = vmatprep.mubr.f32.mxu1 %v10718_v26 }
  0xb8   :  { %5469 = vmatmul.mubr.msk.f32.vlgmr.msra.gmra.mxu0 %vm186_vm2, %v6228_v25  ;;  %5490 = vmatmul.mubr.msk.f32.vlgmr.msra.gmra.mxu1 %vm186_vm2, %v6228_v25  ;;  %v6990_v25 = vld [vmem:[%s10698_s0 + $0x330] sm:$0xf] }
  0xb9   :  { %5503 = vmatprep.subr.msk.mxu0 %vm226_vm0, %v10709_v0  ;;  %1158 = vmatprep.mubr.f32.mxu0 %v10718_v26 }
  0xba   :  { %1301 = vmatprep.mubr.f32.mxu1 %v10718_v26  ;;  %5504 = vmatpush1.msk.msra.mxu0 %vm226_vm0, %v10709_v0 }
  0xbb   :  { %5505 = vmatprep.subr.msk.mxu0 %vm144_vm1, %v6977_v24  ;;  %5524 = vmatprep.subr.msk.mxu1 %vm226_vm0, %v10709_v0 }
  0xbc   :  { %5470 = vmatmul.mubr.msk.f32.gmra.mxu0 %vm186_vm2, %v6247_v28  ;;  %5491 = vmatmul.mubr.msk.f32.gmra.mxu1 %vm186_vm2, %v6247_v28  ;;  %v7018_v28 = vld [vmem:[%s10698_s0 + $0x250] sm:$0xff] }
  0xbd   :  { %1164 = vmatprep.mubr.f32.mxu0 %v10718_v26  ;;  %1307 = vmatprep.mubr.f32.mxu1 %v10718_v26 }
  0xbe   :  { %5506 = vmatpush1.msk.msra.mxu0 %vm144_vm1, %v6990_v25  ;;  %5525 = vmatpush1.msk.msra.mxu1 %vm226_vm0, %v10709_v0 }
  0xbf   :  { %1384 = vmatprep.subr.mxu0 %v7001_v27  ;;  %5526 = vmatprep.subr.msk.mxu1 %vm144_vm1, %v7006_v29 }
  0xc0   :  { %5471 = vmatmul.mubr.msk.f32.gmra.mxu0 %vm186_vm2, %v6280_v32  ;;  %5492 = vmatmul.mubr.msk.f32.gmra.mxu1 %vm186_vm2, %v6280_v32  ;;  %v7050_v32 = vld [vmem:[%s10698_s0 + $0x170] sm:$0xff] }
  0xc1   :  { %1170 = vmatprep.mubr.f32.mxu0 %v10718_v26  ;;  %1313 = vmatprep.mubr.f32.mxu1 %v10718_v26 }
  0xc2   :  { %1385 = vmatpush1.msra.mxu0 %v7018_v28  ;;  %5527 = vmatpush1.msk.msra.mxu1 %vm144_vm1, %v7025_v30 }
  0xc3   :  { %1386 = vmatprep.subr.mxu0 %v7034_v31  ;;  %1527 = vmatprep.subr.mxu1 %v7039_v33 }
  0xc4   :  { %5472 = vmatmul.mubr.msk.f32.gmra.mxu0 %vm186_vm2, %v6318_v37  ;;  %5493 = vmatmul.mubr.msk.f32.gmra.mxu1 %vm186_vm2, %v6318_v37  ;;  %v7080_v37 = vld [vmem:[%s10698_s0 + $0x90] sm:$0xff] }
  0xc5   :  { %1176 = vmatprep.mubr.f32.mxu0 %v10718_v26  ;;  %1319 = vmatprep.mubr.f32.mxu1 %v10718_v26 }
  0xc6   :  { %1387 = vmatpush1.msra.mxu0 %v7050_v32  ;;  %1528 = vmatpush1.msra.mxu1 %v7056_v34 }
  0xc7   :  { %1388 = vmatprep.subr.mxu0 %v7065_v35  ;;  %1529 = vmatprep.subr.mxu1 %v7070_v36 }
  0xc8   :  { %5473 = vmatmul.mubr.msk.f32.gmra.mxu0 %vm186_vm2, %v6354_v42  ;;  %5494 = vmatmul.mubr.msk.f32.gmra.mxu1 %vm186_vm2, %v6354_v42 }
  0xc9   :  { %1182 = vmatprep.mubr.f32.mxu0 %v10718_v26  ;;  %1325 = vmatprep.mubr.f32.mxu1 %v10718_v26 }
  0xca   :  { %1389 = vmatpush1.msra.mxu0 %v7080_v37  ;;  %1530 = vmatpush1.msra.mxu1 %v7086_v38 }
  0xcb   :  { %5507 = vmatprep.subr.msk.mxu0 %vm144_vm1, %v6990_v25  ;;  %1531 = vmatprep.subr.mxu1 %v7095_v39 }
  0xcc   :  { %5474 = vmatmul.mubr.msk.f32.gmra.mxu0 %vm186_vm2, %v6384_v46  ;;  %5495 = vmatmul.mubr.msk.f32.gmra.mxu1 %vm186_vm2, %v6384_v46 }
  0xcd   :  { %1188 = vmatprep.mubr.f32.mxu0 %v10718_v26  ;;  %1331 = vmatprep.mubr.f32.mxu1 %v10718_v26 }
  0xce   :  { %5508 = vmatpush1.msk.msra.mxu0 %vm144_vm1, %v6780_v11  ;;  %1532 = vmatpush1.msra.mxu1 %v7107_v40 }
  0xcf   :  { %1392 = vmatprep.subr.mxu0 %v7018_v28  ;;  %5528 = vmatprep.subr.msk.mxu1 %vm144_vm1, %v7025_v30 }
  0xd0   :  { %5475 = vmatmul.mubr.msk.f32.gmra.mxu0 %vm186_vm2, %v6405_v48  ;;  %5496 = vmatmul.mubr.msk.f32.gmra.mxu1 %vm186_vm2, %v6405_v48 }
  0xd1   :  { %1194 = vmatprep.mubr.f32.mxu0 %v10718_v26  ;;  %1337 = vmatprep.mubr.f32.mxu1 %v10718_v26 }
  0xd2   :  { %1393 = vmatpush1.msra.mxu0 %v6813_v15  ;;  %5529 = vmatpush1.msk.msra.mxu1 %vm144_vm1, %v6977_v24 }
  0xd3   :  { %1394 = vmatprep.subr.mxu0 %v7050_v32  ;;  %1535 = vmatprep.subr.mxu1 %v7056_v34 }
  0xd4   :  { %5476 = vmatmul.mubr.msk.f32.gmra.mxu0 %vm186_vm2, %v6422_v49  ;;  %5497 = vmatmul.mubr.msk.f32.gmra.mxu1 %vm186_vm2, %v6422_v49 }
  0xd5   :  { %1200 = vmatprep.mubr.f32.mxu0 %v10718_v26  ;;  %1343 = vmatprep.mubr.f32.mxu1 %v10718_v26 }
  0xd6   :  { %1395 = vmatpush1.msra.mxu0 %v6844_v19  ;;  %1536 = vmatpush1.msra.mxu1 %v7001_v27 }
  0xd7   :  { %1396 = vmatprep.subr.mxu0 %v7080_v37  ;;  %1537 = vmatprep.subr.mxu1 %v7086_v38 }
  0xd8   :  { %5477 = vmatmul.mubr.msk.f32.gmra.mxu0 %vm186_vm2, %v6438_v50  ;;  %5498 = vmatmul.mubr.msk.f32.gmra.mxu1 %vm186_vm2, %v6438_v50 }
  0xd9   :  { %1206 = vmatprep.mubr.f32.mxu0 %v10718_v26  ;;  %1349 = vmatprep.mubr.f32.mxu1 %v10718_v26 }
  0xda   :  { %1397 = vmatpush1.msra.mxu0 %v6869_v22  ;;  %1538 = vmatpush1.msra.mxu1 %v7034_v31 }
  0xdb   :  { %5509 = vmatprep.subr.msk.mxu0 %vm144_vm1, %v6780_v11  ;;  %1539 = vmatprep.subr.mxu1 %v7107_v40 }
  0xdc   :  { %v296_v41 = vpop.f32.mrf.mxu0  ;;  %v439_v42 = vpop.f32.mrf.mxu1  ;;  %5478 = vmatmul.mubr.msk.f32.gmra.mxu0 %vm186_vm2, %v6453_v51  ;;  %5499 = vmatmul.mubr.msk.f32.gmra.mxu1 %vm186_vm2, %v6453_v51 }
  0xdd   :  { %1212 = vmatprep.mubr.f32.mxu0 %v10718_v26  ;;  %1355 = vmatprep.mubr.f32.mxu1 %v10718_v26 }
  0xde   :  { %v298_v43 = vpop.f32.mrf.mxu0  ;;  %v441_v44 = vpop.f32.mrf.mxu1  ;;  %5510 = vmatpush1.msk.msra.mxu0 %vm144_vm1, %v6799_v13  ;;  %1540 = vmatpush1.msra.mxu1 %v7065_v35  ;;  %v7252_v13 = vld [vmem:[%s10699_s1 + $0x8] sm:$0xff] }
  0xdf   :  { %v7162_v45 = vmax.f32 %v296_v41, %v298_v43  ;;  %v7164_v46 = vmax.f32 %v439_v42, %v441_v44  ;;  %1400 = vmatprep.subr.mxu0 %v6813_v15  ;;  %5530 = vmatprep.subr.msk.mxu1 %vm144_vm1, %v6977_v24  ;;  %v7266_v15 = vld [vmem:[%s10698_s0 + $0x368] sm:$0xf]  ;;  %v7351_v41 = vld [vmem:[%s10698_s0 + $0xb8] sm:$0xff] }
  0xe0   :  { %v302_v47 = vpop.f32.mrf.mxu0  ;;  %v445_v48 = vpop.f32.mrf.mxu1  ;;  %5479 = vmatmul.mubr.msk.f32.gmra.mxu0 %vm186_vm2, %v6469_v52  ;;  %5500 = vmatmul.mubr.msk.f32.gmra.mxu1 %vm186_vm2, %v6469_v52  ;;  %10905 = vst [vmem:[#allocation12_spill] sm:$0xff] %v7266_v15  ;;  %v7312_v24 = vld [vmem:[%s10698_s0 + $0x288] sm:$0xff] }
  0xe1   :  { %10895 = vst [vmem:[#allocation2_spill] sm:$0xff] %v7162_v45  ;;  %10896 = vst [vmem:[#allocation3_spill] sm:$0xff] %v7164_v46  ;;  %1218 = vmatprep.mubr.f32.mxu0 %v10718_v26  ;;  %1361 = vmatprep.mubr.f32.mxu1 %v10718_v26  ;;  %v7356_v42 = vld [vmem:[%s10698_s0 + $0x1a8] sm:$0xff]  ;;  %v10916_v45 = vmov 0.0  }
  0xe2   :  { %v304_v49 = vpop.f32.mrf.mxu0  ;;  %v447_v50 = vpop.f32.mrf.mxu1  ;;  %1401 = vmatpush1.msra.mxu0 %v6830_v17  ;;  %5531 = vmatpush1.msk.msra.mxu1 %vm144_vm1, %v6990_v25  ;;  %10907 = vst [vmem:[#allocation14_spill] sm:$0xff] %v7312_v24  ;;  %10909 = vst [vmem:[#allocation16_spill] sm:$0xff] %v7356_v42 }
  0xe3   :  { %v7178_v51 = vmax.f32 %v302_v47, %v304_v49  ;;  %v7180_v55 = vmax.f32 %v445_v48, %v447_v50  ;;  %1402 = vmatprep.subr.mxu0 %v6844_v19  ;;  %1543 = vmatprep.subr.mxu1 %v7001_v27  ;;  %v7289_v19 = vld [vmem:[%s10698_s0 + $0x360] sm:$0xf]  ;;  %v7370_v47 = vld [vmem:[%s10698_s0 + $0xb0] sm:$0xff] }
  0xe4   :  { %v308_v52 = vpop.f32.mrf.mxu0  ;;  %v451_v56 = vpop.f32.mrf.mxu1  ;;  %5480 = vmatmul.mubr.msk.f32.gmra.mxu0 %vm186_vm2, %v6486_v53  ;;  %5501 = vmatmul.mubr.msk.f32.gmra.mxu1 %vm186_vm2, %v6486_v53  ;;  %10906 = vst [vmem:[#allocation13_spill] sm:$0xff] %v7289_v19  ;;  %v7376_v48 = vld [vmem:[%s10698_s0 + $0x1a0] sm:$0xff] }
  0xe5   :  { %10897 = vst [vmem:[#allocation4_spill] sm:$0xff] %v7178_v51  ;;  %10898 = vst [vmem:[#allocation5_spill] sm:$0xff] %v7180_v55  ;;  %1224 = vmatprep.mubr.f32.mxu0 %v10718_v26  ;;  %1367 = vmatprep.mubr.f32.mxu1 %v10718_v26 }
  0xe6   :  { %v310_v57 = vpop.f32.mrf.mxu0  ;;  %v453_v58 = vpop.f32.mrf.mxu1  ;;  %1403 = vmatpush1.msra.mxu0 %v6860_v21  ;;  %1544 = vmatpush1.msra.mxu1 %v7018_v28  ;;  %v7327_v28 = vld [vmem:[%s10698_s0 + $0x190] sm:$0xff]  ;;  %10910 = vst [vmem:[#allocation17_spill] sm:$0xff] %v7376_v48 }
  0xe7   :  { %v7192_v59 = vmax.f32 %v308_v52, %v310_v57  ;;  %v7194_v60 = vmax.f32 %v451_v56, %v453_v58  ;;  %1545 = vmatprep.subr.mxu1 %v7034_v31  ;;  %1404 = vmatprep.subr.mxu0 %v6869_v22  ;;  %v7298_v22 = vld [vmem:[%s10699_s1 + $0x10] sm:$0xff]  ;;  %v7333_v31 = vld [vmem:[%s10698_s0 + $0x280] sm:$0xff]  ;;  %v7394_v56 = vld [vmem:[%s10698_s0 + $0xc8] sm:$0xff] }
  0xe8   :  { %v314_v61 = vpop.f32.mrf.mxu0  ;;  %v457_v53 = vpop.f32.mrf.mxu1  ;;  %5481 = vmatmul.mubr.msk.f32.gmra.mxu0 %vm186_vm2, %v6502_v54  ;;  %5502 = vmatmul.mubr.msk.f32.gmra.mxu1 %vm186_vm2, %v6502_v54  ;;  %10908 = vst [vmem:[#allocation15_spill] sm:$0xff] %v7333_v31  ;;  %v7385_v52 = vld [vmem:[%s10699_s1 + $0x20] sm:$0xff]  ;;  %10911 = vst [vmem:[#allocation18_spill] sm:$0xff] %v7394_v56 }
  0xe9   :  { %10899 = vst [vmem:[#allocation6_spill] sm:$0xff] %v7192_v59  ;;  %10900 = vst [vmem:[#allocation7_spill] sm:$0xff] %v7194_v60  ;;  %1546 = vmatpush1.msra.mxu1 %v7050_v32  ;;  %1405 = vmatpush1.msra.mxu0 %v6881_v23  ;;  %v7307_v23 = vld [vmem:[%s10698_s0 + $0x198] sm:$0xff] }
  0xea   :  { %v316_v62 = vpop.f32.mrf.mxu0  ;;  %v459_v63 = vpop.f32.mrf.mxu1  ;;  %1547 = vmatprep.subr.mxu1 %v7065_v35  ;;  %1438 = vmatprep.mubr.f32.mxu0 %v10718_v26 }
  0xeb   :  { %v7206_v1 = vmax.f32 %v314_v61, %v316_v62  ;;  %v7208_v2 = vmax.f32 %v457_v53, %v459_v63  ;;  %1548 = vmatpush1.msra.mxu1 %v7080_v37  ;;  %1581 = vmatprep.mubr.f32.mxu1 %v10718_v26  ;;  %v7342_v37 = vld [vmem:[%s10699_s1 + $0x18] sm:$0xff]  ;;  %v7410_v61 = vld [vmem:[%s10698_s0 + $0xc0] sm:$0xff]  ;;  %v7419_v63 = vld [vmem:[%s10699_s1 + $0x28] sm:$0xff] }
  0xec   :  { %v320_v3 = vpop.f32.mrf.mxu0  ;;  %v463_v54 = vpop.f32.mrf.mxu1  ;;  %5511 = vmatmul.mubr.msk.f32.vlgmr.msra.gmra.mxu0 %vm186_vm2, %v7215_v4  ;;  %5532 = vmatmul.mubr.msk.f32.vlgmr.msra.gmra.mxu1 %vm186_vm2, %v7215_v4  ;;  %10912 = vst [vmem:[#allocation19_spill] sm:$0xff] %v7410_v61  ;;  %10913 = vst [vmem:[#allocation20_spill] sm:$0xff] %v7419_v63 }
  0xed   :  { %10901 = vst [vmem:[#allocation8_spill] sm:$0xff] %v7206_v1  ;;  %10902 = vst [vmem:[#allocation9_spill] sm:$0xff] %v7208_v2  ;;  %5545 = vmatprep.subr.msk.mxu0 %vm226_vm0, %v10709_v0  ;;  %1444 = vmatprep.mubr.f32.mxu0 %v10718_v26  ;;  %v7528_v2 = vld [vmem:[%s10699_s1 + $0x50] sm:$0xff] }
  0xee   :  { %v322_v6 = vpop.f32.mrf.mxu0  ;;  %v465_v7 = vpop.f32.mrf.mxu1  ;;  %1587 = vmatprep.mubr.f32.mxu1 %v10718_v26  ;;  %5546 = vmatpush1.msk.msra.mxu0 %vm226_vm0, %v10709_v0 }
  0xef   :  { %v7232_v8 = vmax.f32 %v320_v3, %v322_v6  ;;  %v7234_v9 = vmax.f32 %v463_v54, %v465_v7  ;;  %5547 = vmatprep.subr.msk.mxu0 %vm144_vm1, %v7224_v5  ;;  %5566 = vmatprep.subr.msk.mxu1 %vm226_vm0, %v10709_v0 }
  0xf0   :  { %v7245_v11 = vpop.f32.mrf.mxu0  ;;  %v7247_v12 = vpop.f32.mrf.mxu1  ;;  %5512 = vmatmul.mubr.msk.f32.gmra.mxu0 %vm186_vm2, %v7252_v13  ;;  %5533 = vmatmul.mubr.msk.f32.gmra.mxu1 %vm186_vm2, %v7252_v13 }
  0xf1   :  { %10903 = vst [vmem:[#allocation10_spill] sm:$0xff] %v7232_v8  ;;  %10904 = vst [vmem:[#allocation11_spill] sm:$0xff] %v7234_v9  ;;  %1450 = vmatprep.mubr.f32.mxu0 %v10718_v26  ;;  %1593 = vmatprep.mubr.f32.mxu1 %v10718_v26 }
  0xf2   :  { %v7270_v16 = vpop.f32.mrf.mxu0  ;;  %v7272_v17 = vpop.f32.mrf.mxu1  ;;  %5548 = vmatpush1.msk.msra.mxu0 %vm144_vm1, %v7241_v10  ;;  %5567 = vmatpush1.msk.msra.mxu1 %vm226_vm0, %v10709_v0  ;;  %v7444_v0 = vld [vmem:[%s10699_s1 + $0x30] sm:$0xff] }
  0xf3   :  { %1670 = vmatprep.subr.mxu0 %v7261_v14  ;;  %5568 = vmatprep.subr.msk.mxu1 %vm144_vm1, %v7266_v15  ;;  %10914 = vst [vmem:[#allocation21_spill] sm:$0xff] %v7444_v0 }
  0xf4   :  { %v7291_v20 = vpop.f32.mrf.mxu0  ;;  %v7293_v21 = vpop.f32.mrf.mxu1  ;;  %5513 = vmatmul.mubr.msk.f32.gmra.mxu0 %vm186_vm2, %v7298_v22  ;;  %5534 = vmatmul.mubr.msk.f32.gmra.mxu1 %vm186_vm2, %v7298_v22 }
  0xf5   :  { %1456 = vmatprep.mubr.f32.mxu0 %v10718_v26  ;;  %1599 = vmatprep.mubr.f32.mxu1 %v10718_v26 }
  0xf6   :  { %v7316_v25 = vpop.f32.mrf.mxu0  ;;  %v7318_v27 = vpop.f32.mrf.mxu1  ;;  %1671 = vmatpush1.msra.mxu0 %v7282_v18  ;;  %5569 = vmatpush1.msk.msra.mxu1 %vm144_vm1, %v7289_v19 }
  0xf7   :  { %1672 = vmatprep.subr.mxu0 %v7307_v23  ;;  %1813 = vmatprep.subr.mxu1 %v7312_v24 }
  0xf8   :  { %v7335_v32 = vpop.f32.mrf.mxu0  ;;  %v7337_v35 = vpop.f32.mrf.mxu1  ;;  %5514 = vmatmul.mubr.msk.f32.gmra.mxu0 %vm186_vm2, %v7342_v37  ;;  %5535 = vmatmul.mubr.msk.f32.gmra.mxu1 %vm186_vm2, %v7342_v37 }
  0xf9   :  { %1462 = vmatprep.mubr.f32.mxu0 %v10718_v26  ;;  %1605 = vmatprep.mubr.f32.mxu1 %v10718_v26 }
  0xfa   :  { %v7360_v43 = vpop.f32.mrf.mxu0  ;;  %v7362_v44 = vpop.f32.mrf.mxu1  ;;  %1673 = vmatpush1.msra.mxu0 %v7327_v28  ;;  %1814 = vmatpush1.msra.mxu1 %v7333_v31 }
  0xfb   :  { %1674 = vmatprep.subr.mxu0 %v7351_v41  ;;  %1815 = vmatprep.subr.mxu1 %v7356_v42 }
  0xfc   :  { %v7378_v49 = vpop.f32.mrf.mxu0  ;;  %v7380_v50 = vpop.f32.mrf.mxu1  ;;  %5515 = vmatmul.mubr.msk.f32.gmra.mxu0 %vm186_vm2, %v7385_v52  ;;  %5536 = vmatmul.mubr.msk.f32.gmra.mxu1 %vm186_vm2, %v7385_v52 }
  0xfd   :  { %1468 = vmatprep.mubr.f32.mxu0 %v10718_v26  ;;  %1611 = vmatprep.mubr.f32.mxu1 %v10718_v26 }
  0xfe   :  { %v7398_v57 = vpop.f32.mrf.mxu0  ;;  %v7400_v58 = vpop.f32.mrf.mxu1  ;;  %1675 = vmatpush1.msra.mxu0 %v7370_v47  ;;  %1816 = vmatpush1.msra.mxu1 %v7376_v48 }
  0xff   :  { %5549 = vmatprep.subr.msk.mxu0 %vm144_vm1, %v7241_v10  ;;  %1817 = vmatprep.subr.mxu1 %v7394_v56 }
 0x100   :  { %v7412_v53 = vpop.f32.mrf.mxu0  ;;  %v7414_v62 = vpop.f32.mrf.mxu1  ;;  %5516 = vmatmul.mubr.msk.f32.gmra.mxu0 %vm186_vm2, %v7419_v63  ;;  %5537 = vmatmul.mubr.msk.f32.gmra.mxu1 %vm186_vm2, %v7419_v63 }
 0x101   :  { %1474 = vmatprep.mubr.f32.mxu0 %v10718_v26  ;;  %1617 = vmatprep.mubr.f32.mxu1 %v10718_v26 }
 0x102   :  { %v7427_v3 = vpop.f32.mrf.mxu0  ;;  %v7429_v54 = vpop.f32.mrf.mxu1  ;;  %5550 = vmatpush1.msk.msra.mxu0 %vm144_vm1, %v7006_v29  ;;  %1818 = vmatpush1.msra.mxu1 %v7410_v61 }
 0x103   :  { %1678 = vmatprep.subr.mxu0 %v7282_v18  ;;  %5570 = vmatprep.subr.msk.mxu1 %vm144_vm1, %v7289_v19 }
 0x104   :  { %v7437_v6 = vpop.f32.mrf.mxu0  ;;  %v7439_v7 = vpop.f32.mrf.mxu1  ;;  %5517 = vmatmul.mubr.msk.f32.gmra.mxu0 %vm186_vm2, %v7444_v0  ;;  %5538 = vmatmul.mubr.msk.f32.gmra.mxu1 %vm186_vm2, %v7444_v0 }
 0x105   :  { %1480 = vmatprep.mubr.f32.mxu0 %v10718_v26  ;;  %1623 = vmatprep.mubr.f32.mxu1 %v10718_v26  ;;  %v7468_v26 = vld [vmem:[%s10699_s1 + $0x38] sm:$0xff] }
 0x106   :  { %v7452_v19 = vpop.f32.mrf.mxu0  ;;  %v7454_v56 = vpop.f32.mrf.mxu1  ;;  %1679 = vmatpush1.msra.mxu0 %v7039_v33  ;;  %5571 = vmatpush1.msk.msra.mxu1 %vm144_vm1, %v7224_v5  ;;  %10915 = vst [vmem:[#allocation22_spill] sm:$0xff] %v7468_v26 }
 0x107   :  { %1680 = vmatprep.subr.mxu0 %v7327_v28  ;;  %1821 = vmatprep.subr.mxu1 %v7333_v31 }
 0x108   :  { %v7461_v42 = vpop.f32.mrf.mxu0  ;;  %v7463_v24 = vpop.f32.mrf.mxu1  ;;  %5518 = vmatmul.mubr.msk.f32.gmra.mxu0 %vm186_vm2, %v7468_v26  ;;  %5539 = vmatmul.mubr.msk.f32.gmra.mxu1 %vm186_vm2, %v7468_v26  ;;  %v7489_v26 = vld [vmem:[%s10699_s1 + $0x40] sm:$0xff] }
 0x109   :  { %1486 = vmatprep.mubr.f32.mxu0 %v10916_v45  ;;  %1629 = vmatprep.mubr.f32.mxu1 %v10916_v45  ;;  %10917 = vst [vmem:[#allocation23_spill] sm:$0xff] %v7489_v26 }
 0x10a   :  { %v7476_v31 = vpop.f32.mrf.mxu0  ;;  %v7478_v0 = vpop.f32.mrf.mxu1  ;;  %1681 = vmatpush1.msra.mxu0 %v7070_v36  ;;  %1822 = vmatpush1.msra.mxu1 %v7261_v14 }
 0x10b   :  { %1682 = vmatprep.subr.mxu0 %v7370_v47  ;;  %1823 = vmatprep.subr.mxu1 %v7376_v48 }
 0x10c   :  { %v7484_v46 = vpop.f32.mrf.mxu0  ;;  %v511_v15 = vpop.f32.mrf.mxu1  ;;  %5519 = vmatmul.mubr.msk.f32.gmra.mxu0 %vm186_vm2, %v7489_v26  ;;  %5540 = vmatmul.mubr.msk.f32.gmra.mxu1 %vm186_vm2, %v7489_v26  ;;  %v7507_v26 = vld [vmem:[%s10699_s1 + $0x48] sm:$0xff] }
 0x10d   :  { %1492 = vmatprep.mubr.f32.mxu0 %v10916_v45  ;;  %1635 = vmatprep.mubr.f32.mxu1 %v10916_v45  ;;  %10918 = vst [vmem:[#allocation24_spill] sm:$0xff] %v7507_v26 }
 0x10e   :  { %v7497_v51 = vpop.f32.mrf.mxu0  ;;  %v513_v48 = vpop.f32.mrf.mxu1  ;;  %1683 = vmatpush1.msra.mxu0 %v7095_v39  ;;  %1824 = vmatpush1.msra.mxu1 %v7307_v23 }
 0x10f   :  { %5551 = vmatprep.subr.msk.mxu0 %vm144_vm1, %v7006_v29  ;;  %1825 = vmatprep.subr.mxu1 %v7410_v61 }
 0x110   :  { %v582_v55 = vpop.f32.mrf.mxu0  ;;  %v725_v59 = vpop.f32.mrf.mxu1  ;;  %5520 = vmatmul.mubr.msk.f32.gmra.mxu0 %vm186_vm2, %v7507_v26  ;;  %5541 = vmatmul.mubr.msk.f32.gmra.mxu1 %vm186_vm2, %v7507_v26 }
 0x111   :  { %1498 = vmatprep.mubr.f32.mxu0 %v10916_v45  ;;  %1641 = vmatprep.mubr.f32.mxu1 %v10916_v45 }
 0x112   :  { %v584_v29 = vpop.f32.mrf.mxu0  ;;  %v727_v63 = vpop.f32.mrf.mxu1  ;;  %5552 = vmatpush1.msk.msra.mxu0 %vm144_vm1, %v7025_v30  ;;  %1826 = vmatpush1.msra.mxu1 %v7351_v41 }
 0x113   :  { %v7518_v61 = vmax.f32 %v582_v55, %v584_v29  ;;  %v7520_v60 = vmax.f32 %v725_v59, %v727_v63  ;;  %1686 = vmatprep.subr.mxu0 %v7039_v33  ;;  %5572 = vmatprep.subr.msk.mxu1 %vm144_vm1, %v7224_v5  ;;  %v7548_v29 = vld [vmem:[%s10699_s1 + $0x58] sm:$0xff] }
 0x114   :  { %v588_v26 = vpop.f32.mrf.mxu0  ;;  %v731_v1 = vpop.f32.mrf.mxu1  ;;  %5521 = vmatmul.mubr.msk.f32.gmra.mxu0 %vm186_vm2, %v7528_v2  ;;  %5542 = vmatmul.mubr.msk.f32.gmra.mxu1 %vm186_vm2, %v7528_v2 }
 0x115   :  { %10919 = vst [vmem:[#allocation25_spill] sm:$0xff] %v7518_v61  ;;  %10920 = vst [vmem:[#allocation26_spill] sm:$0xff] %v7520_v60  ;;  %1504 = vmatprep.mubr.f32.mxu0 %v10916_v45  ;;  %1647 = vmatprep.mubr.f32.mxu1 %v10916_v45 }
 0x116   :  { %v590_v30 = vpop.f32.mrf.mxu0  ;;  %v733_v33 = vpop.f32.mrf.mxu1  ;;  %1687 = vmatpush1.msra.mxu0 %v7056_v34  ;;  %5573 = vmatpush1.msk.msra.mxu1 %vm144_vm1, %v7241_v10  ;;  %v7564_v10 = vmax.f32 %v511_v15, %v513_v48  ;;  %v7581_v15 = vmax.f32 %v7463_v24, %v7478_v0  ;;  %v7598_v0 = vmax.f32 %v7439_v7, %v7454_v56  ;;  %v10931_v24 = vmov 1.0  }
 0x117   :  { %v7539_v55 = vmax.f32 %v588_v26, %v590_v30  ;;  %v7541_v59 = vmax.f32 %v731_v1, %v733_v33  ;;  %1829 = vmatprep.subr.mxu1 %v7261_v14  ;;  %1688 = vmatprep.subr.mxu0 %v7070_v36  ;;  %v7569_v30 = vld [vmem:[%s10699_s1 + $0x60] sm:$0xff]  ;;  %v143_v33 = vld [vmem:[%s10698_s0 + $0x378] sm:$0xf] }
 0x118   :  { %v594_v5 = vpop.f32.mrf.mxu0  ;;  %v737_v63 = vpop.f32.mrf.mxu1  ;;  %5522 = vmatmul.mubr.msk.f32.gmra.mxu0 %vm186_vm2, %v7548_v29  ;;  %5543 = vmatmul.mubr.msk.f32.gmra.mxu1 %vm186_vm2, %v7548_v29  ;;  %10925 = vst [vmem:[#allocation31_spill] sm:$0xff] %v7564_v10  ;;  %10926 = vst [vmem:[#allocation32_spill] sm:$0xff] %v7581_v15 }
 0x119   :  { %10921 = vst [vmem:[#allocation27_spill] sm:$0xff] %v7539_v55  ;;  %10922 = vst [vmem:[#allocation28_spill] sm:$0xff] %v7541_v59  ;;  %1830 = vmatpush1.msra.mxu1 %v7282_v18  ;;  %1510 = vmatprep.mubr.f32.mxu0 %v10916_v45 }
 0x11a   :  { %v596_v26 = vpop.f32.mrf.mxu0  ;;  %v739_v34 = vpop.f32.mrf.mxu1  ;;  %1653 = vmatprep.mubr.f32.mxu1 %v10916_v45  ;;  %1689 = vmatpush1.msra.mxu0 %v7086_v38  ;;  %10930 = vst [vmem:[#allocation36_spill] sm:$0xff] %v7598_v0 }
 0x11b   :  { %v7558_v36 = vmax.f32 %v594_v5, %v596_v26  ;;  %v7560_v1 = vmax.f32 %v737_v63, %v739_v34  ;;  %1831 = vmatprep.subr.mxu1 %v7307_v23  ;;  %1690 = vmatprep.subr.mxu0 %v7095_v39  ;;  %v7628_v63 = vmax.f32 %v7437_v6, %v7452_v19  ;;  %v7643_v19 = vld [vmem:[%s10698_s0 + $0x370] sm:$0xf] }
 0x11c   :  { %v600_v14 = vpop.f32.mrf.mxu0  ;;  %v743_v18 = vpop.f32.mrf.mxu1  ;;  %5523 = vmatmul.mubr.msk.f32.gmra.mxu0 %vm186_vm2, %v7569_v30  ;;  %5544 = vmatmul.mubr.msk.f32.gmra.mxu1 %vm186_vm2, %v7569_v30  ;;  %v7647_v6 = vmax.f32 %v7412_v53, %v7427_v3  ;;  %v115_v53 = vld [vmem:[%s10698_s0 + $0x298] sm:$0xff]  ;;  %v7666_v3 = vmax.f32 %v7337_v35, %v7362_v44  ;;  %v7687_v35 = vld [vmem:[%s10698_s0 + $0x290] sm:$0xff]  ;;  %v7691_v44 = vmax.f32 %v7335_v32, %v7360_v43 }
 0x11d   :  { %10923 = vst [vmem:[#allocation29_spill] sm:$0xff] %v7558_v36  ;;  %10924 = vst [vmem:[#allocation30_spill] sm:$0xff] %v7560_v1  ;;  %1832 = vmatpush1.msra.mxu1 %v7327_v28  ;;  %1691 = vmatpush1.msra.mxu0 %v7107_v40  ;;  %v7591_v40 = vmax.f32 %v7484_v46, %v7497_v51  ;;  %v7606_v46 = vmax.f32 %v7461_v42, %v7476_v31  ;;  %v87_v32 = vld [vmem:[%s10698_s0 + $0x1b8] sm:$0xff] }
 0x11e   :  { %1833 = vmatprep.subr.mxu1 %v7351_v41  ;;  %v602_v38 = vpop.f32.mrf.mxu0  ;;  %v745_v39 = vpop.f32.mrf.mxu1  ;;  %1724 = vmatprep.mubr.f32.mxu0 %v10916_v45  ;;  %v7621_v31 = vmax.f32 %v7414_v62, %v7429_v54  ;;  %10936 = vst [vmem:[#allocation41_spill] sm:$0xff] %v7628_v63  ;;  %v7635_v62 = vmax.f32 %v7380_v50, %v7400_v58  ;;  %10938 = vst [vmem:[#allocation43_spill] sm:$0xff] %v7647_v6 }
 0x11f   :  { %v7583_v23 = vmax.f32 %v600_v14, %v602_v38  ;;  %v7585_v48 = vmax.f32 %v743_v18, %v745_v39  ;;  %1834 = vmatpush1.msra.mxu1 %v7370_v47  ;;  %1867 = vmatprep.mubr.f32.mxu1 %v10916_v45  ;;  %10929 = vst [vmem:[#allocation35_spill] sm:$0xff] %v7591_v40  ;;  %10932 = vst [vmem:[#allocation37_spill] sm:$0xff] %v7606_v46 }
 0x120   :  { %2300 = vmatprep.subr.mxu1 %v7564_v10  ;;  %v606_v28 = vpop.f32.mrf.mxu0  ;;  %v749_v41 = vpop.f32.mrf.mxu1  ;;  %5553 = vmatmul.mubr.msk.f32.vlgmr.msra.gmra.mxu0 %vm186_vm2, %v7215_v4  ;;  %10935 = vst [vmem:[#allocation40_spill] sm:$0xff] %v7621_v31  ;;  %10937 = vst [vmem:[#allocation42_spill] sm:$0xff] %v7635_v62  ;;  %v7673_v18 = vmax.f32 %v7378_v49, %v7398_v57  ;;  %v10967_v10 = vld [vmem:[#allocation24_spill] sm:$0xff] }
 0x121   :  { %10927 = vst [vmem:[#allocation33_spill] sm:$0xff] %v7583_v23  ;;  %10928 = vst [vmem:[#allocation34_spill] sm:$0xff] %v7585_v48  ;;  %5574 = vmatmul.mubr.msk.f32.vlgmr.msra.gmra.mxu1 %vm186_vm2, %v7215_v4  ;;  %5587 = vmatprep.subr.msk.mxu0 %vm226_vm0, %v10931_v24 }
 0x122   :  { %2301 = vmatpush1.msra.mxu1 %v7591_v40  ;;  %v608_v51 = vpop.f32.mrf.mxu0  ;;  %v751_v47 = vpop.f32.mrf.mxu1  ;;  %1730 = vmatprep.mubr.f32.mxu0 %v10916_v45  ;;  %10941 = vst [vmem:[#allocation46_spill] sm:$0xff] %v7666_v3  ;;  %10942 = vst [vmem:[#allocation47_spill] sm:$0xff] %v7673_v18  ;;  %v10966_v40 = vld [vmem:[#allocation18_spill] sm:$0xff] }
 0x123   :  { %2302 = vmatprep.subr.mxu1 %v7581_v15  ;;  %v7611_v56 = vmax.f32 %v606_v28, %v608_v51  ;;  %v7613_v7 = vmax.f32 %v749_v41, %v751_v47  ;;  %1873 = vmatprep.mubr.f32.mxu1 %v10916_v45  ;;  %10943 = vst [vmem:[#allocation48_spill] sm:$0xff] %v7691_v44  ;;  %v86_v51 = vld [vmem:[%s10698_s0 + $0x1b0] sm:$0xff] }
 0x124   :  { %2303 = vmatpush1.msra.mxu1 %v7606_v46  ;;  %5588 = vmatpush1.msk.msra.mxu0 %vm226_vm0, %v10931_v24  ;;  %v612_v42 = vpop.f32.mrf.mxu0  ;;  %v755_v5 = vpop.f32.mrf.mxu1  ;;  %v7701_v28 = vmax.f32 %v7293_v21, %v7318_v27  ;;  %v7716_v21 = vmax.f32 %v7291_v20, %v7316_v25  ;;  %v7723_v27 = vmax.f32 %v7247_v12, %v7272_v17  ;;  %v10950_v24 = vld [vmem:[#allocation7_spill] sm:$0xff] }
 0x125   :  { %10933 = vst [vmem:[#allocation38_spill] sm:$0xff] %v7611_v56  ;;  %10934 = vst [vmem:[#allocation39_spill] sm:$0xff] %v7613_v7  ;;  %2304 = vmatprep.subr.mxu1 %v7598_v0  ;;  %5554 = vmatmul.mubr.msk.f32.gmra.mxu0 %vm186_vm2, %v7252_v13  ;;  %v7736_v25 = vmax.f32 %v7245_v11, %v7270_v16 }
 0x126   :  { %5575 = vmatmul.mubr.msk.f32.gmra.mxu1 %vm186_vm2, %v7252_v13  ;;  %v614_v54 = vpop.f32.mrf.mxu0  ;;  %v757_v26 = vpop.f32.mrf.mxu1  ;;  %5589 = vmatprep.subr.msk.mxu0 %vm144_vm1, %v143_v33  ;;  %10944 = vst [vmem:[#allocation49_spill] sm:$0xff] %v7701_v28  ;;  %10945 = vst [vmem:[#allocation50_spill] sm:$0xff] %v7716_v21  ;;  %v59_v33 = vld [vmem:[%s10698_s0 + $0xd8] sm:$0xff] }
 0x127   :  { %2305 = vmatpush1.msra.mxu1 %v7628_v63  ;;  %v7650_v50 = vmax.f32 %v612_v42, %v614_v54  ;;  %v7652_v58 = vmax.f32 %v755_v5, %v757_v26  ;;  %1736 = vmatprep.mubr.f32.mxu0 %v10916_v45  ;;  %10946 = vst [vmem:[#allocation51_spill] sm:$0xff] %v7723_v27  ;;  %10947 = vst [vmem:[#allocation52_spill] sm:$0xff] %v7736_v25  ;;  %v58_v42 = vld [vmem:[%s10698_s0 + $0xd0] sm:$0xff]  ;;  %v10948_v26 = vld [vmem:[#allocation9_spill] sm:$0xff] }
 0x128   :  { %2306 = vmatprep.subr.mxu1 %v7621_v31  ;;  %1879 = vmatprep.mubr.f32.mxu1 %v10916_v45  ;;  %v7657_v34 = vpop.f32.mrf.mxu0  ;;  %v7659_v14 = vpop.f32.mrf.mxu1 }
 0x129   :  { %10939 = vst [vmem:[#allocation44_spill] sm:$0xff] %v7650_v50  ;;  %10940 = vst [vmem:[#allocation45_spill] sm:$0xff] %v7652_v58  ;;  %2307 = vmatpush1.msra.mxu1 %v7647_v6  ;;  %5590 = vmatpush1.msk.msra.mxu0 %vm144_vm1, %v7643_v19 }
 0x12a   :  { %2308 = vmatprep.subr.mxu1 %v7635_v62  ;;  %5555 = vmatmul.mubr.msk.f32.gmra.mxu0 %vm186_vm2, %v7298_v22  ;;  %v7678_v38 = vpop.f32.mrf.mxu0  ;;  %v7680_v39 = vpop.f32.mrf.mxu1  ;;  %v10960_v62 = vld [vmem:[#allocation22_spill] sm:$0xff] }
 0x12b   :  { %5576 = vmatmul.mubr.msk.f32.gmra.mxu1 %vm186_vm2, %v7298_v22  ;;  %1956 = vmatprep.subr.mxu0 %v115_v53  ;;  %v10949_v53 = vld [vmem:[#allocation8_spill] sm:$0xff] }
 0x12c   :  { %2309 = vmatpush1.msra.mxu1 %v7673_v18  ;;  %1742 = vmatprep.mubr.f32.mxu0 %v10916_v45  ;;  %v7695_v49 = vpop.f32.mrf.mxu0  ;;  %v7697_v57 = vpop.f32.mrf.mxu1 }
 0x12d   :  { %2310 = vmatprep.subr.mxu1 %v7666_v3  ;;  %1885 = vmatprep.mubr.f32.mxu1 %v10916_v45 }
 0x12e   :  { %2311 = vmatpush1.msra.mxu1 %v7691_v44  ;;  %1957 = vmatpush1.msra.mxu0 %v7687_v35  ;;  %v7710_v43 = vpop.f32.mrf.mxu0  ;;  %v7712_v41 = vpop.f32.mrf.mxu1  ;;  %v10957_v44 = vld [vmem:[#allocation21_spill] sm:$0xff] }
 0x12f   :  { %2312 = vmatprep.subr.mxu1 %v7701_v28  ;;  %5556 = vmatmul.mubr.msk.f32.gmra.mxu0 %vm186_vm2, %v7342_v37  ;;  %v10955_v28 = vld [vmem:[#allocation12_spill] sm:$0xff] }
 0x130   :  { %5577 = vmatmul.mubr.msk.f32.gmra.mxu1 %vm186_vm2, %v7342_v37  ;;  %1958 = vmatprep.subr.mxu0 %v87_v32  ;;  %v7730_v47 = vpop.f32.mrf.mxu0  ;;  %v7732_v20 = vpop.f32.mrf.mxu1 }
 0x131   :  { %2313 = vmatpush1.msra.mxu1 %v7716_v21  ;;  %1748 = vmatprep.mubr.f32.mxu0 %v10916_v45  ;;  %v10954_v21 = vld [vmem:[#allocation4_spill] sm:$0xff] }
 0x132   :  { %2314 = vmatprep.subr.mxu1 %v7723_v27  ;;  %1891 = vmatprep.mubr.f32.mxu1 %v10916_v45  ;;  %v7742_v12 = vpop.f32.mrf.mxu0  ;;  %v7744_v17 = vpop.f32.mrf.mxu1 }
 0x133   :  { %2315 = vmatpush1.msra.mxu1 %v7736_v25  ;;  %1959 = vmatpush1.msra.mxu0 %v86_v51  ;;  %v10953_v25 = vld [vmem:[#allocation5_spill] sm:$0xff] }
 0x134   :  { %2316 = vmatprep.subr.mxu1 %v7234_v9  ;;  %5557 = vmatmul.mubr.msk.f32.gmra.mxu0 %vm186_vm2, %v7385_v52  ;;  %v7753_v11 = vpop.f32.mrf.mxu0  ;;  %v7755_v16 = vpop.f32.mrf.mxu1 }
 0x135   :  { %5578 = vmatmul.mubr.msk.f32.gmra.mxu1 %vm186_vm2, %v7385_v52  ;;  %1960 = vmatprep.subr.mxu0 %v59_v33 }
 0x136   :  { %2317 = vmatpush1.msra.mxu1 %v7232_v8  ;;  %1754 = vmatprep.mubr.f32.mxu0 %v10916_v45  ;;  %v7764_v5 = vpop.f32.mrf.mxu0  ;;  %v7766_v54 = vpop.f32.mrf.mxu1  ;;  %v10951_v8 = vld [vmem:[#allocation20_spill] sm:$0xff] }
 0x137   :  { %2318 = vmatprep.subr.mxu1 %v10948_v26  ;;  %1897 = vmatprep.mubr.f32.mxu1 %v10916_v45 }
 0x138   :  { %2319 = vmatpush1.msra.mxu1 %v10949_v53  ;;  %1961 = vmatpush1.msra.mxu0 %v58_v42  ;;  %v7771_v32 = vpop.f32.mrf.mxu0  ;;  %v7773_v33 = vpop.f32.mrf.mxu1  ;;  %v10952_v53 = vld [vmem:[#allocation6_spill] sm:$0xff] }
 0x139   :  { %2320 = vmatprep.subr.mxu1 %v10950_v24  ;;  %5558 = vmatmul.mubr.msk.f32.gmra.mxu0 %vm186_vm2, %v10951_v8 }
 0x13a   :  { %5579 = vmatmul.mubr.msk.f32.gmra.mxu1 %vm186_vm2, %v10951_v8  ;;  %5591 = vmatprep.subr.msk.mxu0 %vm144_vm1, %v7643_v19  ;;  %v7782_v26 = vpop.f32.mrf.mxu0  ;;  %v7784_v9 = vpop.f32.mrf.mxu1  ;;  %v10956_v19 = vld [vmem:[#allocation3_spill] sm:$0xff] }
 0x13b   :  { %2321 = vmatpush1.msra.mxu1 %v10952_v53  ;;  %1760 = vmatprep.mubr.f32.mxu0 %v10916_v45 }
 0x13c   :  { %2322 = vmatprep.subr.mxu1 %v10953_v25  ;;  %1903 = vmatprep.mubr.f32.mxu1 %v10916_v45  ;;  %v7790_v24 = vpop.f32.mrf.mxu0  ;;  %v7792_v27 = vpop.f32.mrf.mxu1  ;;  %v10958_v25 = vld [vmem:[#allocation2_spill] sm:$0xff] }
 0x13d   :  { %2323 = vmatpush1.msra.mxu1 %v10954_v21  ;;  %5592 = vmatpush1.msk.msra.mxu0 %vm144_vm1, %v10955_v28 }
 0x13e   :  { %2324 = vmatprep.subr.mxu1 %v10956_v19  ;;  %5559 = vmatmul.mubr.msk.f32.gmra.mxu0 %vm186_vm2, %v10957_v44  ;;  %v7800_v53 = vpop.f32.mrf.mxu0  ;;  %v7802_v3 = vpop.f32.mrf.mxu1  ;;  %v10959_v19 = vld [vmem:[#allocation14_spill] sm:$0xff] }
 0x13f   :  { %5580 = vmatmul.mubr.msk.f32.gmra.mxu1 %vm186_vm2, %v10957_v44  ;;  %1964 = vmatprep.subr.mxu0 %v7687_v35 }
 0x140   :  { %2325 = vmatpush1.msra.mxu1 %v10958_v25  ;;  %1766 = vmatprep.mubr.f32.mxu0 %v10916_v45  ;;  %v7809_v21 = vpop.f32.mrf.mxu0  ;;  %v797_v18 = vpop.f32.mrf.mxu1  ;;  %v10962_v25 = vld [vmem:[#allocation16_spill] sm:$0xff] }
 0x141   :  { %1909 = vmatprep.mubr.f32.mxu1 %v10916_v45  ;;  %1965 = vmatpush1.msra.mxu0 %v10959_v19 }
 0x142   :  { %5560 = vmatmul.mubr.msk.f32.gmra.mxu0 %vm186_vm2, %v10960_v62  ;;  %1966 = vmatprep.subr.mxu0 %v86_v51  ;;  %v7815_v6 = vpop.f32.mrf.mxu0  ;;  %v799_v31 = vpop.f32.mrf.mxu1  ;;  %v10963_v51 = vld [vmem:[#allocation23_spill] sm:$0xff] }
 0x143   :  { %5581 = vmatmul.mubr.msk.f32.gmra.mxu1 %vm186_vm2, %v10960_v62  ;;  %1772 = vmatprep.mubr.f32.mxu0 %v10916_v45  ;;  %v7820_v35 = vmax.f32 %v797_v18, %v799_v31 }
 0x144   :  { %1915 = vmatprep.mubr.f32.mxu1 %v10916_v45  ;;  %1967 = vmatpush1.msra.mxu0 %v10962_v25  ;;  %v868_v63 = vpop.f32.mrf.mxu0  ;;  %v1011_v0 = vpop.f32.mrf.mxu1 }
 0x145   :  { %10961 = vst [vmem:[#allocation20_spill] sm:$0xff] %v7820_v35  ;;  %1968 = vmatprep.subr.mxu0 %v58_v42  ;;  %2407 = vmatprep.subr.mxu1 %v7820_v35 }
 0x146   :  { %5561 = vmatmul.mubr.msk.f32.gmra.mxu0 %vm186_vm2, %v10963_v51  ;;  %v870_v46 = vpop.f32.mrf.mxu0  ;;  %v1013_v15 = vpop.f32.mrf.mxu1 }
 0x147   :  { %5582 = vmatmul.mubr.msk.f32.gmra.mxu1 %vm186_vm2, %v10963_v51  ;;  %1778 = vmatprep.mubr.f32.mxu0 %v10916_v45  ;;  %v7830_v31 = vmax.f32 %v868_v63, %v870_v46  ;;  %v7832_v18 = vmax.f32 %v1011_v0, %v1013_v15  ;;  %v10970_v46 = vld [vmem:[#allocation13_spill] sm:$0xff] }
 0x148   :  { %1921 = vmatprep.mubr.f32.mxu1 %v10916_v45  ;;  %1969 = vmatpush1.msra.mxu0 %v10966_v40  ;;  %v874_v42 = vpop.f32.mrf.mxu0  ;;  %v1017_v35 = vpop.f32.mrf.mxu1 }
 0x149   :  { %10964 = vst [vmem:[#allocation12_spill] sm:$0xff] %v7830_v31  ;;  %10965 = vst [vmem:[#allocation21_spill] sm:$0xff] %v7832_v18  ;;  %5593 = vmatprep.subr.msk.mxu0 %vm144_vm1, %v10955_v28 }
 0x14a   :  { %5562 = vmatmul.mubr.msk.f32.gmra.mxu0 %vm186_vm2, %v10967_v10  ;;  %v876_v62 = vpop.f32.mrf.mxu0  ;;  %v1019_v51 = vpop.f32.mrf.mxu1 }
 0x14b   :  { %5583 = vmatmul.mubr.msk.f32.gmra.mxu1 %vm186_vm2, %v10967_v10  ;;  %1784 = vmatprep.mubr.f32.mxu0 %v10916_v45  ;;  %v7843_v15 = vmax.f32 %v874_v42, %v876_v62  ;;  %v7845_v0 = vmax.f32 %v1017_v35, %v1019_v51  ;;  %v10975_v35 = vld [vmem:[#allocation15_spill] sm:$0xff] }
 0x14c   :  { %1927 = vmatprep.mubr.f32.mxu1 %v10916_v45  ;;  %5594 = vmatpush1.msk.msra.mxu0 %vm144_vm1, %v10970_v46  ;;  %v7850_v63 = vpop.f32.mrf.mxu0  ;;  %v7852_v28 = vpop.f32.mrf.mxu1 }
 0x14d   :  { %10968 = vst [vmem:[#allocation14_spill] sm:$0xff] %v7843_v15  ;;  %10969 = vst [vmem:[#allocation16_spill] sm:$0xff] %v7845_v0  ;;  %1972 = vmatprep.subr.mxu0 %v10959_v19 }
 0x14e   :  { %10971 = vst [vmem:[#allocation18_spill] sm:$0xff] %v7850_v63  ;;  %10972 = vst [vmem:[#allocation24_spill] sm:$0xff] %v7852_v28  ;;  %5563 = vmatmul.mubr.msk.f32.gmra.mxu0 %vm186_vm2, %v7528_v2  ;;  %v7857_v31 = vpop.f32.mrf.mxu0  ;;  %v7859_v62 = vpop.f32.mrf.mxu1  ;;  %v10979_v63 = vld [vmem:[#allocation19_spill] sm:$0xff]  ;;  %v7909_v28 = vmax.f32 %v7792_v27, %v7802_v3 }
 0x14f   :  { %10973 = vst [vmem:[#allocation13_spill] sm:$0xff] %v7857_v31  ;;  %10974 = vst [vmem:[#allocation53_spill] sm:$0xff] %v7859_v62  ;;  %5584 = vmatmul.mubr.msk.f32.gmra.mxu1 %vm186_vm2, %v7528_v2  ;;  %1790 = vmatprep.mubr.f32.mxu0 %v10916_v45 }
 0x150   :  { %1933 = vmatprep.mubr.f32.mxu1 %v10916_v45  ;;  %1973 = vmatpush1.msra.mxu0 %v10975_v35  ;;  %v7866_v51 = vpop.f32.mrf.mxu0  ;;  %v7868_v42 = vpop.f32.mrf.mxu1  ;;  %v10978_v35 = vld [vmem:[#allocation17_spill] sm:$0xff] }
 0x151   :  { %10976 = vst [vmem:[#allocation15_spill] sm:$0xff] %v7866_v51  ;;  %1974 = vmatprep.subr.mxu0 %v10962_v25  ;;  %10980 = vst [vmem:[#allocation17_spill] sm:$0xff] %v7909_v28 }
 0x152   :  { %5564 = vmatmul.mubr.msk.f32.gmra.mxu0 %vm186_vm2, %v7548_v29  ;;  %v7873_v19 = vpop.f32.mrf.mxu0  ;;  %v7875_v46 = vpop.f32.mrf.mxu1 }
 0x153   :  { %10977 = vst [vmem:[#allocation54_spill] sm:$0xff] %v7873_v19  ;;  %5585 = vmatmul.mubr.msk.f32.gmra.mxu1 %vm186_vm2, %v7548_v29  ;;  %1796 = vmatprep.mubr.f32.mxu0 %v10916_v45  ;;  %v7923_v19 = vmax.f32 %v7773_v33, %v7784_v9  ;;  %v7940_v9 = vmax.f32 %v7755_v16, %v7766_v54  ;;  %v7957_v16 = vld [vmem:[%s10700_s2 + $0x8] sm:$0xff]  ;;  %v8051_v33 = vld [vmem:[%s10700_s2 + $0x20] sm:$0xff] }
 0x154   :  { %1939 = vmatprep.mubr.f32.mxu1 %v10916_v45  ;;  %1975 = vmatpush1.msra.mxu0 %v10978_v35  ;;  %v7882_v18 = vpop.f32.mrf.mxu0  ;;  %v7884_v15 = vpop.f32.mrf.mxu1  ;;  %v7961_v54 = vmax.f32 %v7732_v20, %v7744_v17  ;;  %v7983_v20 = vmax.f32 %v7730_v47, %v7742_v12  ;;  %v8011_v12 = vmax.f32 %v7659_v14, %v7680_v39  ;;  %v8030_v14 = vld [vmem:[%s10700_s2 + $0x18] sm:$0xff] }
 0x155   :  { %1976 = vmatprep.subr.mxu0 %v10966_v40  ;;  %v7901_v40 = vld [vmem:[%s10700_s2] sm:$0xff]  ;;  %10982 = vst [vmem:[#allocation55_spill] sm:$0xff] %v7923_v19  ;;  %10984 = vst [vmem:[#allocation57_spill] sm:$0xff] %v7940_v9 }
 0x156   :  { %5565 = vmatmul.mubr.msk.f32.gmra.mxu0 %vm186_vm2, %v7569_v30  ;;  %v7889_v25 = vpop.f32.mrf.mxu0  ;;  %v7891_v0 = vpop.f32.mrf.mxu1  ;;  %10986 = vst [vmem:[#allocation59_spill] sm:$0xff] %v7961_v54  ;;  %10989 = vst [vmem:[#allocation62_spill] sm:$0xff] %v7983_v20 }
 0x157   :  { %5586 = vmatmul.mubr.msk.f32.gmra.mxu1 %vm186_vm2, %v7569_v30  ;;  %1977 = vmatpush1.msra.mxu0 %v10979_v63  ;;  %v7913_v63 = vmax.f32 %v7809_v21, %v7815_v6  ;;  %v7930_v6 = vmax.f32 %v7790_v24, %v7800_v53  ;;  %v7945_v21 = vmax.f32 %v7771_v32, %v7782_v26 }
 0x158   :  { %2010 = vmatprep.mubr.f32.mxu0 %v10916_v45  ;;  %2358 = vmatprep.mubr.f32.mxu1 %v10916_v45  ;;  %v7903_v35 = vpop.f32.mrf.mxu0  ;;  %v7905_v31 = vpop.f32.mrf.mxu1  ;;  %v7976_v32 = vmax.f32 %v7697_v57, %v7712_v41  ;;  %v7995_v57 = vld [vmem:[%s10700_s2 + $0x10] sm:$0xff]  ;;  %v8001_v41 = vmax.f32 %v7695_v49, %v7710_v43  ;;  %10991 = vst [vmem:[#allocation64_spill] sm:$0xff] %v8011_v12  ;;  %10993 = vst [vmem:[#allocation66_spill] sm:$0xff] %v8030_v14 }
 0x159   :  { %10981 = vst [vmem:[#allocation19_spill] sm:$0xff] %v7913_v63  ;;  %10983 = vst [vmem:[#allocation56_spill] sm:$0xff] %v7930_v6  ;;  %v8018_v49 = vmax.f32 %v7657_v34, %v7678_v38 }
 0x15a   :  { %5595 = vmatmul.mubr.msk.f32.vlgmr.msra.gmra.mxu0 %vm186_vm2, %v7215_v4  ;;  %v7917_v62 = vpop.f32.mrf.mxu0  ;;  %v7919_v51 = vpop.f32.mrf.mxu1  ;;  %10985 = vst [vmem:[#allocation58_spill] sm:$0xff] %v7945_v21  ;;  %10988 = vst [vmem:[#allocation61_spill] sm:$0xff] %v7976_v32 }
 0x15b   :  { %5608 = vmatmul.mubr.msk.f32.vlgmr.msra.gmra.mxu1 %vm2272_vm3, %v7901_v40  ;;  %2016 = vmatprep.mubr.f32.mxu0 %v10916_v45  ;;  %10990 = vst [vmem:[#allocation63_spill] sm:$0xff] %v8001_v41  ;;  %10992 = vst [vmem:[#allocation65_spill] sm:$0xff] %v8018_v49 }
 0x15c   :  { %2408 = vmatpush1.msra.mxu1 %v7913_v63  ;;  %v7933_v4 = vpop.f32.mrf.mxu0  ;;  %v7935_v3 = vpop.f32.mrf.mxu1  ;;  %2364 = vmatprep.mubr.f32.mxu1 %v10916_v45  ;;  %10994 = vst [vmem:[#allocation67_spill] sm:$0xff] %v8051_v33 }
 0x15d   :  { %2409 = vmatprep.subr.mxu1 %v7909_v28 }
 0x15e   :  { %2410 = vmatpush1.msra.mxu1 %v7930_v6  ;;  %5596 = vmatmul.mubr.msk.f32.gmra.mxu0 %vm186_vm2, %v7252_v13  ;;  %v7950_v24 = vpop.f32.mrf.mxu0  ;;  %v7952_v27 = vpop.f32.mrf.mxu1  ;;  %v7967_v13 = vmax.f32 %v7753_v11, %v7764_v5 }
 0x15f   :  { %2411 = vmatprep.subr.mxu1 %v7923_v19  ;;  %2022 = vmatprep.mubr.f32.mxu0 %v10916_v45 }
 0x160   :  { %10987 = vst [vmem:[#allocation60_spill] sm:$0xff] %v7967_v13  ;;  %2412 = vmatpush1.msra.mxu1 %v7945_v21  ;;  %v7970_v26 = vpop.f32.mrf.mxu0  ;;  %v7972_v53 = vpop.f32.mrf.mxu1  ;;  %v11031_v21 = vld [vmem:[#allocation12_spill] sm:$0xff] }
 0x161   :  { %2413 = vmatprep.subr.mxu1 %v7940_v9  ;;  %5609 = vmatmul.mubr.msk.f32.gmra.mxu1 %vm2272_vm3, %v7957_v16 }
 0x162   :  { %2414 = vmatpush1.msra.mxu1 %v7967_v13  ;;  %5597 = vmatmul.mubr.msk.f32.gmra.mxu0 %vm186_vm2, %v7298_v22  ;;  %v7988_v17 = vpop.f32.mrf.mxu0  ;;  %v7990_v11 = vpop.f32.mrf.mxu1 }
 0x163   :  { %2415 = vmatprep.subr.mxu1 %v7961_v54  ;;  %2028 = vmatprep.mubr.f32.mxu0 %v10916_v45  ;;  %v11001_v54 = vld [vmem:[#allocation23_spill] sm:$0xff] }
 0x164   :  { %2416 = vmatpush1.msra.mxu1 %v7983_v20  ;;  %v8004_v22 = vpop.f32.mrf.mxu0  ;;  %v8006_v47 = vpop.f32.mrf.mxu1  ;;  %2370 = vmatprep.mubr.f32.mxu1 %v10916_v45 }
 0x165   :  { %2417 = vmatprep.subr.mxu1 %v7976_v32  ;;  %5610 = vmatmul.mubr.msk.f32.gmra.mxu1 %vm2272_vm3, %v7995_v57 }
 0x166   :  { %2418 = vmatpush1.msra.mxu1 %v8001_v41  ;;  %5598 = vmatmul.mubr.msk.f32.gmra.mxu0 %vm186_vm2, %v7342_v37  ;;  %v8023_v43 = vpop.f32.mrf.mxu0  ;;  %v8025_v5 = vpop.f32.mrf.mxu1 }
 0x167   :  { %2419 = vmatprep.subr.mxu1 %v8011_v12  ;;  %2034 = vmatprep.mubr.f32.mxu0 %v10916_v45 }
 0x168   :  { %2420 = vmatpush1.msra.mxu1 %v8018_v49  ;;  %v8035_v34 = vpop.f32.mrf.mxu0  ;;  %v8037_v38 = vpop.f32.mrf.mxu1  ;;  %2376 = vmatprep.mubr.f32.mxu1 %v10916_v45 }
 0x169   :  { %2421 = vmatprep.subr.mxu1 %v7652_v58  ;;  %5611 = vmatmul.mubr.msk.f32.gmra.mxu1 %vm2272_vm3, %v8030_v14 }
 0x16a   :  { %2422 = vmatpush1.msra.mxu1 %v7650_v50  ;;  %5599 = vmatmul.mubr.msk.f32.gmra.mxu0 %vm186_vm2, %v7385_v52  ;;  %v8046_v37 = vpop.f32.mrf.mxu0  ;;  %v1067_v39 = vpop.f32.mrf.mxu1 }
 0x16b   :  { %2423 = vmatprep.subr.mxu1 %v7613_v7  ;;  %2040 = vmatprep.mubr.f32.mxu0 %v10916_v45 }
 0x16c   :  { %2424 = vmatpush1.msra.mxu1 %v7611_v56  ;;  %v928_v58 = vpop.f32.mrf.mxu0  ;;  %v1071_v49 = vpop.f32.mrf.mxu1  ;;  %2382 = vmatprep.mubr.f32.mxu1 %v10916_v45  ;;  %v8066_v56 = vld [vmem:[%s10700_s2 + $0x28] sm:$0xff] }
 0x16d   :  { %2425 = vmatprep.subr.mxu1 %v7585_v48  ;;  %5612 = vmatmul.mubr.msk.f32.gmra.mxu1 %vm2272_vm3, %v8051_v33  ;;  %10995 = vst [vmem:[#allocation68_spill] sm:$0xff] %v8066_v56 }
 0x16e   :  { %2426 = vmatpush1.msra.mxu1 %v7583_v23  ;;  %5600 = vmatmul.mubr.msk.f32.gmra.mxu0 %vm186_vm2, %v10951_v8  ;;  %v930_v52 = vpop.f32.mrf.mxu0  ;;  %v1073_v7 = vpop.f32.mrf.mxu1 }
 0x16f   :  { %2427 = vmatprep.subr.mxu1 %v7560_v1  ;;  %2046 = vmatprep.mubr.f32.mxu0 %v10916_v45 }
 0x170   :  { %2428 = vmatpush1.msra.mxu1 %v7558_v36  ;;  %v934_v48 = vpop.f32.mrf.mxu0  ;;  %v1077_v50 = vpop.f32.mrf.mxu1  ;;  %2388 = vmatprep.mubr.f32.mxu1 %v10916_v45  ;;  %v8081_v36 = vld [vmem:[%s10700_s2 + $0x30] sm:$0xf] }
 0x171   :  { %2429 = vmatprep.subr.mxu1 %v7541_v59  ;;  %5613 = vmatmul.mubr.msk.f32.gmra.mxu1 %vm2272_vm3, %v8066_v56 }
 0x172   :  { %2430 = vmatpush1.msra.mxu1 %v7539_v55  ;;  %5601 = vmatmul.mubr.msk.f32.gmra.mxu0 %vm186_vm2, %v10957_v44  ;;  %v936_v8 = vpop.f32.mrf.mxu0  ;;  %v1079_v1 = vpop.f32.mrf.mxu1  ;;  %v10996_v44 = vld [vmem:[#allocation22_spill] sm:$0xff] }
 0x173   :  { %2431 = vmatprep.subr.mxu1 %v7520_v60  ;;  %2052 = vmatprep.mubr.f32.mxu0 %v10916_v45 }
 0x174   :  { %2432 = vmatpush1.msra.mxu1 %v7518_v61  ;;  %v940_v59 = vpop.f32.mrf.mxu0  ;;  %v1083_v23 = vpop.f32.mrf.mxu1  ;;  %2394 = vmatprep.mubr.f32.mxu1 %v10916_v45  ;;  %v8097_v61 = vmax.f32 %v1077_v50, %v1079_v1 }
 0x175   :  { %5614 = vmatmul.mubr.msk.f32.gmra.mxu1 %vm2272_vm3, %v8081_v36 }
 0x176   :  { %5602 = vmatmul.mubr.msk.f32.gmra.mxu0 %vm186_vm2, %v10996_v44  ;;  %v942_v55 = vpop.f32.mrf.mxu0  ;;  %v1085_v12 = vpop.f32.mrf.mxu1  ;;  %2465 = vmatprep.mubr.f32.mxu1 %v10916_v45  ;;  %10999 = vst [vmem:[#allocation70_spill] sm:$0xff] %v8097_v61  ;;  %v8104_v44 = vmax.f32 %v1071_v49, %v1073_v7 }
 0x177   :  { %2058 = vmatprep.mubr.f32.mxu0 %v10916_v45  ;;  %v8093_v60 = vmax.f32 %v940_v59, %v942_v55  ;;  %v8095_v41 = vmax.f32 %v1083_v23, %v1085_v12  ;;  %v8111_v59 = vmax.f32 %v934_v48, %v936_v8  ;;  %v8118_v23 = vmax.f32 %v8037_v38, %v1067_v39  ;;  %v11022_v38 = vld [vmem:[#allocation53_spill] sm:$0xff] }
 0x178   :  { %v1154_v32 = vpop.f32.mrf.mxu0  ;;  %v8099_v20 = vpop.f32.mrf.mxu1  ;;  %11000 = vst [vmem:[#allocation71_spill] sm:$0xff] %v8104_v44  ;;  %v8130_v48 = vmax.f32 %v8006_v47, %v8025_v5  ;;  %v8147_v47 = vmax.f32 %v7972_v53, %v7990_v11  ;;  %v8157_v5 = vmax.f32 %v8004_v22, %v8023_v43  ;;  %v8164_v53 = vmax.f32 %v7935_v3, %v7952_v27  ;;  %v11025_v39 = vld [vmem:[#allocation13_spill] sm:$0xff] }
 0x179   :  { %10997 = vst [vmem:[#allocation22_spill] sm:$0xff] %v8093_v60  ;;  %10998 = vst [vmem:[#allocation69_spill] sm:$0xff] %v8095_v41  ;;  %2514 = vmatprep.subr.mxu0 %v8095_v41  ;;  %5615 = vmatmul.mubr.msk.f32.vlgmr.msra.gmra.mxu1 %vm2272_vm3, %v7901_v40  ;;  %v8175_v22 = vmax.f32 %v7970_v26, %v7988_v17  ;;  %v8181_v3 = vmax.f32 %v7905_v31, %v7919_v51 }
 0x17a   :  { %5603 = vmatmul.mubr.msk.f32.gmra.mxu0 %vm186_vm2, %v11001_v54  ;;  %v1156_v13 = vpop.f32.mrf.mxu0  ;;  %v8108_v55 = vpop.f32.mrf.mxu1  ;;  %2471 = vmatprep.mubr.f32.mxu1 %v10916_v45  ;;  %11002 = vst [vmem:[#allocation23_spill] sm:$0xff] %v8111_v59  ;;  %11004 = vst [vmem:[#allocation73_spill] sm:$0xff] %v8118_v23  ;;  %v8123_v54 = vmax.f32 %v928_v58, %v930_v52  ;;  %v8139_v58 = vmax.f32 %v8035_v34, %v8046_v37  ;;  %v11026_v52 = vld [vmem:[#allocation18_spill] sm:$0xff] }
 0x17b   :  { %2064 = vmatprep.mubr.f32.mxu0 %v10916_v45  ;;  %v8114_v1 = vmax.f32 %v1154_v32, %v1156_v13  ;;  %2515 = vmatpush1.msra.mxu0 %v8093_v60  ;;  %11006 = vst [vmem:[#allocation75_spill] sm:$0xff] %v8130_v48  ;;  %11009 = vst [vmem:[#allocation78_spill] sm:$0xff] %v8147_v47  ;;  %v8191_v26 = vmax.f32 %v7933_v4, %v7950_v24 }
 0x17c   :  { %2516 = vmatprep.subr.mxu0 %v8097_v61  ;;  %v1160_v7 = vpop.f32.mrf.mxu0  ;;  %v8121_v50 = vpop.f32.mrf.mxu1  ;;  %11005 = vst [vmem:[#allocation74_spill] sm:$0xff] %v8123_v54  ;;  %11007 = vst [vmem:[#allocation76_spill] sm:$0xff] %v8139_v58  ;;  %v8198_v31 = vmax.f32 %v7884_v15, %v7891_v0  ;;  %v8209_v4 = vmax.f32 %v7903_v35, %v7917_v62  ;;  %v8228_v62 = vmax.f32 %v7868_v42, %v7875_v46  ;;  %v11023_v42 = vld [vmem:[#allocation24_spill] sm:$0xff] }
 0x17d   :  { %11003 = vst [vmem:[#allocation72_spill] sm:$0xff] %v8114_v1  ;;  %2517 = vmatpush1.msra.mxu0 %v8111_v59  ;;  %5616 = vmatmul.mubr.msk.f32.gmra.mxu1 %vm2272_vm3, %v7957_v16  ;;  %11010 = vst [vmem:[#allocation79_spill] sm:$0xff] %v8157_v5  ;;  %v8245_v46 = vmax.f32 %v11023_v42, %v11022_v38  ;;  %v8255_v8 = vmax.f32 %v11026_v52, %v11025_v39  ;;  %v11029_v42 = vld [vmem:[#allocation14_spill] sm:$0xff]  ;;  %v11030_v39 = vld [vmem:[#allocation21_spill] sm:$0xff] }
 0x17e   :  { %5604 = vmatmul.mubr.msk.f32.gmra.mxu0 %vm186_vm2, %v10967_v10  ;;  %2518 = vmatprep.subr.mxu0 %v8104_v44  ;;  %v1162_v13 = vpop.f32.mrf.mxu0  ;;  %v8135_v32 = vpop.f32.mrf.mxu1  ;;  %11011 = vst [vmem:[#allocation80_spill] sm:$0xff] %v8164_v53  ;;  %11012 = vst [vmem:[#allocation81_spill] sm:$0xff] %v8175_v22 }
 0x17f   :  { %2070 = vmatprep.mubr.f32.mxu0 %v10916_v45  ;;  %v8142_v12 = vmax.f32 %v1160_v7, %v1162_v13  ;;  %2519 = vmatpush1.msra.mxu0 %v8123_v54  ;;  %11013 = vst [vmem:[#allocation82_spill] sm:$0xff] %v8181_v3  ;;  %11014 = vst [vmem:[#allocation83_spill] sm:$0xff] %v8191_v26 }
 0x180   :  { %2520 = vmatprep.subr.mxu0 %v8118_v23  ;;  %v8150_v10 = vpop.f32.mrf.mxu0  ;;  %v8152_v49 = vpop.f32.mrf.mxu1  ;;  %2477 = vmatprep.mubr.f32.mxu1 %v10916_v45  ;;  %11015 = vst [vmem:[#allocation84_spill] sm:$0xff] %v8198_v31  ;;  %11016 = vst [vmem:[#allocation85_spill] sm:$0xff] %v8209_v4 }
 0x181   :  { %11008 = vst [vmem:[#allocation77_spill] sm:$0xff] %v8142_v12  ;;  %2521 = vmatpush1.msra.mxu0 %v8139_v58  ;;  %5617 = vmatmul.mubr.msk.f32.gmra.mxu1 %vm2272_vm3, %v7995_v57  ;;  %11018 = vst [vmem:[#allocation87_spill] sm:$0xff] %v8228_v62 }
 0x182   :  { %5605 = vmatmul.mubr.msk.f32.gmra.mxu0 %vm186_vm2, %v7528_v2  ;;  %2522 = vmatprep.subr.mxu0 %v8130_v48  ;;  %v8169_v11 = vpop.f32.mrf.mxu0  ;;  %v8171_v34 = vpop.f32.mrf.mxu1  ;;  %11027 = vst [vmem:[#allocation53_spill] sm:$0xff] %v8255_v8 }
 0x183   :  { %2076 = vmatprep.mubr.f32.mxu0 %v10916_v45  ;;  %2523 = vmatpush1.msra.mxu0 %v8157_v5 }
 0x184   :  { %2524 = vmatprep.subr.mxu0 %v8147_v47  ;;  %v8184_v2 = vpop.f32.mrf.mxu0  ;;  %v8186_v27 = vpop.f32.mrf.mxu1  ;;  %2483 = vmatprep.mubr.f32.mxu1 %v10916_v45 }
 0x185   :  { %2525 = vmatpush1.msra.mxu0 %v8175_v22  ;;  %5618 = vmatmul.mubr.msk.f32.gmra.mxu1 %vm2272_vm3, %v8030_v14 }
 0x186   :  { %5606 = vmatmul.mubr.msk.f32.gmra.mxu0 %vm186_vm2, %v7548_v29  ;;  %2526 = vmatprep.subr.mxu0 %v8164_v53  ;;  %v8203_v51 = vpop.f32.mrf.mxu0  ;;  %v8205_v17 = vpop.f32.mrf.mxu1  ;;  %v8221_v29 = vmax.f32 %v7882_v18, %v7889_v25  ;;  %v11019_v18 = vld [vmem:[#allocation54_spill] sm:$0xff]  ;;  %v11020_v25 = vld [vmem:[#allocation15_spill] sm:$0xff] }
 0x187   :  { %2082 = vmatprep.mubr.f32.mxu0 %v10916_v45  ;;  %2527 = vmatpush1.msra.mxu0 %v8191_v26  ;;  %v8239_v43 = vmax.f32 %v11020_v25, %v11019_v18  ;;  %11024 = vst [vmem:[#allocation15_spill] sm:$0xff] %v8245_v46  ;;  %v11028_v18 = vld [vmem:[#allocation16_spill] sm:$0xff] }
 0x188   :  { %2528 = vmatprep.subr.mxu0 %v8181_v3  ;;  %v8214_v15 = vpop.f32.mrf.mxu0  ;;  %v8216_v0 = vpop.f32.mrf.mxu1  ;;  %2489 = vmatprep.mubr.f32.mxu1 %v10916_v45  ;;  %11017 = vst [vmem:[#allocation86_spill] sm:$0xff] %v8221_v29 }
 0x189   :  { %2529 = vmatpush1.msra.mxu0 %v8209_v4  ;;  %5619 = vmatmul.mubr.msk.f32.gmra.mxu1 %vm2272_vm3, %v8051_v33  ;;  %11021 = vst [vmem:[#allocation54_spill] sm:$0xff] %v8239_v43 }
 0x18a   :  { %5607 = vmatmul.mubr.msk.f32.gmra.mxu0 %vm186_vm2, %v7569_v30  ;;  %2530 = vmatprep.subr.mxu0 %v8198_v31  ;;  %v8233_v35 = vpop.f32.mrf.mxu0  ;;  %v8235_v24 = vpop.f32.mrf.mxu1 }
 0x18b   :  { %2531 = vmatpush1.msra.mxu0 %v8221_v29  ;;  %2572 = vmatprep.mubr.f32.mxu0 %v10916_v45 }
 0x18c   :  { %2532 = vmatprep.subr.mxu0 %v8228_v62  ;;  %v8248_v30 = vpop.f32.mrf.mxu0  ;;  %v8250_v37 = vpop.f32.mrf.mxu1  ;;  %2495 = vmatprep.mubr.f32.mxu1 %v10916_v45 }
 0x18d   :  { %2533 = vmatpush1.msra.mxu0 %v8239_v43  ;;  %5620 = vmatmul.mubr.msk.f32.gmra.mxu1 %vm2272_vm3, %v8066_v56 }
 0x18e   :  { %2534 = vmatprep.subr.mxu0 %v8245_v46  ;;  %v8261_v7 = vpop.f32.mrf.mxu0  ;;  %v8263_v13 = vpop.f32.mrf.mxu1  ;;  %2501 = vmatprep.mubr.f32.mxu1 %v10916_v45 }
 0x18f   :  { %2535 = vmatpush1.msra.mxu0 %v8255_v8 }
 0x190   :  { %2536 = vmatprep.subr.mxu0 %v11028_v18  ;;  %v8268_v25 = vpop.f32.mrf.mxu0  ;;  %v8270_v38 = vpop.f32.mrf.mxu1 }
 0x191   :  { %2537 = vmatpush1.msra.mxu0 %v11029_v42  ;;  %5621 = vmatmul.mubr.msk.f32.gmra.mxu1 %vm2272_vm3, %v8081_v36 }
 0x192   :  { %2538 = vmatprep.subr.mxu0 %v11030_v39  ;;  %v8276_v52 = vpop.f32.mrf.mxu0  ;;  %v8278_v9 = vpop.f32.mrf.mxu1  ;;  %2679 = vmatprep.mubr.f32.mxu1 %v10916_v45 }
 0x193   :  { %2539 = vmatpush1.msra.mxu0 %v11031_v21 }
 0x194   :  { %v8282_v19 = vpop.f32.mrf.mxu0  ;;  %v1339_v6 = vpop.f32.mrf.mxu1  ;;  %5622 = vmatmul.mubr.msk.f32.vlgmr.msra.gmra.mxu0 %vm2272_vm3, %v7901_v40 }
 0x195   :  { %2578 = vmatprep.mubr.f32.mxu0 %v10916_v45 }
 0x196   :  { %v8287_v28 = vpop.f32.mrf.mxu0  ;;  %v1341_v63 = vpop.f32.mrf.mxu1 }
 0x198   :  { %v1202_v39 = vpop.f32.mrf.mxu0  ;;  %v1345_v42 = vpop.f32.mrf.mxu1  ;;  %5623 = vmatmul.mubr.msk.f32.gmra.mxu0 %vm2272_vm3, %v7957_v16 }
 0x199   :  { %2584 = vmatprep.mubr.f32.mxu0 %v10916_v45 }
 0x19a   :  { %v1204_v18 = vpop.f32.mrf.mxu0  ;;  %v1347_v21 = vpop.f32.mrf.mxu1 }
 0x19c   :  { %v1208_v8 = vpop.f32.mrf.mxu0  ;;  %v1351_v46 = vpop.f32.mrf.mxu1  ;;  %5624 = vmatmul.mubr.msk.f32.gmra.mxu0 %vm2272_vm3, %v7995_v57 }
 0x19d   :  { %2590 = vmatprep.mubr.f32.mxu0 %v10916_v45 }
 0x19e   :  { %v1210_v43 = vpop.f32.mrf.mxu0  ;;  %v1353_v62 = vpop.f32.mrf.mxu1 }
 0x1a0   :  { %v1214_v29 = vpop.f32.mrf.mxu0  ;;  %v1357_v31 = vpop.f32.mrf.mxu1  ;;  %5625 = vmatmul.mubr.msk.f32.gmra.mxu0 %vm2272_vm3, %v8030_v14 }
 0x1a1   :  { %2596 = vmatprep.mubr.f32.mxu0 %v10916_v45 }
 0x1a2   :  { %v1216_v4 = vpop.f32.mrf.mxu0  ;;  %v1359_v3 = vpop.f32.mrf.mxu1 }
 0x1a3   :  { %v8316_v41 = vmax.f32 %v1357_v31, %v1359_v3  ;;  %v8340_v3 = vmax.f32 %v1208_v8, %v1210_v43  ;;  %v8359_v43 = vmax.f32 %v8270_v38, %v8278_v9  ;;  %v8373_v8 = vmax.f32 %v8250_v37, %v8263_v13 }
 0x1a4   :  { %v1220_v26 = vpop.f32.mrf.mxu0  ;;  %v1363_v53 = vpop.f32.mrf.mxu1  ;;  %5626 = vmatmul.mubr.msk.f32.gmra.mxu0 %vm2272_vm3, %v8051_v33  ;;  %v8378_v9 = vmax.f32 %v8268_v25, %v8276_v52  ;;  %v8392_v37 = vmax.f32 %v8248_v30, %v8261_v7  ;;  %v8402_v38 = vmax.f32 %v8214_v15, %v8233_v35  ;;  %v8411_v30 = vmax.f32 %v8186_v27, %v8205_v17 }
 0x1a5   :  { %2602 = vmatprep.mubr.f32.mxu0 %v10916_v45  ;;  %11035 = vst [vmem:[#allocation88_spill] sm:$0xff] %v8316_v41  ;;  %11040 = vst [vmem:[#allocation93_spill] sm:$0xff] %v8340_v3  ;;  %v8416_v7 = vmax.f32 %v8184_v2, %v8203_v51  ;;  %v8425_v35 = vmax.f32 %v8152_v49, %v8171_v34  ;;  %v8430_v27 = vmax.f32 %v8150_v10, %v8169_v11 }
 0x1a6   :  { %v1222_v22 = vpop.f32.mrf.mxu0  ;;  %v1365_v47 = vpop.f32.mrf.mxu1  ;;  %11043 = vst [vmem:[#allocation96_spill] sm:$0xff] %v8359_v43  ;;  %11045 = vst [vmem:[#allocation98_spill] sm:$0xff] %v8373_v8  ;;  %v8439_v51 = vmax.f32 %v8121_v50, %v8135_v32  ;;  %v8449_v10 = vmax.f32 %v8099_v20, %v8108_v55 }
 0x1a7   :  { %v8304_v54 = vmax.f32 %v1363_v53, %v1365_v47  ;;  %11046 = vst [vmem:[#allocation99_spill] sm:$0xff] %v8378_v9  ;;  %11048 = vst [vmem:[#allocation101_spill] sm:$0xff] %v8392_v37 }
 0x1a8   :  { %v1226_v5 = vpop.f32.mrf.mxu0  ;;  %v1369_v48 = vpop.f32.mrf.mxu1  ;;  %5627 = vmatmul.mubr.msk.f32.gmra.mxu0 %vm2272_vm3, %v8066_v56  ;;  %v8320_v56 = vmax.f32 %v1220_v26, %v1222_v22  ;;  %v8337_v22 = vmax.f32 %v1345_v42, %v1347_v21  ;;  %11049 = vst [vmem:[#allocation102_spill] sm:$0xff] %v8402_v38  ;;  %11050 = vst [vmem:[#allocation103_spill] sm:$0xff] %v8411_v30 }
 0x1a9   :  { %2608 = vmatprep.mubr.f32.mxu0 %v10916_v45  ;;  %11032 = vst [vmem:[#allocation24_spill] sm:$0xff] %v8304_v54  ;;  %11051 = vst [vmem:[#allocation104_spill] sm:$0xff] %v8416_v7 }
 0x1aa   :  { %v1228_v58 = vpop.f32.mrf.mxu0  ;;  %v1371_v23 = vpop.f32.mrf.mxu1  ;;  %11036 = vst [vmem:[#allocation89_spill] sm:$0xff] %v8320_v56  ;;  %11039 = vst [vmem:[#allocation92_spill] sm:$0xff] %v8337_v22 }
 0x1ab   :  { %v8306_v44 = vmax.f32 %v1226_v5, %v1228_v58  ;;  %v8308_v59 = vmax.f32 %v1369_v48, %v1371_v23  ;;  %v8327_v23 = vmax.f32 %v1351_v46, %v1353_v62  ;;  %v8330_v48 = vmax.f32 %v1214_v29, %v1216_v4  ;;  %11052 = vst [vmem:[#allocation105_spill] sm:$0xff] %v8425_v35 }
 0x1ac   :  { %v8310_v61 = vpop.f32.mrf.mxu0  ;;  %v8312_v60 = vpop.f32.mrf.mxu1  ;;  %5628 = vmatmul.mubr.msk.f32.gmra.mxu0 %vm2272_vm3, %v8081_v36  ;;  %v8347_v4 = vmax.f32 %v1339_v6, %v1341_v63  ;;  %v8350_v29 = vmax.f32 %v1202_v39, %v1204_v18  ;;  %v8364_v63 = vmax.f32 %v8282_v19, %v8287_v28  ;;  %v8387_v19 = vmax.f32 %v8216_v0, %v8235_v24 }
 0x1ad   :  { %11033 = vst [vmem:[#allocation13_spill] sm:$0xff] %v8306_v44  ;;  %11034 = vst [vmem:[#allocation18_spill] sm:$0xff] %v8308_v59  ;;  %2621 = vmatprep.subr.mxu1 %v8308_v59  ;;  %2786 = vmatprep.mubr.f32.mxu0 %v10916_v45 }
 0x1ae   :  { %v8322_v47 = vpop.f32.mrf.mxu0  ;;  %v8324_v58 = vpop.f32.mrf.mxu1  ;;  %2622 = vmatpush1.msra.mxu1 %v8306_v44  ;;  %11037 = vst [vmem:[#allocation90_spill] sm:$0xff] %v8327_v23  ;;  %11038 = vst [vmem:[#allocation91_spill] sm:$0xff] %v8330_v48 }
 0x1af   :  { %2623 = vmatprep.subr.mxu1 %v8304_v54  ;;  %11041 = vst [vmem:[#allocation94_spill] sm:$0xff] %v8347_v4  ;;  %11042 = vst [vmem:[#allocation95_spill] sm:$0xff] %v8350_v29 }
 0x1b0   :  { %v8332_v5 = vpop.f32.mrf.mxu0  ;;  %v8334_v53 = vpop.f32.mrf.mxu1  ;;  %2624 = vmatpush1.msra.mxu1 %v8320_v56  ;;  %11044 = vst [vmem:[#allocation97_spill] sm:$0xff] %v8364_v63  ;;  %11047 = vst [vmem:[#allocation100_spill] sm:$0xff] %v8387_v19 }
 0x1b1   :  { %2625 = vmatprep.subr.mxu1 %v8316_v41  ;;  %11053 = vst [vmem:[#allocation106_spill] sm:$0xff] %v8430_v27  ;;  %11054 = vst [vmem:[#allocation107_spill] sm:$0xff] %v8439_v51 }
 0x1b2   :  { %v8342_v26 = vpop.f32.mrf.mxu0  ;;  %v8344_v31 = vpop.f32.mrf.mxu1  ;;  %2626 = vmatpush1.msra.mxu1 %v8330_v48  ;;  %11055 = vst [vmem:[#allocation108_spill] sm:$0xff] %v8449_v10 }
 0x1b3   :  { %2627 = vmatprep.subr.mxu1 %v8327_v23 }
 0x1b4   :  { %v8352_v62 = vpop.f32.mrf.mxu0  ;;  %v8354_v21 = vpop.f32.mrf.mxu1  ;;  %2628 = vmatpush1.msra.mxu1 %v8340_v3 }
 0x1b5   :  { %2629 = vmatprep.subr.mxu1 %v8337_v22  ;;  %v11056_v22 = vld [vmem:[#allocation68_spill] sm:$0xff] }
 0x1b6   :  { %v8366_v6 = vpop.f32.mrf.mxu0  ;;  %v8368_v46 = vpop.f32.mrf.mxu1  ;;  %2630 = vmatpush1.msra.mxu1 %v8350_v29 }
 0x1b7   :  { %2631 = vmatprep.subr.mxu1 %v8347_v4 }
 0x1b8   :  { %v8380_v18 = vpop.f32.mrf.mxu0  ;;  %v8382_v28 = vpop.f32.mrf.mxu1  ;;  %2632 = vmatpush1.msra.mxu1 %v8364_v63 }
 0x1b9   :  { %2633 = vmatprep.subr.mxu1 %v8359_v43 }
 0x1ba   :  { %v8394_v13 = vpop.f32.mrf.mxu0  ;;  %v8396_v25 = vpop.f32.mrf.mxu1  ;;  %2634 = vmatpush1.msra.mxu1 %v8378_v9 }
 0x1bb   :  { %2635 = vmatprep.subr.mxu1 %v8373_v8 }
 0x1bc   :  { %v8404_v0 = vpop.f32.mrf.mxu0  ;;  %v8406_v24 = vpop.f32.mrf.mxu1  ;;  %2636 = vmatpush1.msra.mxu1 %v8392_v37 }
 0x1bd   :  { %2637 = vmatprep.subr.mxu1 %v8387_v19 }
 0x1be   :  { %v8418_v42 = vpop.f32.mrf.mxu0  ;;  %v8420_v15 = vpop.f32.mrf.mxu1  ;;  %2638 = vmatpush1.msra.mxu1 %v8402_v38 }
 0x1bf   :  { %2639 = vmatprep.subr.mxu1 %v8411_v30 }
 0x1c0   :  { %v8432_v17 = vpop.f32.mrf.mxu0  ;;  %v8434_v2 = vpop.f32.mrf.mxu1  ;;  %2640 = vmatpush1.msra.mxu1 %v8416_v7 }
 0x1c1   :  { %2641 = vmatprep.subr.mxu1 %v8425_v35 }
 0x1c2   :  { %v8442_v49 = vpop.f32.mrf.mxu0  ;;  %v8444_v34 = vpop.f32.mrf.mxu1  ;;  %2642 = vmatpush1.msra.mxu1 %v8430_v27 }
 0x1c3   :  { %2643 = vmatprep.subr.mxu1 %v8439_v51 }
 0x1c4   :  { %v8452_v11 = vpop.f32.mrf.mxu0  ;;  %v8454_v39 = vpop.f32.mrf.mxu1  ;;  %2644 = vmatpush1.msra.mxu1 %v8142_v12 }
 0x1c5   :  { %2645 = vmatprep.subr.mxu1 %v8449_v10 }
 0x1c6   :  { %v8458_v50 = vpop.f32.mrf.mxu0  ;;  %v8460_v32 = vpop.f32.mrf.mxu1  ;;  %2646 = vmatpush1.msra.mxu1 %v8114_v1 }
 0x1c7   :  { %5629 = vmatmul.mubr.msk.f32.vlgmr.msra.gmra.mxu1 %vm2272_vm3, %v7901_v40 }
 0x1c8   :  { %v8465_v20 = vpop.f32.mrf.mxu0  ;;  %v1625_v55 = vpop.f32.mrf.mxu1  ;;  %2685 = vmatprep.mubr.f32.mxu1 %v10916_v45 }
 0x1ca   :  { %v8468_v52 = vpop.f32.mrf.mxu0  ;;  %v1627_v51 = vpop.f32.mrf.mxu1 }
 0x1cb   :  { %5630 = vmatmul.mubr.msk.f32.gmra.mxu1 %vm2272_vm3, %v7957_v16 }
 0x1cc   :  { %v1488_v10 = vpop.f32.mrf.mxu0  ;;  %v1631_v12 = vpop.f32.mrf.mxu1  ;;  %2691 = vmatprep.mubr.f32.mxu1 %v10916_v45 }
 0x1ce   :  { %v1490_v27 = vpop.f32.mrf.mxu0  ;;  %v1633_v1 = vpop.f32.mrf.mxu1 }
 0x1cf   :  { %5631 = vmatmul.mubr.msk.f32.gmra.mxu1 %vm2272_vm3, %v7995_v57 }
 0x1d0   :  { %v1494_v35 = vpop.f32.mrf.mxu0  ;;  %v1637_v7 = vpop.f32.mrf.mxu1  ;;  %2697 = vmatprep.mubr.f32.mxu1 %v10916_v45 }
 0x1d2   :  { %v1496_v30 = vpop.f32.mrf.mxu0  ;;  %v1639_v38 = vpop.f32.mrf.mxu1 }
 0x1d3   :  { %5632 = vmatmul.mubr.msk.f32.gmra.mxu1 %vm2272_vm3, %v8030_v14 }
 0x1d4   :  { %v1500_v19 = vpop.f32.mrf.mxu0  ;;  %v1643_v37 = vpop.f32.mrf.mxu1  ;;  %2703 = vmatprep.mubr.f32.mxu1 %v10916_v45 }
 0x1d6   :  { %v1502_v8 = vpop.f32.mrf.mxu0  ;;  %v1645_v9 = vpop.f32.mrf.mxu1 }
 0x1d7   :  { %5633 = vmatmul.mubr.msk.f32.gmra.mxu1 %vm2272_vm3, %v8051_v33 }
 0x1d8   :  { %v1506_v43 = vpop.f32.mrf.mxu0  ;;  %v1649_v63 = vpop.f32.mrf.mxu1  ;;  %2709 = vmatprep.mubr.f32.mxu1 %v10916_v45 }
 0x1da   :  { %v1508_v4 = vpop.f32.mrf.mxu0  ;;  %v1651_v29 = vpop.f32.mrf.mxu1 }
 0x1db   :  { %5634 = vmatmul.mubr.msk.f32.gmra.mxu1 %vm2272_vm3, %v11056_v22  ;;  %v8485_v56 = vmax.f32 %v1649_v63, %v1651_v29  ;;  %v8496_v22 = vmax.f32 %v1643_v37, %v1645_v9  ;;  %v8501_v14 = vmax.f32 %v1506_v43, %v1508_v4  ;;  %v8519_v4 = vmax.f32 %v1494_v35, %v1496_v30 }
 0x1dc   :  { %v1512_v3 = vpop.f32.mrf.mxu0  ;;  %v1655_v23 = vpop.f32.mrf.mxu1  ;;  %2715 = vmatprep.mubr.f32.mxu1 %v10916_v45  ;;  %v8524_v9 = vmax.f32 %v1625_v55, %v1627_v51  ;;  %v8548_v30 = vmax.f32 %v8434_v2, %v8444_v34  ;;  %v8555_v35 = vmax.f32 %v8452_v11, %v8458_v50  ;;  %v8562_v51 = vmax.f32 %v8406_v24, %v8420_v15 }
 0x1dd   :  { %11057 = vst [vmem:[#allocation109_spill] sm:$0xff] %v8485_v56  ;;  %11059 = vst [vmem:[#allocation111_spill] sm:$0xff] %v8496_v22  ;;  %v8569_v2 = vmax.f32 %v8432_v17, %v8442_v49  ;;  %v8577_v11 = vmax.f32 %v8404_v0, %v8418_v42  ;;  %v8584_v15 = vmax.f32 %v8382_v28, %v8396_v25 }
 0x1de   :  { %v1514_v48 = vpop.f32.mrf.mxu0  ;;  %v1657_v41 = vpop.f32.mrf.mxu1  ;;  %11060 = vst [vmem:[#allocation112_spill] sm:$0xff] %v8501_v14  ;;  %11064 = vst [vmem:[#allocation116_spill] sm:$0xff] %v8519_v4  ;;  %v8591_v49 = vmax.f32 %v8380_v18, %v8394_v13  ;;  %v8598_v0 = vmax.f32 %v8354_v21, %v8368_v46  ;;  %v8603_v28 = vmax.f32 %v8352_v62, %v8366_v6 }
 0x1df   :  { %v8487_v54 = vmax.f32 %v1512_v3, %v1514_v48  ;;  %v8489_v44 = vmax.f32 %v1655_v23, %v1657_v41  ;;  %5635 = vmatmul.mubr.msk.f32.gmra.mxu1 %vm2272_vm3, %v8081_v36  ;;  %v8506_v41 = vmax.f32 %v1637_v7, %v1639_v38  ;;  %v8511_v48 = vmax.f32 %v1500_v19, %v1502_v8 }
 0x1e0   :  { %v8493_v59 = vpop.f32.mrf.mxu0  ;;  %2893 = vmatprep.mubr.f32.mxu1 %v10916_v45  ;;  %v8514_v3 = vmax.f32 %v1631_v12, %v1633_v1  ;;  %11065 = vst [vmem:[#allocation117_spill] sm:$0xff] %v8524_v9  ;;  %v8529_v8 = vmax.f32 %v1488_v10, %v1490_v27  ;;  %v8536_v12 = vmax.f32 %v8454_v39, %v8460_v32  ;;  %11069 = vst [vmem:[#allocation121_spill] sm:$0xff] %v8548_v30 }
 0x1e1   :  { %11058 = vst [vmem:[#allocation110_spill] sm:$0xff] %v8487_v54  ;;  %v8498_v33 = vpop.f32.mrf.mxu1  ;;  %2728 = vmatprep.subr.mxu0 %v8489_v44  ;;  %11061 = vst [vmem:[#allocation113_spill] sm:$0xff] %v8506_v41  ;;  %v8541_v19 = vmax.f32 %v8465_v20, %v8468_v52  ;;  %v8610_v18 = vmax.f32 %v8334_v53, %v8344_v31  ;;  %v8617_v21 = vmax.f32 %v8332_v5, %v8342_v26 }
 0x1e2   :  { %v8503_v29 = vpop.f32.mrf.mxu0  ;;  %2729 = vmatpush1.msra.mxu0 %v8487_v54  ;;  %11062 = vst [vmem:[#allocation114_spill] sm:$0xff] %v8511_v48  ;;  %11063 = vst [vmem:[#allocation115_spill] sm:$0xff] %v8514_v3  ;;  %v8624_v62 = vmax.f32 %v8312_v60, %v8324_v58  ;;  %v8631_v53 = vmax.f32 %v8310_v61, %v8322_v47 }
 0x1e3   :  { %v8508_v23 = vpop.f32.mrf.mxu1  ;;  %2730 = vmatprep.subr.mxu0 %v8485_v56  ;;  %11066 = vst [vmem:[#allocation118_spill] sm:$0xff] %v8529_v8  ;;  %11067 = vst [vmem:[#allocation119_spill] sm:$0xff] %v8536_v12 }
 0x1e4   :  { %2731 = vmatpush1.msra.mxu0 %v8501_v14  ;;  %11068 = vst [vmem:[#allocation120_spill] sm:$0xff] %v8541_v19  ;;  %11070 = vst [vmem:[#allocation122_spill] sm:$0xff] %v8555_v35 }
 0x1e5   :  { %v8516_v63 = vpop.f32.mrf.mxu0  ;;  %2732 = vmatprep.subr.mxu0 %v8496_v22  ;;  %11071 = vst [vmem:[#allocation123_spill] sm:$0xff] %v8562_v51  ;;  %11072 = vst [vmem:[#allocation124_spill] sm:$0xff] %v8569_v2 }
 0x1e6   :  { %v8521_v43 = vpop.f32.mrf.mxu1  ;;  %2733 = vmatpush1.msra.mxu0 %v8511_v48  ;;  %11073 = vst [vmem:[#allocation125_spill] sm:$0xff] %v8577_v11  ;;  %11074 = vst [vmem:[#allocation126_spill] sm:$0xff] %v8584_v15 }
 0x1e7   :  { %v8526_v37 = vpop.f32.mrf.mxu0  ;;  %2734 = vmatprep.subr.mxu0 %v8506_v41  ;;  %11075 = vst [vmem:[#allocation127_spill] sm:$0xff] %v8591_v49  ;;  %11076 = vst [vmem:[#allocation128_spill] sm:$0xff] %v8598_v0 }
 0x1e8   :  { %v8531_v1 = vpop.f32.mrf.mxu1  ;;  %2735 = vmatpush1.msra.mxu0 %v8519_v4  ;;  %11077 = vst [vmem:[#allocation129_spill] sm:$0xff] %v8603_v28  ;;  %11078 = vst [vmem:[#allocation130_spill] sm:$0xff] %v8610_v18 }
 0x1e9   :  { %2736 = vmatprep.subr.mxu0 %v8514_v3  ;;  %11079 = vst [vmem:[#allocation131_spill] sm:$0xff] %v8617_v21  ;;  %11080 = vst [vmem:[#allocation132_spill] sm:$0xff] %v8624_v62 }
 0x1ea   :  { %v8543_v38 = vpop.f32.mrf.mxu0  ;;  %2737 = vmatpush1.msra.mxu0 %v8529_v8  ;;  %11081 = vst [vmem:[#allocation133_spill] sm:$0xff] %v8631_v53 }
 0x1eb   :  { %v8550_v7 = vpop.f32.mrf.mxu1  ;;  %2738 = vmatprep.subr.mxu0 %v8524_v9 }
 0x1ec   :  { %v8557_v27 = vpop.f32.mrf.mxu0  ;;  %2739 = vmatpush1.msra.mxu0 %v8541_v19 }
 0x1ed   :  { %v8564_v10 = vpop.f32.mrf.mxu1  ;;  %2740 = vmatprep.subr.mxu0 %v8536_v12 }
 0x1ee   :  { %2741 = vmatpush1.msra.mxu0 %v8555_v35 }
 0x1ef   :  { %v8572_v34 = vpop.f32.mrf.mxu0  ;;  %2742 = vmatprep.subr.mxu0 %v8548_v30 }
 0x1f0   :  { %v8579_v24 = vpop.f32.mrf.mxu1  ;;  %2743 = vmatpush1.msra.mxu0 %v8569_v2 }
 0x1f1   :  { %v8586_v17 = vpop.f32.mrf.mxu0  ;;  %2744 = vmatprep.subr.mxu0 %v8562_v51 }
 0x1f2   :  { %v8593_v39 = vpop.f32.mrf.mxu1  ;;  %2745 = vmatpush1.msra.mxu0 %v8577_v11  ;;  %v11084_v11 = vld [vmem:[#allocation68_spill] sm:$0xff] }
 0x1f3   :  { %2746 = vmatprep.subr.mxu0 %v8584_v15 }
 0x1f4   :  { %v8605_v25 = vpop.f32.mrf.mxu0  ;;  %2747 = vmatpush1.msra.mxu0 %v8591_v49 }
 0x1f5   :  { %v8612_v13 = vpop.f32.mrf.mxu1  ;;  %2748 = vmatprep.subr.mxu0 %v8598_v0 }
 0x1f6   :  { %v8619_v46 = vpop.f32.mrf.mxu0  ;;  %2749 = vmatpush1.msra.mxu0 %v8603_v28  ;;  %v11083_v28 = vld [vmem:[#allocation67_spill] sm:$0xff] }
 0x1f7   :  { %v8626_v6 = vpop.f32.mrf.mxu1  ;;  %2750 = vmatprep.subr.mxu0 %v8610_v18 }
 0x1f8   :  { %2751 = vmatpush1.msra.mxu0 %v8617_v21 }
 0x1f9   :  { %v8634_v5 = vpop.f32.mrf.mxu0  ;;  %2752 = vmatprep.subr.mxu0 %v8624_v62 }
 0x1fa   :  { %v8637_v26 = vpop.f32.mrf.mxu1  ;;  %2753 = vmatpush1.msra.mxu0 %v8631_v53  ;;  %v11082_v53 = vld [vmem:[#allocation66_spill] sm:$0xff] }
 0x1fb   :  { %v8640_v60 = vpop.f32.mrf.mxu0  ;;  %5636 = vmatmul.mubr.msk.f32.vlgmr.msra.gmra.mxu0 %vm2272_vm3, %v7901_v40  ;;  %5868 = vmatprep.subr.mxu0 %v10916_v45 }
 0x1fc   :  { %v8645_v58 = vpop.f32.mrf.mxu1  ;;  %2792 = vmatprep.mubr.f32.mxu0 %v10916_v45 }
 0x1fe   :  { %v8648_v61 = vpop.f32.mrf.mxu0 }
 0x1ff   :  { %v8650_v47 = vpop.f32.mrf.mxu1  ;;  %5637 = vmatmul.mubr.msk.f32.gmra.mxu0 %vm2272_vm3, %v7957_v16 }
 0x200   :  { %v8654_v31 = vpop.f32.mrf.mxu0  ;;  %2798 = vmatprep.mubr.f32.mxu0 %v10916_v45 }
 0x201   :  { %v1907_v42 = vpop.f32.mrf.mxu1 }
 0x202   :  { %v1768_v50 = vpop.f32.mrf.mxu0 }
 0x203   :  { %v1911_v40 = vpop.f32.mrf.mxu1  ;;  %5638 = vmatmul.mubr.msk.f32.gmra.mxu0 %vm2272_vm3, %v7995_v57 }
 0x204   :  { %v1770_v32 = vpop.f32.mrf.mxu0  ;;  %2804 = vmatprep.mubr.f32.mxu0 %v10916_v45 }
 0x205   :  { %v1913_v20 = vpop.f32.mrf.mxu1 }
 0x206   :  { %v1774_v55 = vpop.f32.mrf.mxu0 }
 0x207   :  { %v1917_v52 = vpop.f32.mrf.mxu1  ;;  %5639 = vmatmul.mubr.msk.f32.gmra.mxu0 %vm2272_vm3, %v11082_v53 }
 0x208   :  { %v1776_v16 = vpop.f32.mrf.mxu0  ;;  %2810 = vmatprep.mubr.f32.mxu0 %v10916_v45 }
 0x209   :  { %v1919_v62 = vpop.f32.mrf.mxu1 }
 0x20a   :  { %v1780_v21 = vpop.f32.mrf.mxu0 }
 0x20b   :  { %v1923_v18 = vpop.f32.mrf.mxu1  ;;  %5640 = vmatmul.mubr.msk.f32.gmra.mxu0 %vm2272_vm3, %v11083_v28 }
 0x20c   :  { %v1782_v0 = vpop.f32.mrf.mxu0  ;;  %2816 = vmatprep.mubr.f32.mxu0 %v10916_v45 }
 0x20d   :  { %v1925_v57 = vpop.f32.mrf.mxu1 }
 0x20e   :  { %v1786_v49 = vpop.f32.mrf.mxu0  ;;  %v8689_v54 = vmax.f32 %v1923_v18, %v1925_v57  ;;  %v8724_v18 = vmax.f32 %v8637_v26, %v8645_v58  ;;  %v8743_v26 = vmax.f32 %v8634_v5, %v8640_v60  ;;  %v8763_v5 = vmax.f32 %v8572_v34, %v8586_v17  ;;  %v11093_v60 = vld [vmem:[#allocation36_spill] sm:$0xff]  ;;  %v11098_v57 = vld [vmem:[#allocation47_spill] sm:$0xff] }
 0x20f   :  { %v1929_v15 = vpop.f32.mrf.mxu1  ;;  %5641 = vmatmul.mubr.msk.f32.gmra.mxu0 %vm2272_vm3, %v11084_v11  ;;  %v8780_v34 = vmax.f32 %v8521_v43, %v8531_v1  ;;  %v8799_v43 = vmax.f32 %v8493_v59, %v8503_v29  ;;  %v11090_v29 = vld [vmem:[#allocation35_spill] sm:$0xff] }
 0x210   :  { %v1788_v51 = vpop.f32.mrf.mxu0  ;;  %2822 = vmatprep.mubr.f32.mxu0 %v10916_v45 }
 0x211   :  { %v1931_v53 = vpop.f32.mrf.mxu1  ;;  %11085 = vst [vmem:[#allocation66_spill] sm:$0xff] %v8780_v34  ;;  %11088 = vst [vmem:[#allocation134_spill] sm:$0xff] %v8799_v43 }
 0x212   :  { %v1792_v2 = vpop.f32.mrf.mxu0  ;;  %v8681_v22 = vmax.f32 %v1929_v15, %v1931_v53  ;;  %v8714_v15 = vmax.f32 %v8650_v47, %v1907_v42  ;;  %v8736_v47 = vmax.f32 %v8612_v13, %v8626_v6  ;;  %v8756_v13 = vmax.f32 %v8579_v24, %v8593_v39  ;;  %v8825_v39 = vld [vmem:[%s10700_s2 + $0x8] sm:$0xff]  ;;  %v11099_v53 = vld [vmem:[#allocation46_spill] sm:$0xff] }
 0x213   :  { %v1935_v30 = vpop.f32.mrf.mxu1  ;;  %5642 = vmatmul.mubr.msk.f32.gmra.mxu0 %vm2272_vm3, %v8081_v36  ;;  %v8775_v24 = vmax.f32 %v8543_v38, %v8557_v27  ;;  %v8792_v38 = vmax.f32 %v8498_v33, %v8508_v23  ;;  %v8809_v33 = vld [vmem:[%s10700_s2] sm:$0xff]  ;;  %v11089_v23 = vld [vmem:[#allocation31_spill] sm:$0xff] }
 0x214   :  { %v1794_v35 = vpop.f32.mrf.mxu0  ;;  %5894 = vmatprep.mubr.msk.f32.mxu0 %vm6049_vm4, %v10916_v45 }
 0x215   :  { %v1937_v28 = vpop.f32.mrf.mxu1  ;;  %v8686_v56 = vmax.f32 %v1792_v2, %v1794_v35  ;;  %v8705_v35 = vmax.f32 %v1911_v40, %v1913_v20  ;;  %11087 = vst [vmem:[#allocation68_spill] sm:$0xff] %v8792_v38  ;;  %v11095_v40 = vld [vmem:[#allocation40_spill] sm:$0xff]  ;;  %v11096_v20 = vld [vmem:[#allocation43_spill] sm:$0xff] }
 0x216   :  { %v1798_v12 = vpop.f32.mrf.mxu0  ;;  %v8675_v4 = vmax.f32 %v1935_v30, %v1937_v28  ;;  %v8702_v30 = vmax.f32 %v1780_v21, %v1782_v0  ;;  %v8719_v0 = vmax.f32 %v1768_v50, %v1770_v32  ;;  %v11094_v50 = vld [vmem:[#allocation41_spill] sm:$0xff] }
 0x217   :  { %v1941_v19 = vpop.f32.mrf.mxu1 }
 0x218   :  { %v1800_v9 = vpop.f32.mrf.mxu0 }
 0x219   :  { %v8673_v8 = vmax.f32 %v1798_v12, %v1800_v9  ;;  %v1943_v3 = vpop.f32.mrf.mxu1  ;;  %v8697_v12 = vmax.f32 %v1917_v52, %v1919_v62  ;;  %v8731_v62 = vmax.f32 %v8648_v61, %v8654_v31  ;;  %v8751_v61 = vmax.f32 %v8605_v25, %v8619_v46  ;;  %v11097_v52 = vld [vmem:[#allocation42_spill] sm:$0xff] }
 0x21a   :  { %v8677_v41 = vmax.f32 %v1941_v19, %v1943_v3  ;;  %v8679_v48 = vpop.f32.mrf.mxu0  ;;  %v8694_v3 = vmax.f32 %v1786_v49, %v1788_v51  ;;  %v8710_v51 = vmax.f32 %v1774_v55, %v1776_v16  ;;  %v8768_v25 = vmax.f32 %v8550_v7, %v8564_v10  ;;  %v11092_v10 = vld [vmem:[#allocation37_spill] sm:$0xff]  ;;  %v8839_v55 = vld [vmem:[%s10700_s2 + $0x10] sm:$0xff] }
 0x21b   :  { %v8787_v7 = vmax.f32 %v8516_v63, %v8526_v37  ;;  %v11091_v37 = vld [vmem:[#allocation32_spill] sm:$0xff] }
 0x21c   :  { %2835 = vmatprep.subr.mxu1 %v8677_v41  ;;  %v8684_v14 = vpop.f32.mrf.mxu0 }
 0x21d   :  { %2836 = vmatpush1.msra.mxu1 %v8673_v8  ;;  %11086 = vst [vmem:[#allocation67_spill] sm:$0xff] %v8787_v7 }
 0x21e   :  { %2837 = vmatprep.subr.mxu1 %v8675_v4  ;;  %v8692_v9 = vpop.f32.mrf.mxu0 }
 0x21f   :  { %2838 = vmatpush1.msra.mxu1 %v8686_v56 }
 0x220   :  { %2839 = vmatprep.subr.mxu1 %v8681_v22  ;;  %v8700_v19 = vpop.f32.mrf.mxu0 }
 0x221   :  { %2840 = vmatpush1.msra.mxu1 %v8694_v3 }
 0x222   :  { %2841 = vmatprep.subr.mxu1 %v8689_v54  ;;  %v8708_v2 = vpop.f32.mrf.mxu0 }
 0x223   :  { %2842 = vmatpush1.msra.mxu1 %v8702_v30 }
 0x224   :  { %2843 = vmatprep.subr.mxu1 %v8697_v12  ;;  %v8717_v49 = vpop.f32.mrf.mxu0 }
 0x225   :  { %2844 = vmatpush1.msra.mxu1 %v8710_v51 }
 0x226   :  { %2845 = vmatprep.subr.mxu1 %v8705_v35  ;;  %v8727_v21 = vpop.f32.mrf.mxu0 }
 0x227   :  { %2846 = vmatpush1.msra.mxu1 %v8719_v0 }
 0x228   :  { %2847 = vmatprep.subr.mxu1 %v8714_v15  ;;  %v8739_v42 = vpop.f32.mrf.mxu0 }
 0x229   :  { %2848 = vmatpush1.msra.mxu1 %v8731_v62 }
 0x22a   :  { %2849 = vmatprep.subr.mxu1 %v8724_v18  ;;  %v8747_v58 = vpop.f32.mrf.mxu0 }
 0x22b   :  { %2850 = vmatpush1.msra.mxu1 %v8743_v26 }
 0x22c   :  { %2851 = vmatprep.subr.mxu1 %v8736_v47  ;;  %v8759_v6 = vpop.f32.mrf.mxu0 }
 0x22d   :  { %2852 = vmatpush1.msra.mxu1 %v8751_v61 }
 0x22e   :  { %2853 = vmatprep.subr.mxu1 %v8756_v13  ;;  %v8771_v46 = vpop.f32.mrf.mxu0 }
 0x22f   :  { %2854 = vmatpush1.msra.mxu1 %v8763_v5 }
 0x230   :  { %2855 = vmatprep.subr.mxu1 %v8768_v25  ;;  %v8783_v17 = vpop.f32.mrf.mxu0 }
 0x231   :  { %2856 = vmatpush1.msra.mxu1 %v8775_v24 }
 0x232   :  { %2857 = vmatprep.subr.mxu1 %v8780_v34  ;;  %v8795_v27 = vpop.f32.mrf.mxu0  ;;  %v11112_v34 = vld [vmem:[#allocation4_spill] sm:$0xff] }
 0x233   :  { %2858 = vmatpush1.msra.mxu1 %v8787_v7 }
 0x234   :  { %2859 = vmatprep.subr.mxu1 %v8792_v38  ;;  %v8803_v63 = vpop.f32.mrf.mxu0  ;;  %v11110_v38 = vld [vmem:[#allocation6_spill] sm:$0xff] }
 0x235   :  { %2860 = vmatpush1.msra.mxu1 %v8799_v43 }
 0x236   :  { %5643 = vmatmul.mubr.msk.f32.vlgmr.msra.gmra.mxu1 %vm2272_vm3, %v8809_v33  ;;  %3063 = vmatprep.subr.mxu1 %v11089_v23  ;;  %v8814_v59 = vpop.f32.mrf.mxu0  ;;  %v11100_v23 = vld [vmem:[#allocation48_spill] sm:$0xff] }
 0x237   :  { %3064 = vmatpush1.msra.mxu1 %v11090_v29  ;;  %2899 = vmatprep.mubr.f32.mxu1 %v10916_v45  ;;  %v8851_v29 = vld [vmem:[%s10700_s2 + $0x18] sm:$0xff] }
 0x238   :  { %3065 = vmatprep.subr.mxu1 %v11091_v37  ;;  %v8819_v1 = vpop.f32.mrf.mxu0  ;;  %v11101_v37 = vld [vmem:[#allocation49_spill] sm:$0xff] }
 0x239   :  { %3066 = vmatpush1.msra.mxu1 %v11092_v10 }
 0x23a   :  { %5644 = vmatmul.mubr.msk.f32.gmra.mxu1 %vm2272_vm3, %v8825_v39  ;;  %3067 = vmatprep.subr.mxu1 %v11093_v60  ;;  %v8830_v31 = vpop.f32.mrf.mxu0  ;;  %v11102_v60 = vld [vmem:[#allocation50_spill] sm:$0xff] }
 0x23b   :  { %3068 = vmatpush1.msra.mxu1 %v11094_v50  ;;  %2905 = vmatprep.mubr.f32.mxu1 %v10916_v45  ;;  %v11103_v50 = vld [vmem:[#allocation51_spill] sm:$0xff] }
 0x23c   :  { %3069 = vmatprep.subr.mxu1 %v11095_v40  ;;  %v2062_v32 = vpop.f32.mrf.mxu0 }
 0x23d   :  { %3070 = vmatpush1.msra.mxu1 %v11096_v20  ;;  %v11104_v20 = vld [vmem:[#allocation52_spill] sm:$0xff] }
 0x23e   :  { %5645 = vmatmul.mubr.msk.f32.gmra.mxu1 %vm2272_vm3, %v8839_v55  ;;  %3071 = vmatprep.subr.mxu1 %v11097_v52  ;;  %v2066_v16 = vpop.f32.mrf.mxu0  ;;  %v8863_v52 = vld [vmem:[%s10700_s2 + $0x20] sm:$0xff] }
 0x23f   :  { %3072 = vmatpush1.msra.mxu1 %v11098_v57  ;;  %2911 = vmatprep.mubr.f32.mxu1 %v10916_v45  ;;  %v11105_v57 = vld [vmem:[#allocation11_spill] sm:$0xff] }
 0x240   :  { %3073 = vmatprep.subr.mxu1 %v11099_v53  ;;  %v2068_v28 = vpop.f32.mrf.mxu0 }
 0x241   :  { %3074 = vmatpush1.msra.mxu1 %v11100_v23  ;;  %v11106_v23 = vld [vmem:[#allocation10_spill] sm:$0xff] }
 0x242   :  { %5646 = vmatmul.mubr.msk.f32.gmra.mxu1 %vm2272_vm3, %v8851_v29  ;;  %3075 = vmatprep.subr.mxu1 %v11101_v37  ;;  %v2072_v10 = vpop.f32.mrf.mxu0  ;;  %v11107_v37 = vld [vmem:[#allocation9_spill] sm:$0xff] }
 0x243   :  { %3076 = vmatpush1.msra.mxu1 %v11102_v60  ;;  %2917 = vmatprep.mubr.f32.mxu1 %v10916_v45 }
 0x244   :  { %3077 = vmatprep.subr.mxu1 %v11103_v50  ;;  %v2074_v40 = vpop.f32.mrf.mxu0  ;;  %v11108_v50 = vld [vmem:[#allocation8_spill] sm:$0xff] }
 0x245   :  { %3078 = vmatpush1.msra.mxu1 %v11104_v20  ;;  %v11109_v20 = vld [vmem:[#allocation7_spill] sm:$0xff] }
 0x246   :  { %5647 = vmatmul.mubr.msk.f32.gmra.mxu1 %vm2272_vm3, %v8863_v52  ;;  %3079 = vmatprep.subr.mxu1 %v11105_v57  ;;  %v2078_v53 = vpop.f32.mrf.mxu0  ;;  %v11111_v57 = vld [vmem:[#allocation5_spill] sm:$0xff] }
 0x247   :  { %3080 = vmatpush1.msra.mxu1 %v11106_v23  ;;  %2923 = vmatprep.mubr.f32.mxu1 %v10916_v45 }
 0x248   :  { %3081 = vmatprep.subr.mxu1 %v11107_v37  ;;  %v2080_v60 = vpop.f32.mrf.mxu0  ;;  %v11113_v37 = vld [vmem:[#allocation3_spill] sm:$0xff] }
 0x249   :  { %3082 = vmatpush1.msra.mxu1 %v11108_v50  ;;  %v8886_v50 = vmax.f32 %v2078_v53, %v2080_v60  ;;  %v11116_v53 = vld [vmem:[#allocation22_spill] sm:$0xff]  ;;  %v8908_v60 = vmax.f32 %v2066_v16, %v2068_v28 }
 0x24a   :  { %5648 = vmatmul.mubr.msk.f32.gmra.mxu1 %vm2272_vm3, %v11084_v11  ;;  %3083 = vmatprep.subr.mxu1 %v11109_v20  ;;  %v2084_v43 = vpop.f32.mrf.mxu0  ;;  %v8884_v11 = vpop.f32.mrf.mxu1  ;;  %v11114_v20 = vld [vmem:[#allocation2_spill] sm:$0xff] }
 0x24b   :  { %3084 = vmatpush1.msra.mxu1 %v11110_v38  ;;  %2929 = vmatprep.mubr.f32.mxu1 %v10916_v45  ;;  %v8893_v38 = vld [vmem:[%s10701_s3] sm:$0xff] }
 0x24c   :  { %3085 = vmatprep.subr.mxu1 %v11111_v57  ;;  %v2086_v23 = vpop.f32.mrf.mxu0  ;;  %v11117_v57 = vld [vmem:[#allocation70_spill] sm:$0xff] }
 0x24d   :  { %v8878_v7 = vmax.f32 %v2084_v43, %v2086_v23  ;;  %3086 = vmatpush1.msra.mxu1 %v11112_v34  ;;  %v11115_v43 = vld [vmem:[#allocation69_spill] sm:$0xff]  ;;  %v8904_v34 = vpop.f32.mrf.mxu1  ;;  %v8920_v23 = vmax.f32 %v8830_v31, %v2062_v32  ;;  %v11120_v28 = vld [vmem:[#allocation74_spill] sm:$0xff]  ;;  %v8940_v32 = vld [vmem:[%s10701_s3 + $0x10] sm:$0xff] }
 0x24e   :  { %5649 = vmatmul.mubr.msk.f32.gmra.mxu1 %vm2272_vm3, %v8081_v36  ;;  %3087 = vmatprep.subr.mxu1 %v11113_v37  ;;  %v8897_v36 = vmax.f32 %v2072_v10, %v2074_v40  ;;  %v8915_v10 = vld [vmem:[%s10701_s3 + $0x8] sm:$0xff]  ;;  %v11121_v31 = vld [vmem:[#allocation73_spill] sm:$0xff] }
 0x24f   :  { %3088 = vmatpush1.msra.mxu1 %v11114_v20  ;;  %5869 = vmatpush3.msra.mxu0 %v8878_v7  ;;  %v11118_v40 = vld [vmem:[#allocation23_spill] sm:$0xff]  ;;  %v8924_v16 = vpop.f32.mrf.mxu1  ;;  %v8933_v20 = vmax.f32 %v8814_v59, %v8819_v1 }
 0x250   :  { %3277 = vmatprep.subr.mxu1 %v11115_v43  ;;  %5870 = vmatprep.subr.mxu0 %v10916_v45  ;;  %v11119_v37 = vld [vmem:[#allocation71_spill] sm:$0xff]  ;;  %v11122_v43 = vld [vmem:[#allocation76_spill] sm:$0xff] }
 0x251   :  { %3121 = vmatprep.mubr.f32.mxu1 %v10916_v45  ;;  %5871 = vmatpush3.msra.mxu0 %v8886_v50  ;;  %v11123_v59 = vld [vmem:[#allocation75_spill] sm:$0xff] }
 0x252   :  { %5657 = vmatmul.mubr.msk.f32.vlgmr.msra.gmra.mxu1 %vm2272_vm3, %v8893_v38  ;;  %5872 = vmatprep.subr.mxu0 %v10916_v45  ;;  %v11124_v1 = vld [vmem:[#allocation79_spill] sm:$0xff] }
 0x253   :  { %3278 = vmatpush1.msra.mxu1 %v11116_v53  ;;  %5873 = vmatpush3.msra.mxu0 %v8897_v36  ;;  %v8944_v53 = vpop.f32.mrf.mxu1 }
 0x254   :  { %3279 = vmatprep.subr.mxu1 %v11117_v57  ;;  %5874 = vmatprep.subr.mxu0 %v10916_v45  ;;  %v8948_v57 = vmax.f32 %v8795_v27, %v8803_v63  ;;  %v8966_v27 = vld [vmem:[%s10701_s3 + $0x18] sm:$0xff] }
 0x255   :  { %3280 = vmatpush1.msra.mxu1 %v11118_v40  ;;  %3127 = vmatprep.mubr.f32.mxu1 %v10916_v45  ;;  %v8959_v40 = vmax.f32 %v8771_v46, %v8783_v17  ;;  %v8968_v63 = vpop.f32.mrf.mxu1  ;;  %v11127_v46 = vld [vmem:[#allocation80_spill] sm:$0xff]  ;;  %v11128_v17 = vld [vmem:[#allocation83_spill] sm:$0xff] }
 0x256   :  { %3281 = vmatprep.subr.mxu1 %v11119_v37  ;;  %5875 = vmatpush3.msra.mxu0 %v8908_v60  ;;  %v11125_v37 = vld [vmem:[#allocation78_spill] sm:$0xff] }
 0x257   :  { %5658 = vmatmul.mubr.msk.f32.gmra.mxu1 %vm2272_vm3, %v8915_v10  ;;  %5876 = vmatprep.subr.mxu0 %v10916_v45 }
 0x258   :  { %3282 = vmatpush1.msra.mxu1 %v11120_v28  ;;  %5877 = vmatpush3.msra.mxu0 %v8920_v23  ;;  %v11126_v28 = vld [vmem:[#allocation81_spill] sm:$0xff] }
 0x259   :  { %3283 = vmatprep.subr.mxu1 %v11121_v31  ;;  %5878 = vmatprep.subr.mxu0 %v10916_v45  ;;  %v8974_v31 = vmax.f32 %v8747_v58, %v8759_v6  ;;  %v11129_v58 = vld [vmem:[#allocation82_spill] sm:$0xff] }
 0x25a   :  { %3284 = vmatpush1.msra.mxu1 %v11122_v43  ;;  %3133 = vmatprep.mubr.f32.mxu1 %v10916_v45  ;;  %v8983_v43 = vpop.f32.mrf.mxu1  ;;  %v8994_v6 = vld [vmem:[%s10701_s3 + $0x20] sm:$0xff] }
 0x25b   :  { %3285 = vmatprep.subr.mxu1 %v11123_v59  ;;  %5879 = vmatpush3.msra.mxu0 %v8933_v20  ;;  %v8987_v59 = vmax.f32 %v8727_v21, %v8739_v42  ;;  %v11132_v42 = vld [vmem:[#allocation86_spill] sm:$0xff] }
 0x25c   :  { %5659 = vmatmul.mubr.msk.f32.gmra.mxu1 %vm2272_vm3, %v8940_v32  ;;  %5880 = vmatprep.subr.mxu0 %v10916_v45  ;;  %v9007_v21 = vpop.f32.mrf.mxu1 }
 0x25d   :  { %3286 = vmatpush1.msra.mxu1 %v11124_v1  ;;  %5881 = vmatpush3.msra.mxu0 %v8948_v57  ;;  %v11130_v1 = vld [vmem:[#allocation85_spill] sm:$0xff] }
 0x25e   :  { %3287 = vmatprep.subr.mxu1 %v11125_v37  ;;  %5882 = vmatprep.subr.mxu0 %v10916_v45  ;;  %v9000_v37 = vmax.f32 %v8708_v2, %v8717_v49  ;;  %v11133_v2 = vld [vmem:[#allocation87_spill] sm:$0xff] }
 0x25f   :  { %3288 = vmatpush1.msra.mxu1 %v11126_v28  ;;  %3139 = vmatprep.mubr.f32.mxu1 %v10916_v45  ;;  %v11131_v28 = vld [vmem:[#allocation84_spill] sm:$0xff]  ;;  %v9020_v49 = vld [vmem:[%s10701_s3 + $0x28] sm:$0xff] }
 0x260   :  { %3289 = vmatprep.subr.mxu1 %v11127_v46  ;;  %5883 = vmatpush3.msra.mxu0 %v8959_v40  ;;  %v9013_v46 = vmax.f32 %v8692_v9, %v8700_v19  ;;  %v9030_v9 = vpop.f32.mrf.mxu1  ;;  %v11136_v19 = vld [vmem:[#allocation53_spill] sm:$0xff] }
 0x261   :  { %5660 = vmatmul.mubr.msk.f32.gmra.mxu1 %vm2272_vm3, %v8966_v27  ;;  %5884 = vmatprep.subr.mxu0 %v10916_v45 }
 0x262   :  { %3290 = vmatpush1.msra.mxu1 %v11128_v17  ;;  %5885 = vmatpush3.msra.mxu0 %v8974_v31  ;;  %v11134_v17 = vld [vmem:[#allocation54_spill] sm:$0xff] }
 0x263   :  { %3291 = vmatprep.subr.mxu1 %v11129_v58  ;;  %5886 = vmatprep.subr.mxu0 %v10916_v45  ;;  %v9026_v58 = vmax.f32 %v8679_v48, %v8684_v14  ;;  %v9043_v14 = vld [vmem:[%s10701_s3 + $0x30] sm:$0xf]  ;;  %v11138_v48 = vld [vmem:[#allocation14_spill] sm:$0xff] }
 0x264   :  { %3292 = vmatpush1.msra.mxu1 %v11130_v1  ;;  %3145 = vmatprep.mubr.f32.mxu1 %v10916_v45  ;;  %v11135_v1 = vld [vmem:[#allocation15_spill] sm:$0xff] }
 0x265   :  { %3293 = vmatprep.subr.mxu1 %v11131_v28  ;;  %5887 = vmatpush3.msra.mxu0 %v8987_v59  ;;  %v11137_v28 = vld [vmem:[#allocation16_spill] sm:$0xff] }
 0x266   :  { %5661 = vmatmul.mubr.msk.f32.gmra.mxu1 %vm2272_vm3, %v8994_v6  ;;  %5888 = vmatprep.subr.mxu0 %v10916_v45 }
 0x267   :  { %3294 = vmatpush1.msra.mxu1 %v11132_v42  ;;  %5889 = vmatpush3.msra.mxu0 %v9000_v37  ;;  %v9047_v42 = vpop.f32.mrf.mxu1 }
 0x268   :  { %3295 = vmatprep.subr.mxu1 %v11133_v2  ;;  %5890 = vmatprep.subr.mxu0 %v10916_v45  ;;  %v11139_v2 = vld [vmem:[#allocation20_spill] sm:$0xff] }
 0x269   :  { %3296 = vmatpush1.msra.mxu1 %v11134_v17  ;;  %3151 = vmatprep.mubr.f32.mxu1 %v10916_v45  ;;  %v11140_v17 = vld [vmem:[#allocation21_spill] sm:$0xff] }
 0x26a   :  { %3297 = vmatprep.subr.mxu1 %v11135_v1  ;;  %5891 = vmatpush3.msra.mxu0 %v9013_v46  ;;  %v11141_v1 = vld [vmem:[#allocation19_spill] sm:$0xff] }
 0x26b   :  { %5662 = vmatmul.mubr.msk.f32.gmra.mxu1 %vm2272_vm3, %v9020_v49  ;;  %5892 = vmatprep.subr.mxu0 %v10916_v45 }
 0x26c   :  { %3298 = vmatpush1.msra.mxu1 %v11136_v19  ;;  %5893 = vmatpush3.msra.mxu0 %v9026_v58  ;;  %v11143_v19 = vld [vmem:[#allocation17_spill] sm:$0xff] }
 0x26d   :  { %3299 = vmatprep.subr.mxu1 %v11137_v28  ;;  %5895 = vmatmul.mubr.msk.f32.vlgmr.msra.gmra.mxu0 %vm2272_vm3, %v8809_v33  ;;  %v11142_v33 = vld [vmem:[#allocation12_spill] sm:$0xff]  ;;  %v9059_v28 = vpop.f32.mrf.mxu1 }
 0x26e   :  { %3300 = vmatpush1.msra.mxu1 %v11138_v48  ;;  %3157 = vmatprep.mubr.f32.mxu1 %v10916_v45  ;;  %v11144_v48 = vld [vmem:[#allocation56_spill] sm:$0xff] }
 0x26f   :  { %3170 = vmatprep.subr.mxu0 %v11139_v2  ;;  %3301 = vmatprep.subr.mxu1 %v11140_v17  ;;  %v11145_v2 = vld [vmem:[#allocation55_spill] sm:$0xff]  ;;  %v11146_v17 = vld [vmem:[#allocation58_spill] sm:$0xff] }
 0x270   :  { %5663 = vmatmul.mubr.msk.f32.gmra.mxu1 %vm2272_vm3, %v9043_v14  ;;  %3171 = vmatpush1.msra.mxu0 %v11141_v1  ;;  %v11148_v1 = vld [vmem:[#allocation57_spill] sm:$0xff] }
 0x271   :  { %3302 = vmatpush1.msra.mxu1 %v11142_v33  ;;  %3172 = vmatprep.subr.mxu0 %v11143_v19  ;;  %v9071_v33 = vpop.f32.mrf.mxu1  ;;  %v11149_v19 = vld [vmem:[#allocation109_spill] sm:$0xff] }
 0x272   :  { %3491 = vmatprep.subr.mxu1 %v8489_v44  ;;  %5897 = vmatprep.mubr.msk.f32.mxu0 %vm6049_vm4, %v10916_v45  ;;  %v11147_v44 = vld [vmem:[#allocation110_spill] sm:$0xff] }
 0x273   :  { %3173 = vmatpush1.msra.mxu0 %v11144_v48  ;;  %3335 = vmatprep.mubr.f32.mxu1 %v10916_v45  ;;  %v11150_v48 = vld [vmem:[#allocation60_spill] sm:$0xff] }
 0x274   :  { %5898 = vmatmul.mubr.msk.f32.gmra.mxu0 %vm2272_vm3, %v8825_v39  ;;  %3174 = vmatprep.subr.mxu0 %v11145_v2  ;;  %v11151_v39 = vld [vmem:[#allocation112_spill] sm:$0xff]  ;;  %v11152_v2 = vld [vmem:[#allocation59_spill] sm:$0xff] }
 0x275   :  { %3175 = vmatpush1.msra.mxu0 %v11146_v17  ;;  %5671 = vmatmul.mubr.msk.f32.vlgmr.msra.gmra.mxu1 %vm2272_vm3, %v8893_v38  ;;  %v11153_v17 = vld [vmem:[#allocation111_spill] sm:$0xff] }
 0x276   :  { %3492 = vmatpush1.msra.mxu1 %v11147_v44  ;;  %3176 = vmatprep.subr.mxu0 %v11148_v1  ;;  %v9083_v44 = vpop.f32.mrf.mxu1  ;;  %v11154_v1 = vld [vmem:[#allocation62_spill] sm:$0xff] }
 0x277   :  { %3493 = vmatprep.subr.mxu1 %v11149_v19  ;;  %5900 = vmatprep.mubr.msk.f32.mxu0 %vm6049_vm4, %v10916_v45  ;;  %v11155_v19 = vld [vmem:[#allocation114_spill] sm:$0xff] }
 0x278   :  { %3177 = vmatpush1.msra.mxu0 %v11150_v48  ;;  %3494 = vmatpush1.msra.mxu1 %v11151_v39  ;;  %v11156_v48 = vld [vmem:[#allocation61_spill] sm:$0xff] }
 0x279   :  { %5901 = vmatmul.mubr.msk.f32.gmra.mxu0 %vm2272_vm3, %v8839_v55  ;;  %3178 = vmatprep.subr.mxu0 %v11152_v2  ;;  %v11157_v39 = vld [vmem:[#allocation113_spill] sm:$0xff]  ;;  %v11158_v55 = vld [vmem:[#allocation63_spill] sm:$0xff]  ;;  %v11159_v2 = vld [vmem:[#allocation116_spill] sm:$0xff] }
 0x27a   :  { %3341 = vmatprep.mubr.f32.mxu1 %v10916_v45  ;;  %3495 = vmatprep.subr.mxu1 %v11153_v17  ;;  %v9095_v17 = vpop.f32.mrf.mxu1 }
 0x27b   :  { %3179 = vmatpush1.msra.mxu0 %v11154_v1  ;;  %5672 = vmatmul.mubr.msk.f32.gmra.mxu1 %vm2272_vm3, %v8915_v10  ;;  %11160 = vst [vmem:[#allocation31_spill] sm:$0xff] %v9095_v17  ;;  %v11161_v1 = vld [vmem:[#allocation64_spill] sm:$0xff]  ;;  %v11166_v17 = vld [vmem:[#allocation117_spill] sm:$0xff] }
 0x27c   :  { %3496 = vmatpush1.msra.mxu1 %v11155_v19  ;;  %3180 = vmatprep.subr.mxu0 %v11156_v48  ;;  %v11162_v19 = vld [vmem:[#allocation115_spill] sm:$0xff]  ;;  %v11163_v48 = vld [vmem:[#allocation65_spill] sm:$0xff] }
 0x27d   :  { %3497 = vmatprep.subr.mxu1 %v11157_v39  ;;  %5903 = vmatprep.mubr.msk.f32.mxu0 %vm6049_vm4, %v10916_v45  ;;  %v11164_v39 = vld [vmem:[#allocation118_spill] sm:$0xff] }
 0x27e   :  { %3181 = vmatpush1.msra.mxu0 %v11158_v55  ;;  %3498 = vmatpush1.msra.mxu1 %v11159_v2  ;;  %v11165_v55 = vld [vmem:[#allocation45_spill] sm:$0xff]  ;;  %v9107_v2 = vpop.f32.mrf.mxu1 }
 0x27f   :  { %5904 = vmatmul.mubr.msk.f32.gmra.mxu0 %vm2272_vm3, %v8851_v29  ;;  %3182 = vmatprep.subr.mxu0 %v11161_v1  ;;  %v11167_v29 = vld [vmem:[#allocation44_spill] sm:$0xff] }
 0x280   :  { %3347 = vmatprep.mubr.f32.mxu1 %v10916_v45  ;;  %3499 = vmatprep.subr.mxu1 %v11162_v19  ;;  %v11168_v1 = vld [vmem:[#allocation120_spill] sm:$0xff]  ;;  %v11169_v19 = vld [vmem:[#allocation39_spill] sm:$0xff] }
 0x281   :  { %3183 = vmatpush1.msra.mxu0 %v11163_v48  ;;  %5673 = vmatmul.mubr.msk.f32.gmra.mxu1 %vm2272_vm3, %v8940_v32  ;;  %v11170_v48 = vld [vmem:[#allocation119_spill] sm:$0xff] }
 0x282   :  { %3500 = vmatpush1.msra.mxu1 %v11164_v39  ;;  %3184 = vmatprep.subr.mxu0 %v11165_v55  ;;  %v9119_v39 = vpop.f32.mrf.mxu1  ;;  %v11172_v55 = vld [vmem:[#allocation38_spill] sm:$0xff] }
 0x283   :  { %3501 = vmatprep.subr.mxu1 %v11166_v17  ;;  %5906 = vmatprep.mubr.msk.f32.mxu0 %vm6049_vm4, %v10916_v45  ;;  %11171 = vst [vmem:[#allocation35_spill] sm:$0xff] %v9119_v39  ;;  %v11173_v17 = vld [vmem:[#allocation122_spill] sm:$0xff] }
 0x284   :  { %3185 = vmatpush1.msra.mxu0 %v11167_v29  ;;  %3502 = vmatpush1.msra.mxu1 %v11168_v1  ;;  %v11174_v29 = vld [vmem:[#allocation34_spill] sm:$0xff]  ;;  %v11175_v1 = vld [vmem:[#allocation121_spill] sm:$0xff] }
 0x285   :  { %5907 = vmatmul.mubr.msk.f32.gmra.mxu0 %vm2272_vm3, %v8863_v52  ;;  %3186 = vmatprep.subr.mxu0 %v11169_v19  ;;  %v11176_v52 = vld [vmem:[#allocation33_spill] sm:$0xff]  ;;  %v11177_v19 = vld [vmem:[#allocation124_spill] sm:$0xff]  ;;  %v11185_v39 = vld [vmem:[#allocation126_spill] sm:$0xff] }
 0x286   :  { %3353 = vmatprep.mubr.f32.mxu1 %v10916_v45  ;;  %3503 = vmatprep.subr.mxu1 %v11170_v48  ;;  %v9131_v48 = vpop.f32.mrf.mxu1 }
 0x287   :  { %3187 = vmatpush1.msra.mxu0 %v11172_v55  ;;  %5674 = vmatmul.mubr.msk.f32.gmra.mxu1 %vm2272_vm3, %v8966_v27  ;;  %11178 = vst [vmem:[#allocation32_spill] sm:$0xff] %v9131_v48  ;;  %v6034_v55 = vld [vmem:[%s10700_s2 + $0x28] sm:$0xff] }
 0x288   :  { %3504 = vmatpush1.msra.mxu1 %v11173_v17  ;;  %3188 = vmatprep.subr.mxu0 %v11174_v29  ;;  %v11179_v17 = vld [vmem:[#allocation30_spill] sm:$0xff]  ;;  %v11180_v29 = vld [vmem:[#allocation123_spill] sm:$0xff]  ;;  %v9145_v48 = vpop.f32.mrf.mxu1 }
 0x289   :  { %3505 = vmatprep.subr.mxu1 %v11175_v1  ;;  %5909 = vmatprep.mubr.msk.f32.mxu0 %vm6049_vm4, %v10916_v45  ;;  %v11181_v1 = vld [vmem:[#allocation29_spill] sm:$0xff]  ;;  %11184 = vst [vmem:[#allocation37_spill] sm:$0xff] %v9145_v48  ;;  %v11193_v48 = vld [vmem:[#allocation130_spill] sm:$0xff] }
 0x28a   :  { %3189 = vmatpush1.msra.mxu0 %v11176_v52  ;;  %3506 = vmatpush1.msra.mxu1 %v11177_v19  ;;  %v11182_v52 = vld [vmem:[#allocation125_spill] sm:$0xff]  ;;  %v11183_v19 = vld [vmem:[#allocation28_spill] sm:$0xff] }
 0x28b   :  { %5910 = vmatmul.mubr.msk.f32.gmra.mxu0 %vm2272_vm3, %v6034_v55  ;;  %3190 = vmatprep.subr.mxu0 %v11179_v17  ;;  %v11186_v55 = vld [vmem:[#allocation27_spill] sm:$0xff] }
 0x28c   :  { %3359 = vmatprep.mubr.f32.mxu1 %v10916_v45  ;;  %3507 = vmatprep.subr.mxu1 %v11180_v29  ;;  %v11187_v17 = vld [vmem:[#allocation127_spill] sm:$0xff]  ;;  %v6035_v29 = vld [vmem:[%s10700_s2 + $0x30] sm:$0xf] }
 0x28d   :  { %3191 = vmatpush1.msra.mxu0 %v11181_v1  ;;  %5675 = vmatmul.mubr.msk.f32.gmra.mxu1 %vm2272_vm3, %v8994_v6  ;;  %v11188_v1 = vld [vmem:[#allocation26_spill] sm:$0xff] }
 0x28e   :  { %3508 = vmatpush1.msra.mxu1 %v11182_v52  ;;  %3192 = vmatprep.subr.mxu0 %v11183_v19  ;;  %v11189_v52 = vld [vmem:[#allocation128_spill] sm:$0xff]  ;;  %v11190_v19 = vld [vmem:[#allocation25_spill] sm:$0xff] }
 0x28f   :  { %3509 = vmatprep.subr.mxu1 %v11185_v39  ;;  %5912 = vmatprep.mubr.msk.f32.mxu0 %vm6049_vm4, %v10916_v45  ;;  %v9159_v39 = vpop.f32.mrf.mxu1 }
 0x290   :  { %3193 = vmatpush1.msra.mxu0 %v11186_v55  ;;  %3510 = vmatpush1.msra.mxu1 %v11187_v17  ;;  %v11191_v55 = vld [vmem:[#allocation129_spill] sm:$0xff]  ;;  %v11192_v17 = vld [vmem:[#allocation18_spill] sm:$0xff] }
 0x291   :  { %5913 = vmatmul.mubr.msk.f32.gmra.mxu0 %vm2272_vm3, %v6035_v29  ;;  %3194 = vmatprep.subr.mxu0 %v11188_v1  ;;  %v11194_v29 = vld [vmem:[#allocation131_spill] sm:$0xff]  ;;  %v9171_v1 = vpop.f32.mrf.mxu1 }
 0x292   :  { %3365 = vmatprep.mubr.f32.mxu1 %v10916_v45  ;;  %3511 = vmatprep.subr.mxu1 %v11189_v52  ;;  %11195 = vst [vmem:[#allocation36_spill] sm:$0xff] %v9171_v1  ;;  %v11196_v52 = vld [vmem:[#allocation13_spill] sm:$0xff]  ;;  %v11201_v1 = vld [vmem:[#allocation88_spill] sm:$0xff] }
 0x293   :  { %3195 = vmatpush1.msra.mxu0 %v11190_v19  ;;  %5676 = vmatmul.mubr.msk.f32.gmra.mxu1 %vm2272_vm3, %v9020_v49  ;;  %v11197_v19 = vld [vmem:[#allocation132_spill] sm:$0xff] }
 0x294   :  { %3512 = vmatpush1.msra.mxu1 %v11191_v55  ;;  %3384 = vmatprep.subr.mxu0 %v11192_v17  ;;  %v11198_v55 = vld [vmem:[#allocation24_spill] sm:$0xff]  ;;  %v11200_v17 = vld [vmem:[#allocation89_spill] sm:$0xff] }
 0x295   :  { %3513 = vmatprep.subr.mxu1 %v11193_v48  ;;  %3228 = vmatprep.mubr.f32.mxu0 %v10916_v45  ;;  %v11199_v48 = vld [vmem:[#allocation133_spill] sm:$0xff] }
 0x296   :  { %3514 = vmatpush1.msra.mxu1 %v11194_v29  ;;  %5664 = vmatmul.mubr.msk.f32.vlgmr.msra.gmra.mxu0 %vm2272_vm3, %v8893_v38  ;;  %v9182_v29 = vpop.f32.mrf.mxu1 }
 0x297   :  { %3371 = vmatprep.mubr.f32.mxu1 %v10916_v45  ;;  %3385 = vmatpush1.msra.mxu0 %v11196_v52  ;;  %v11202_v52 = vld [vmem:[#allocation91_spill] sm:$0xff] }
 0x298   :  { %3515 = vmatprep.subr.mxu1 %v11197_v19  ;;  %5677 = vmatmul.mubr.msk.f32.gmra.mxu1 %vm2272_vm3, %v9043_v14  ;;  %v11203_v19 = vld [vmem:[#allocation90_spill] sm:$0xff] }
 0x299   :  { %3386 = vmatprep.subr.mxu0 %v11198_v55  ;;  %3516 = vmatpush1.msra.mxu1 %v11199_v48  ;;  %v11204_v55 = vld [vmem:[#allocation93_spill] sm:$0xff]  ;;  %v9194_v48 = vpop.f32.mrf.mxu1 }
 0x29a   :  { %3387 = vmatpush1.msra.mxu0 %v11200_v17  ;;  %3234 = vmatprep.mubr.f32.mxu0 %v10916_v45  ;;  %v11206_v17 = vld [vmem:[#allocation95_spill] sm:$0xff] }
 0x29b   :  { %3388 = vmatprep.subr.mxu0 %v11201_v1  ;;  %5665 = vmatmul.mubr.msk.f32.gmra.mxu0 %vm2272_vm3, %v8915_v10  ;;  %v11205_v1 = vld [vmem:[#allocation92_spill] sm:$0xff] }
 0x29c   :  { %3389 = vmatpush1.msra.mxu0 %v11202_v52  ;;  %3549 = vmatprep.mubr.f32.mxu1 %v10916_v45  ;;  %v9205_v52 = vpop.f32.mrf.mxu1 }
 0x29d   :  { %5915 = vmatprep.subr.mxu1 %v10916_v45  ;;  %3390 = vmatprep.subr.mxu0 %v11203_v19  ;;  %v11208_v19 = vld [vmem:[#allocation97_spill] sm:$0xff] }
 0x29e   :  { %5685 = vmatmul.mubr.msk.f32.vlgmr.msra.gmra.mxu1 %vm2272_vm3, %v8893_v38  ;;  %3391 = vmatpush1.msra.mxu0 %v11204_v55  ;;  %v9216_v55 = vpop.f32.mrf.mxu1 }
 0x29f   :  { %5916 = vmatpush3.msra.mxu1 %v8878_v7  ;;  %3240 = vmatprep.mubr.f32.mxu0 %v10916_v45  ;;  %v11207_v7 = vld [vmem:[#allocation94_spill] sm:$0xff] }
 0x2a0   :  { %5917 = vmatprep.subr.mxu1 %v10916_v45  ;;  %3392 = vmatprep.subr.mxu0 %v11205_v1  ;;  %v11210_v1 = vld [vmem:[#allocation99_spill] sm:$0xff] }
 0x2a1   :  { %5918 = vmatpush3.msra.mxu1 %v8886_v50  ;;  %5666 = vmatmul.mubr.msk.f32.gmra.mxu0 %vm2272_vm3, %v8940_v32  ;;  %v11209_v50 = vld [vmem:[#allocation96_spill] sm:$0xff] }
 0x2a2   :  { %3393 = vmatpush1.msra.mxu0 %v11206_v17  ;;  %3555 = vmatprep.mubr.f32.mxu1 %v10916_v45  ;;  %v11212_v17 = vld [vmem:[#allocation101_spill] sm:$0xff] }
 0x2a3   :  { %5919 = vmatprep.subr.mxu1 %v10916_v45  ;;  %3394 = vmatprep.subr.mxu0 %v11207_v7  ;;  %v9228_v7 = vpop.f32.mrf.mxu1 }
 0x2a4   :  { %5686 = vmatmul.mubr.msk.f32.gmra.mxu1 %vm2272_vm3, %v8915_v10  ;;  %3395 = vmatpush1.msra.mxu0 %v11208_v19  ;;  %v11214_v19 = vld [vmem:[#allocation102_spill] sm:$0xff] }
 0x2a5   :  { %5920 = vmatpush3.msra.mxu1 %v8897_v36  ;;  %3246 = vmatprep.mubr.f32.mxu0 %v10916_v45  ;;  %v11211_v36 = vld [vmem:[#allocation98_spill] sm:$0xff] }
 0x2a6   :  { %5921 = vmatprep.subr.mxu1 %v10916_v45  ;;  %3396 = vmatprep.subr.mxu0 %v11209_v50  ;;  %v9239_v50 = vpop.f32.mrf.mxu1 }
 0x2a7   :  { %5922 = vmatpush3.msra.mxu1 %v8908_v60  ;;  %5667 = vmatmul.mubr.msk.f32.gmra.mxu0 %vm2272_vm3, %v8966_v27  ;;  %v11213_v60 = vld [vmem:[#allocation100_spill] sm:$0xff] }
 0x2a8   :  { %3397 = vmatpush1.msra.mxu0 %v11210_v1  ;;  %3561 = vmatprep.mubr.f32.mxu1 %v10916_v45  ;;  %v11216_v1 = vld [vmem:[#allocation104_spill] sm:$0xff] }
 0x2a9   :  { %5923 = vmatprep.subr.mxu1 %v10916_v45  ;;  %3398 = vmatprep.subr.mxu0 %v11211_v36  ;;  %v9250_v36 = vpop.f32.mrf.mxu1 }
 0x2aa   :  { %5687 = vmatmul.mubr.msk.f32.gmra.mxu1 %vm2272_vm3, %v8940_v32  ;;  %3399 = vmatpush1.msra.mxu0 %v11212_v17  ;;  %v11218_v17 = vld [vmem:[#allocation106_spill] sm:$0xff] }
 0x2ab   :  { %5924 = vmatpush3.msra.mxu1 %v8920_v23  ;;  %3252 = vmatprep.mubr.f32.mxu0 %v10916_v45  ;;  %v11215_v23 = vld [vmem:[#allocation103_spill] sm:$0xff] }
 0x2ac   :  { %5925 = vmatprep.subr.mxu1 %v10916_v45  ;;  %3400 = vmatprep.subr.mxu0 %v11213_v60  ;;  %v11220_v60 = vld [vmem:[#allocation77_spill] sm:$0xff] }
 0x2ad   :  { %5926 = vmatpush3.msra.mxu1 %v8933_v20  ;;  %5668 = vmatmul.mubr.msk.f32.gmra.mxu0 %vm2272_vm3, %v8994_v6  ;;  %v11217_v20 = vld [vmem:[#allocation105_spill] sm:$0xff] }
 0x2ae   :  { %3401 = vmatpush1.msra.mxu0 %v11214_v19  ;;  %3567 = vmatprep.mubr.f32.mxu1 %v10916_v45  ;;  %v9262_v19 = vpop.f32.mrf.mxu1 }
 0x2af   :  { %5927 = vmatprep.subr.mxu1 %v10916_v45  ;;  %3402 = vmatprep.subr.mxu0 %v11215_v23  ;;  %v11222_v23 = vld [vmem:[#allocation72_spill] sm:$0xff] }
 0x2b0   :  { %5688 = vmatmul.mubr.msk.f32.gmra.mxu1 %vm2272_vm3, %v8966_v27  ;;  %3403 = vmatpush1.msra.mxu0 %v11216_v1  ;;  %v9273_v1 = vpop.f32.mrf.mxu1 }
 0x2b1   :  { %5928 = vmatpush3.msra.mxu1 %v8948_v57  ;;  %3258 = vmatprep.mubr.f32.mxu0 %v10916_v45  ;;  %v11219_v57 = vld [vmem:[#allocation107_spill] sm:$0xff] }
 0x2b2   :  { %5929 = vmatprep.subr.mxu1 %v10916_v45  ;;  %3404 = vmatprep.subr.mxu0 %v11217_v20 }
 0x2b3   :  { %5930 = vmatpush3.msra.mxu1 %v8959_v40  ;;  %5669 = vmatmul.mubr.msk.f32.gmra.mxu0 %vm2272_vm3, %v9020_v49  ;;  %v11221_v40 = vld [vmem:[#allocation108_spill] sm:$0xff] }
 0x2b4   :  { %3405 = vmatpush1.msra.mxu0 %v11218_v17  ;;  %3573 = vmatprep.mubr.f32.mxu1 %v10916_v45 }
 0x2b5   :  { %5931 = vmatprep.subr.mxu1 %v10916_v45  ;;  %3406 = vmatprep.subr.mxu0 %v11219_v57 }
 0x2b6   :  { %5689 = vmatmul.mubr.msk.f32.gmra.mxu1 %vm2272_vm3, %v8994_v6  ;;  %3407 = vmatpush1.msra.mxu0 %v11220_v60 }
 0x2b7   :  { %5932 = vmatpush3.msra.mxu1 %v8974_v31  ;;  %3264 = vmatprep.mubr.f32.mxu0 %v10916_v45  ;;  %v9285_v31 = vpop.f32.mrf.mxu1 }
 0x2b8   :  { %5933 = vmatprep.subr.mxu1 %v10916_v45  ;;  %3408 = vmatprep.subr.mxu0 %v11221_v40 }
 0x2b9   :  { %5934 = vmatpush3.msra.mxu1 %v8987_v59  ;;  %5670 = vmatmul.mubr.msk.f32.gmra.mxu0 %vm2272_vm3, %v9043_v14  ;;  %v9289_v59 = vpop.f32.mrf.mxu0 }
 0x2ba   :  { %3409 = vmatpush1.msra.mxu0 %v11222_v23  ;;  %3579 = vmatprep.mubr.f32.mxu1 %v10916_v45 }
 0x2bb   :  { %5935 = vmatprep.subr.mxu1 %v10916_v45  ;;  %5690 = vmatmul.mubr.msk.f32.gmra.mxu1 %vm2272_vm3, %v9020_v49 }
 0x2bc   :  { %3598 = vmatprep.subr.mxu0 %v8677_v41  ;;  %5936 = vmatpush3.msra.mxu1 %v9000_v37  ;;  %v9298_v41 = vpop.f32.mrf.mxu1 }
 0x2bd   :  { %5937 = vmatprep.subr.mxu1 %v10916_v45  ;;  %3442 = vmatprep.mubr.f32.mxu0 %v10916_v45 }
 0x2be   :  { %5938 = vmatpush3.msra.mxu1 %v9013_v46  ;;  %5678 = vmatmul.mubr.msk.f32.vlgmr.msra.gmra.mxu0 %vm2272_vm3, %v8893_v38 }
 0x2bf   :  { %3585 = vmatprep.mubr.f32.mxu1 %v10916_v45  ;;  %3599 = vmatpush1.msra.mxu0 %v8673_v8  ;;  %v9303_v8 = vpop.f32.mrf.mxu0 }
 0x2c0   :  { %5939 = vmatprep.subr.mxu1 %v10916_v45  ;;  %5691 = vmatmul.mubr.msk.f32.gmra.mxu1 %vm2272_vm3, %v9043_v14 }
 0x2c1   :  { %3600 = vmatprep.subr.mxu0 %v8675_v4  ;;  %5940 = vmatpush3.msra.mxu1 %v9026_v58 }
 0x2c2   :  { %3601 = vmatpush1.msra.mxu0 %v8686_v56  ;;  %3448 = vmatprep.mubr.f32.mxu0 %v10916_v45  ;;  %v9313_v56 = vpop.f32.mrf.mxu1 }
 0x2c3   :  { %3602 = vmatprep.subr.mxu0 %v8681_v22  ;;  %5679 = vmatmul.mubr.msk.f32.gmra.mxu0 %vm2272_vm3, %v8915_v10  ;;  %v9318_v22 = vpop.f32.mrf.mxu0 }
 0x2c4   :  { %3603 = vmatpush1.msra.mxu0 %v8694_v3  ;;  %5941 = vmatprep.mubr.msk.f32.mxu1 %vm6049_vm4, %v10916_v45 }
 0x2c5   :  { %3604 = vmatprep.subr.mxu0 %v8689_v54  ;;  %5942 = vmatmul.mubr.msk.f32.vlgmr.msra.gmra.mxu1 %vm2272_vm3, %v8893_v38  ;;  %v9328_v54 = vpop.f32.mrf.mxu1  ;;  %v9333_v4 = vpop.f32.mrf.mxu0 }
 0x2c6   :  { %3605 = vmatpush1.msra.mxu0 %v8702_v30  ;;  %3454 = vmatprep.mubr.f32.mxu0 %v10916_v45 }
 0x2c7   :  { %3606 = vmatprep.subr.mxu0 %v8697_v12  ;;  %5680 = vmatmul.mubr.msk.f32.gmra.mxu0 %vm2272_vm3, %v8940_v32  ;;  %v9343_v3 = vpop.f32.mrf.mxu1  ;;  %v9348_v12 = vpop.f32.mrf.mxu0 }
 0x2c8   :  { %3607 = vmatpush1.msra.mxu0 %v8710_v51  ;;  %5944 = vmatprep.mubr.msk.f32.mxu1 %vm6049_vm4, %v10916_v45  ;;  %v11223_v51 = vld [vmem:[#allocation66_spill] sm:$0xff] }
 0x2c9   :  { %3608 = vmatprep.subr.mxu0 %v8705_v35  ;;  %5945 = vmatmul.mubr.msk.f32.gmra.mxu1 %vm2272_vm3, %v8915_v10  ;;  %v9358_v30 = vpop.f32.mrf.mxu1  ;;  %v9363_v35 = vpop.f32.mrf.mxu0 }
 0x2ca   :  { %3609 = vmatpush1.msra.mxu0 %v8719_v0  ;;  %3460 = vmatprep.mubr.f32.mxu0 %v10916_v45 }
 0x2cb   :  { %3610 = vmatprep.subr.mxu0 %v8714_v15  ;;  %5681 = vmatmul.mubr.msk.f32.gmra.mxu0 %vm2272_vm3, %v8966_v27  ;;  %v11224_v15 = vld [vmem:[#allocation67_spill] sm:$0xff]  ;;  %v9373_v0 = vpop.f32.mrf.mxu1 }
 0x2cc   :  { %3611 = vmatpush1.msra.mxu0 %v8731_v62  ;;  %5947 = vmatprep.mubr.msk.f32.mxu1 %vm6049_vm4, %v10916_v45  ;;  %11225 = vst [vmem:[#allocation41_spill] sm:$0xff] %v9373_v0  ;;  %v9378_v62 = vpop.f32.mrf.mxu0 }
 0x2cd   :  { %3612 = vmatprep.subr.mxu0 %v8724_v18  ;;  %5948 = vmatmul.mubr.msk.f32.gmra.mxu1 %vm2272_vm3, %v8940_v32  ;;  %v11226_v18 = vld [vmem:[#allocation68_spill] sm:$0xff] }
 0x2ce   :  { %3613 = vmatpush1.msra.mxu0 %v8743_v26  ;;  %3466 = vmatprep.mubr.f32.mxu0 %v10916_v45  ;;  %v9388_v26 = vpop.f32.mrf.mxu1 }
 0x2cf   :  { %3614 = vmatprep.subr.mxu0 %v8736_v47  ;;  %5682 = vmatmul.mubr.msk.f32.gmra.mxu0 %vm2272_vm3, %v8994_v6  ;;  %v11227_v47 = vld [vmem:[#allocation134_spill] sm:$0xff]  ;;  %11228 = vst [vmem:[#allocation40_spill] sm:$0xff] %v9388_v26 }
 0x2d0   :  { %3615 = vmatpush1.msra.mxu0 %v8751_v61  ;;  %5950 = vmatprep.mubr.msk.f32.mxu1 %vm6049_vm4, %v10916_v45  ;;  %v9392_v61 = vpop.f32.mrf.mxu0 }
 0x2d1   :  { %3616 = vmatprep.subr.mxu0 %v8756_v13  ;;  %5951 = vmatmul.mubr.msk.f32.gmra.mxu1 %vm2272_vm3, %v8966_v27  ;;  %v9397_v13 = vpop.f32.mrf.mxu1 }
 0x2d2   :  { %3617 = vmatpush1.msra.mxu0 %v8763_v5  ;;  %3472 = vmatprep.mubr.f32.mxu0 %v10916_v45  ;;  %11229 = vst [vmem:[#allocation43_spill] sm:$0xff] %v9397_v13  ;;  %v9401_v5 = vpop.f32.mrf.mxu0 }
 0x2d3   :  { %3618 = vmatprep.subr.mxu0 %v8768_v25  ;;  %5683 = vmatmul.mubr.msk.f32.gmra.mxu0 %vm2272_vm3, %v9020_v49  ;;  %v9404_v25 = vpop.f32.mrf.mxu1 }
 0x2d4   :  { %3619 = vmatpush1.msra.mxu0 %v8775_v24  ;;  %5953 = vmatprep.mubr.msk.f32.mxu1 %vm6049_vm4, %v10916_v45  ;;  %11230 = vst [vmem:[#allocation42_spill] sm:$0xff] %v9404_v25  ;;  %v9408_v24 = vpop.f32.mrf.mxu0 }
 0x2d5   :  { %3620 = vmatprep.subr.mxu0 %v11223_v51  ;;  %5954 = vmatmul.mubr.msk.f32.gmra.mxu1 %vm2272_vm3, %v8994_v6 }
 0x2d6   :  { %3621 = vmatpush1.msra.mxu0 %v11224_v15  ;;  %3478 = vmatprep.mubr.f32.mxu0 %v10916_v45  ;;  %v9415_v37 = vpop.f32.mrf.mxu0 }
 0x2d7   :  { %3622 = vmatprep.subr.mxu0 %v11226_v18  ;;  %5684 = vmatmul.mubr.msk.f32.gmra.mxu0 %vm2272_vm3, %v9043_v14 }
 0x2d8   :  { %3623 = vmatpush1.msra.mxu0 %v11227_v47  ;;  %5956 = vmatprep.mubr.msk.f32.mxu1 %vm6049_vm4, %v10916_v45  ;;  %v9422_v46 = vpop.f32.mrf.mxu0 }
 0x2d9   :  { %5957 = vmatmul.mubr.msk.f32.gmra.mxu1 %vm2272_vm3, %v9020_v49  ;;  %3656 = vmatprep.mubr.f32.mxu0 %v10916_v45 }
 0x2da   :  { %5959 = vmatprep.mubr.msk.f32.mxu1 %vm6049_vm4, %v10916_v45  ;;  %v9429_v58 = vpop.f32.mrf.mxu0 }
 0x2db   :  { %5692 = vmatmul.mubr.msk.f32.vlgmr.msra.gmra.mxu0 %vm2272_vm3, %v8893_v38  ;;  %v9411_v38 = vpop.f32.mrf.mxu1 }
 0x2dc   :  { %3662 = vmatprep.mubr.f32.mxu0 %v10916_v45  ;;  %11231 = vst [vmem:[#allocation47_spill] sm:$0xff] %v9411_v38  ;;  %v9436_v20 = vpop.f32.mrf.mxu0 }
 0x2dd   :  { %5960 = vmatmul.mubr.msk.f32.gmra.mxu1 %vm2272_vm3, %v9043_v14 }
 0x2de   :  { %v9440_v17 = vpop.f32.mrf.mxu0 }
 0x2df   :  { %5693 = vmatmul.mubr.msk.f32.gmra.mxu0 %vm2272_vm3, %v8915_v10  ;;  %v9418_v10 = vpop.f32.mrf.mxu1 }
 0x2e0   :  { %3668 = vmatprep.mubr.f32.mxu0 %v10916_v45  ;;  %11232 = vst [vmem:[#allocation46_spill] sm:$0xff] %v9418_v10 }
 0x2e3   :  { %5694 = vmatmul.mubr.msk.f32.gmra.mxu0 %vm2272_vm3, %v8940_v32  ;;  %v9425_v32 = vpop.f32.mrf.mxu1 }
 0x2e4   :  { %3674 = vmatprep.mubr.f32.mxu0 %v10916_v45  ;;  %11233 = vst [vmem:[#allocation48_spill] sm:$0xff] %v9425_v32 }
 0x2e7   :  { %5695 = vmatmul.mubr.msk.f32.gmra.mxu0 %vm2272_vm3, %v8966_v27  ;;  %v9432_v27 = vpop.f32.mrf.mxu1 }
 0x2e8   :  { %3680 = vmatprep.mubr.f32.mxu0 %v10916_v45  ;;  %11234 = vst [vmem:[#allocation49_spill] sm:$0xff] %v9432_v27 }
 0x2eb   :  { %5696 = vmatmul.mubr.msk.f32.gmra.mxu0 %vm2272_vm3, %v8994_v6 }
 0x2ec   :  { %3686 = vmatprep.mubr.f32.mxu0 %v10916_v45 }
 0x2ef   :  { %5697 = vmatmul.mubr.msk.f32.gmra.mxu0 %vm2272_vm3, %v9020_v49  ;;  %v9446_v49 = vpop.f32.mrf.mxu0 }
 0x2f0   :  { %3692 = vmatprep.mubr.f32.mxu0 %v10916_v45 }
 0x2f1   :  { %v9452_v51 = vpop.f32.mrf.mxu0 }
 0x2f3   :  { %5698 = vmatmul.mubr.msk.f32.gmra.mxu0 %vm2272_vm3, %v9043_v14  ;;  %v9458_v18 = vpop.f32.mrf.mxu0 }
 0x2f6   :  { %v9438_v6 = vpop.f32.mrf.mxu1 }
 0x2f7   :  { %11235 = vst [vmem:[#allocation50_spill] sm:$0xff] %v9438_v6 }
 0x2f8   :  { %v9442_v57 = vpop.f32.mrf.mxu1 }
 0x2f9   :  { %11236 = vst [vmem:[#allocation51_spill] sm:$0xff] %v9442_v57  ;;  %v9464_v57 = vpop.f32.mrf.mxu0 }
 0x2fa   :  { %v9444_v60 = vpop.f32.mrf.mxu1 }
 0x2fb   :  { %11237 = vst [vmem:[#allocation52_spill] sm:$0xff] %v9444_v60 }
 0x2fc   :  { %v9448_v40 = vpop.f32.mrf.mxu1 }
 0x2fd   :  { %11238 = vst [vmem:[#allocation11_spill] sm:$0xff] %v9448_v40  ;;  %v9470_v40 = vpop.f32.mrf.mxu0 }
 0x2fe   :  { %v9450_v23 = vpop.f32.mrf.mxu1 }
 0x2ff   :  { %11239 = vst [vmem:[#allocation10_spill] sm:$0xff] %v9450_v23 }
 0x300   :  { %v9454_v15 = vpop.f32.mrf.mxu1 }
 0x301   :  { %11240 = vst [vmem:[#allocation9_spill] sm:$0xff] %v9454_v15  ;;  %v9476_v15 = vpop.f32.mrf.mxu0 }
 0x302   :  { %v9456_v14 = vpop.f32.mrf.mxu1 }
 0x303   :  { %11241 = vst [vmem:[#allocation8_spill] sm:$0xff] %v9456_v14 }
 0x304   :  { %v9460_v47 = vpop.f32.mrf.mxu1 }
 0x305   :  { %11242 = vst [vmem:[#allocation7_spill] sm:$0xff] %v9460_v47 }
 0x306   :  { %v9462_v45 = vpop.f32.mrf.mxu1 }
 0x307   :  { %11243 = vst [vmem:[#allocation6_spill] sm:$0xff] %v9462_v45  ;;  %v9481_v45 = vpop.f32.mrf.mxu0 }
 0x308   :  { %v9466_v60 = vpop.f32.mrf.mxu1 }
 0x309   :  { %11244 = vst [vmem:[#allocation5_spill] sm:$0xff] %v9466_v60 }
 0x30a   :  { %v9468_v6 = vpop.f32.mrf.mxu1 }
 0x30b   :  { %11245 = vst [vmem:[#allocation4_spill] sm:$0xff] %v9468_v6 }
 0x30c   :  { %v9472_v23 = vpop.f32.mrf.mxu1 }
 0x30d   :  { %11246 = vst [vmem:[#allocation3_spill] sm:$0xff] %v9472_v23  ;;  %v9486_v23 = vpop.f32.mrf.mxu0 }
 0x30e   :  { %v9474_v27 = vpop.f32.mrf.mxu1 }
 0x30f   :  { %11247 = vst [vmem:[#allocation2_spill] sm:$0xff] %v9474_v27 }
 0x310   :  { %v9478_v14 = vpop.f32.mrf.mxu1 }
 0x311   :  { %11248 = vst [vmem:[#allocation69_spill] sm:$0xff] %v9478_v14 }
 0x312   :  { %v3123_v32 = vpop.f32.mrf.mxu1 }
 0x313   :  { %v3799_v47 = vmax.f32 %v8884_v11, %v3123_v32 }
 0x314   :  { %v3125_v10 = vpop.f32.mrf.mxu1 }
 0x315   :  { %v3890_v38 = vmul.f32 0.2, %v3799_v47  ;;  %v3800_v60 = vmax.f32 %v8904_v34, %v3125_v10  ;;  %v9500_v34 = vpop.f32.mrf.mxu0 }
 0x317   :  { %v9484_v6 = vmax.f32 %v3799_v47, %v3890_v38  ;;  %v3891_v25 = vmul.f32 0.2, %v3800_v60  ;;  %v3129_v13 = vpop.f32.mrf.mxu1 }
 0x318   :  { %v3812_v27 = vmax.f32 %v8924_v16, %v3129_v13 }
 0x319   :  { %11249 = vst [vmem:[#allocation22_spill] sm:$0xff] %v9484_v6  ;;  %4072 = vst [vmem:[%s10702_s8] sm:$0xff] %v9484_v6  ;;  %v9493_v11 = vmax.f32 %v3800_v60, %v3891_v25  ;;  %v3131_v32 = vpop.f32.mrf.mxu1 }
 0x31a   :  { %v3903_v14 = vmul.f32 0.2, %v3812_v27  ;;  %v3813_v26 = vmax.f32 %v8944_v53, %v3131_v32  ;;  %v9512_v32 = vpop.f32.mrf.mxu0 }
 0x31b   :  { %11250 = vst [vmem:[#allocation70_spill] sm:$0xff] %v9493_v11  ;;  %4073 = vst [vmem:[%s10702_s8 + $0x8] sm:$0xff] %v9493_v11  ;;  %v11256_v11 = vld [vmem:[#allocation31_spill] sm:$0xff] }
 0x31c   :  { %v9502_v38 = vmax.f32 %v3812_v27, %v3903_v14  ;;  %v3904_v16 = vmul.f32 0.2, %v3813_v26  ;;  %v3135_v13 = vpop.f32.mrf.mxu1 }
 0x31d   :  { %v3825_v10 = vmax.f32 %v8968_v63, %v3135_v13 }
 0x31e   :  { %11251 = vst [vmem:[#allocation23_spill] sm:$0xff] %v9502_v38  ;;  %4085 = vst [vmem:[%s10702_s8 + $0x68] sm:$0xff] %v9502_v38  ;;  %v9509_v25 = vmax.f32 %v3813_v26, %v3904_v16  ;;  %v3137_v53 = vpop.f32.mrf.mxu1  ;;  %v9527_v16 = vpop.f32.mrf.mxu0 }
 0x31f   :  { %v3916_v60 = vmul.f32 0.2, %v3825_v10  ;;  %v3826_v47 = vmax.f32 %v8983_v43, %v3137_v53 }
 0x320   :  { %4086 = vst [vmem:[%s10702_s8 + $0x70] sm:$0xff] %v9509_v25  ;;  %v9537_v38 = vpop.f32.mrf.mxu0 }
 0x321   :  { %v9518_v27 = vmax.f32 %v3825_v10, %v3916_v60  ;;  %v3917_v63 = vmul.f32 0.2, %v3826_v47  ;;  %v3141_v14 = vpop.f32.mrf.mxu1 }
 0x322   :  { %v3838_v13 = vmax.f32 %v9007_v21, %v3141_v14 }
 0x323   :  { %11252 = vst [vmem:[#allocation71_spill] sm:$0xff] %v9518_v27  ;;  %4098 = vst [vmem:[%s10702_s8 + $0xd0] sm:$0xff] %v9518_v27  ;;  %v9525_v26 = vmax.f32 %v3826_v47, %v3917_v63  ;;  %v3143_v43 = vpop.f32.mrf.mxu1 }
 0x324   :  { %v3929_v53 = vmul.f32 0.2, %v3838_v13  ;;  %v3839_v6 = vmax.f32 %v9030_v9, %v3143_v43 }
 0x325   :  { %4099 = vst [vmem:[%s10702_s8 + $0xd8] sm:$0xff] %v9525_v26 }
 0x326   :  { %v9534_v10 = vmax.f32 %v3838_v13, %v3929_v53  ;;  %v3930_v21 = vmul.f32 0.2, %v3839_v6  ;;  %v3147_v60 = vpop.f32.mrf.mxu1  ;;  %v4176_v13 = vld [vmem:[%s10703_s4 + $0x8] sm:$0xff] }
 0x327   :  { %v3851_v14 = vmax.f32 %v9047_v42, %v3147_v60  ;;  %5714 = vmatprep.mubr.msk.f32.mxu0 %vm4185_vm5, %v4176_v13  ;;  %5727 = vmatprep.mubr.msk.f32.mxu1 %vm4185_vm5, %v4176_v13 }
 0x328   :  { %11253 = vst [vmem:[#allocation74_spill] sm:$0xff] %v9534_v10  ;;  %4111 = vst [vmem:[%s10702_s8 + $0x138] sm:$0xff] %v9534_v10  ;;  %v9543_v47 = vmax.f32 %v3839_v6, %v3930_v21  ;;  %v3149_v9 = vpop.f32.mrf.mxu1  ;;  %v9557_v21 = vpop.f32.mrf.mxu0 }
 0x329   :  { %v3942_v63 = vmul.f32 0.2, %v3851_v14  ;;  %v3852_v43 = vmax.f32 %v9059_v28, %v3149_v9 }
 0x32a   :  { %4112 = vst [vmem:[%s10702_s8 + $0x140] sm:$0xff] %v9543_v47 }
 0x32b   :  { %v9555_v42 = vmax.f32 %v3851_v14, %v3942_v63  ;;  %v3943_v6 = vmul.f32 0.2, %v3852_v43  ;;  %v3153_v53 = vpop.f32.mrf.mxu1 }
 0x32c   :  { %v3864_v28 = vmax.f32 %v9071_v33, %v3153_v53 }
 0x32d   :  { %11254 = vst [vmem:[#allocation73_spill] sm:$0xff] %v9555_v42  ;;  %4124 = vst [vmem:[%s10702_s8 + $0x1a0] sm:$0xff] %v9555_v42  ;;  %v9564_v60 = vmax.f32 %v3852_v43, %v3943_v6  ;;  %v3155_v9 = vpop.f32.mrf.mxu1  ;;  %v9566_v27 = vpop.f32.mrf.mxu0 }
 0x32e   :  { %v3955_v10 = vmul.f32 0.2, %v3864_v28  ;;  %v3865_v14 = vmax.f32 %v9083_v44, %v3155_v9 }
 0x32f   :  { %4125 = vst [vmem:[%s10702_s8 + $0x1a8] sm:$0xff] %v9564_v60  ;;  %v5896_v63 = vpop.f32.mrf.mxu0 }
 0x330   :  { %v9573_v33 = vmax.f32 %v3864_v28, %v3955_v10  ;;  %v3956_v13 = vmul.f32 0.2, %v3865_v14  ;;  %v3159_v53 = vpop.f32.mrf.mxu1 }
 0x331   :  { %v3877_v42 = vmax.f32 %v11256_v11, %v3159_v53 }
 0x332   :  { %11255 = vst [vmem:[#allocation76_spill] sm:$0xff] %v9573_v33  ;;  %4137 = vst [vmem:[%s10702_s8 + $0x208] sm:$0xff] %v9573_v33  ;;  %v9580_v43 = vmax.f32 %v3865_v14, %v3956_v13  ;;  %v3161_v44 = vpop.f32.mrf.mxu1 }
 0x333   :  { %v3968_v6 = vmul.f32 0.2, %v3877_v42  ;;  %v3878_v9 = vmax.f32 %v9107_v2, %v3161_v44 }
 0x334   :  { %4138 = vst [vmem:[%s10702_s8 + $0x210] sm:$0xff] %v9580_v43  ;;  %v9587_v10 = vpop.f32.mrf.mxu0 }
 0x335   :  { %v9589_v28 = vmax.f32 %v3877_v42, %v3968_v6  ;;  %v3969_v11 = vmul.f32 0.2, %v3878_v9  ;;  %v3337_v63 = vpop.f32.mrf.mxu1 }
 0x336   :  { %v3803_v53 = vmax.f32 %v9289_v59, %v3337_v63  ;;  %v5899_v33 = vpop.f32.mrf.mxu0 }
 0x337   :  { %11257 = vst [vmem:[#allocation75_spill] sm:$0xff] %v9589_v28  ;;  %4150 = vst [vmem:[%s10702_s8 + $0x270] sm:$0xf] %v9589_v28  ;;  %v9596_v2 = vmax.f32 %v3878_v9, %v3969_v11  ;;  %v3339_v14 = vpop.f32.mrf.mxu1 }
 0x338   :  { %v3894_v13 = vmul.f32 0.2, %v3803_v53  ;;  %v3804_v44 = vmax.f32 %v9303_v8, %v3339_v14 }
 0x339   :  { %4151 = vst [vmem:[%s10702_s8 + $0x278] sm:$0xf] %v9596_v2  ;;  %v9603_v42 = vpop.f32.mrf.mxu0 }
 0x33a   :  { %11258 = vst [vmem:[#allocation79_spill] sm:$0xff] %v9603_v42  ;;  %v9605_v59 = vmax.f32 %v3803_v53, %v3894_v13  ;;  %v3895_v33 = vmul.f32 0.2, %v3804_v44 }
 0x33b   :  { %v3343_v6 = vpop.f32.mrf.mxu1  ;;  %v5902_v63 = vpop.f32.mrf.mxu0 }
 0x33c   :  { %4076 = vst [vmem:[%s10702_s8 + $0x20] sm:$0xff] %v9605_v59  ;;  %v3986_v9 = vmax.f32 %v3804_v44, %v3895_v33  ;;  %v3816_v8 = vmax.f32 %v9318_v22, %v3343_v6 }
 0x33d   :  { %v3345_v11 = vpop.f32.mrf.mxu1 }
 0x33e   :  { %4077 = vst [vmem:[%s10702_s8 + $0x28] sm:$0xff] %v3986_v9  ;;  %v3907_v14 = vmul.f32 0.2, %v3816_v8  ;;  %v3817_v53 = vmax.f32 %v9333_v4, %v3345_v11 }
 0x33f   :  { %v9616_v13 = vpop.f32.mrf.mxu0 }
 0x340   :  { %v9618_v28 = vmax.f32 %v3816_v8, %v3907_v14  ;;  %v3908_v63 = vmul.f32 0.2, %v3817_v53 }
 0x341   :  { %v3349_v42 = vpop.f32.mrf.mxu1  ;;  %v5905_v0 = vpop.f32.mrf.mxu0 }
 0x342   :  { %4089 = vst [vmem:[%s10702_s8 + $0x88] sm:$0xff] %v9618_v28  ;;  %v3999_v22 = vmax.f32 %v3817_v53, %v3908_v63  ;;  %v3829_v44 = vmax.f32 %v9348_v12, %v3349_v42 }
 0x343   :  { %v3351_v33 = vpop.f32.mrf.mxu1 }
 0x344   :  { %4090 = vst [vmem:[%s10702_s8 + $0x90] sm:$0xff] %v3999_v22  ;;  %v3920_v4 = vmul.f32 0.2, %v3829_v44  ;;  %v3830_v6 = vmax.f32 %v9363_v35, %v3351_v33  ;;  %4296 = vmatprep.subr.mxu1 %v3999_v22 }
 0x345   :  { %v9629_v8 = vpop.f32.mrf.mxu0  ;;  %4297 = vmatpush1.msra.mxu1 %v9618_v28 }
 0x346   :  { %v9632_v0 = vmax.f32 %v3829_v44, %v3920_v4  ;;  %v3921_v11 = vmul.f32 0.2, %v3830_v6  ;;  %4298 = vmatprep.subr.mxu1 %v3986_v9 }
 0x347   :  { %v3355_v14 = vpop.f32.mrf.mxu1  ;;  %v5908_v53 = vpop.f32.mrf.mxu0  ;;  %4299 = vmatpush1.msra.mxu1 %v9605_v59 }
 0x348   :  { %4102 = vst [vmem:[%s10702_s8 + $0xf0] sm:$0xff] %v9632_v0  ;;  %v9639_v12 = vmax.f32 %v3830_v6, %v3921_v11  ;;  %v3842_v35 = vmax.f32 %v9378_v62, %v3355_v14 }
 0x349   :  { %v3357_v42 = vpop.f32.mrf.mxu1 }
 0x34a   :  { %11259 = vst [vmem:[#allocation78_spill] sm:$0xff] %v9639_v12  ;;  %4103 = vst [vmem:[%s10702_s8 + $0xf8] sm:$0xff] %v9639_v12  ;;  %v3933_v9 = vmul.f32 0.2, %v3842_v35  ;;  %v3843_v63 = vmax.f32 %v9392_v61, %v3357_v42 }
 0x34b   :  { %v9647_v22 = vpop.f32.mrf.mxu0 }
 0x34c   :  { %11260 = vst [vmem:[#allocation81_spill] sm:$0xff] %v9647_v22  ;;  %v9649_v44 = vmax.f32 %v3842_v35, %v3933_v9  ;;  %v3934_v33 = vmul.f32 0.2, %v3843_v63 }
 0x34d   :  { %v3361_v4 = vpop.f32.mrf.mxu1  ;;  %v5911_v53 = vpop.f32.mrf.mxu0 }
 0x34e   :  { %4115 = vst [vmem:[%s10702_s8 + $0x158] sm:$0xff] %v9649_v44  ;;  %v9655_v62 = vmax.f32 %v3843_v63, %v3934_v33  ;;  %v3855_v6 = vmax.f32 %v9401_v5, %v3361_v4 }
 0x34f   :  { %v3363_v11 = vpop.f32.mrf.mxu1 }
 0x350   :  { %11261 = vst [vmem:[#allocation80_spill] sm:$0xff] %v9655_v62  ;;  %4116 = vst [vmem:[%s10702_s8 + $0x160] sm:$0xff] %v9655_v62  ;;  %v3946_v61 = vmul.f32 0.2, %v3855_v6  ;;  %v3856_v14 = vmax.f32 %v9408_v24, %v3363_v11 }
 0x351   :  { %v9663_v35 = vpop.f32.mrf.mxu0 }
 0x352   :  { %11262 = vst [vmem:[#allocation83_spill] sm:$0xff] %v9663_v35  ;;  %v9665_v42 = vmax.f32 %v3855_v6, %v3946_v61  ;;  %v3947_v9 = vmul.f32 0.2, %v3856_v14 }
 0x353   :  { %v3367_v53 = vpop.f32.mrf.mxu1  ;;  %v5914_v12 = vpop.f32.mrf.mxu0 }
 0x354   :  { %4128 = vst [vmem:[%s10702_s8 + $0x1c0] sm:$0xff] %v9665_v42  ;;  %v9671_v5 = vmax.f32 %v3856_v14, %v3947_v9  ;;  %v3868_v63 = vmax.f32 %v9415_v37, %v3367_v53  ;;  %v11264_v12 = vld [vmem:[#allocation35_spill] sm:$0xff]  ;;  %v11265_v53 = vld [vmem:[#allocation32_spill] sm:$0xff] }
 0x355   :  { %v3369_v33 = vpop.f32.mrf.mxu1 }
 0x356   :  { %11263 = vst [vmem:[#allocation82_spill] sm:$0xff] %v9671_v5  ;;  %4129 = vst [vmem:[%s10702_s8 + $0x1c8] sm:$0xff] %v9671_v5  ;;  %v3959_v24 = vmul.f32 0.2, %v3868_v63  ;;  %v3869_v4 = vmax.f32 %v9422_v46, %v3369_v33  ;;  %v3230_v6 = vpop.f32.mrf.mxu0 }
 0x357   :  { %v3801_v11 = vmax.f32 %v11264_v12, %v3230_v6 }
 0x358   :  { %v9680_v61 = vmax.f32 %v3868_v63, %v3959_v24  ;;  %v3960_v62 = vmul.f32 0.2, %v3869_v4  ;;  %v3373_v35 = vpop.f32.mrf.mxu1  ;;  %v3232_v14 = vpop.f32.mrf.mxu0 }
 0x359   :  { %v3892_v9 = vmul.f32 0.2, %v3801_v11  ;;  %v3881_v37 = vmax.f32 %v9429_v58, %v3373_v35  ;;  %v3802_v22 = vmax.f32 %v11265_v53, %v3232_v14  ;;  %v11266_v58 = vld [vmem:[#allocation37_spill] sm:$0xff] }
 0x35a   :  { %4141 = vst [vmem:[%s10702_s8 + $0x228] sm:$0xff] %v9680_v61  ;;  %v9688_v5 = vmax.f32 %v3869_v4, %v3960_v62  ;;  %v3375_v46 = vpop.f32.mrf.mxu1 }
 0x35b   :  { %v9690_v33 = vmax.f32 %v3801_v11, %v3892_v9  ;;  %v3972_v63 = vmul.f32 0.2, %v3881_v37  ;;  %v3893_v24 = vmul.f32 0.2, %v3802_v22  ;;  %v3882_v6 = vmax.f32 %v9436_v20, %v3375_v46  ;;  %v3236_v12 = vpop.f32.mrf.mxu0 }
 0x35c   :  { %4142 = vst [vmem:[%s10702_s8 + $0x230] sm:$0xff] %v9688_v5  ;;  %v3814_v35 = vmax.f32 %v11266_v58, %v3236_v12 }
 0x35d   :  { %4074 = vst [vmem:[%s10702_s8 + $0x10] sm:$0xff] %v9690_v33  ;;  %v9702_v62 = vmax.f32 %v3881_v37, %v3972_v63  ;;  %v9704_v4 = vmax.f32 %v3802_v22, %v3893_v24  ;;  %v3973_v11 = vmul.f32 0.2, %v3882_v6  ;;  %v3238_v14 = vpop.f32.mrf.mxu0 }
 0x35e   :  { %v3905_v20 = vmul.f32 0.2, %v3814_v35  ;;  %v3551_v9 = vpop.f32.mrf.mxu1  ;;  %v3815_v53 = vmax.f32 %v9159_v39, %v3238_v14 }
 0x35f   :  { %4154 = vst [vmem:[%s10702_s8 + $0x290] sm:$0xf] %v9702_v62  ;;  %4075 = vst [vmem:[%s10702_s8 + $0x18] sm:$0xff] %v9704_v4  ;;  %v9715_v37 = vmax.f32 %v3882_v6, %v3973_v11  ;;  %v3807_v22 = vmax.f32 %v9440_v17, %v3551_v9  ;;  %5719 = vmatprep.subr.msk.mxu1 %vm144_vm1, %v9702_v62  ;;  %v11267_v6 = vld [vmem:[#allocation36_spill] sm:$0xff] }
 0x360   :  { %v9720_v46 = vmax.f32 %v3814_v35, %v3905_v20  ;;  %v3906_v39 = vmul.f32 0.2, %v3815_v53  ;;  %v3553_v63 = vpop.f32.mrf.mxu1 }
 0x361   :  { %4155 = vst [vmem:[%s10702_s8 + $0x298] sm:$0xf] %v9715_v37  ;;  %v3898_v24 = vmul.f32 0.2, %v3807_v22  ;;  %v3808_v12 = vmax.f32 %v9446_v49, %v3553_v63  ;;  %v3242_v58 = vpop.f32.mrf.mxu0 }
 0x362   :  { %4087 = vst [vmem:[%s10702_s8 + $0x78] sm:$0xff] %v9720_v46  ;;  %v9731_v17 = vmax.f32 %v3815_v53, %v3906_v39  ;;  %v3827_v35 = vmax.f32 %v11267_v6, %v3242_v58 }
 0x363   :  { %v9734_v11 = vmax.f32 %v3807_v22, %v3898_v24  ;;  %v3899_v14 = vmul.f32 0.2, %v3808_v12  ;;  %v3244_v20 = vpop.f32.mrf.mxu0 }
 0x364   :  { %4088 = vst [vmem:[%s10702_s8 + $0x80] sm:$0xff] %v9731_v17  ;;  %v3918_v49 = vmul.f32 0.2, %v3827_v35  ;;  %v3557_v9 = vpop.f32.mrf.mxu1  ;;  %v3828_v63 = vmax.f32 %v9182_v29, %v3244_v20  ;;  %4201 = vmatprep.subr.mxu0 %v9731_v17 }
 0x365   :  { %4080 = vst [vmem:[%s10702_s8 + $0x40] sm:$0xff] %v9734_v11  ;;  %v9746_v53 = vmax.f32 %v3808_v12, %v3899_v14  ;;  %v3820_v22 = vmax.f32 %v9452_v51, %v3557_v9  ;;  %4202 = vmatpush1.msra.mxu0 %v9720_v46 }
 0x366   :  { %v9750_v39 = vmax.f32 %v3827_v35, %v3918_v49  ;;  %v3919_v24 = vmul.f32 0.2, %v3828_v63  ;;  %v3559_v58 = vpop.f32.mrf.mxu1  ;;  %4203 = vmatprep.subr.mxu0 %v9704_v4 }
 0x367   :  { %4081 = vst [vmem:[%s10702_s8 + $0x48] sm:$0xff] %v9746_v53  ;;  %v3911_v29 = vmul.f32 0.2, %v3820_v22  ;;  %v3821_v6 = vmax.f32 %v9458_v18, %v3559_v58  ;;  %v3248_v12 = vpop.f32.mrf.mxu0  ;;  %4204 = vmatpush1.msra.mxu0 %v9690_v33 }
 0x368   :  { %4100 = vst [vmem:[%s10702_s8 + $0xe0] sm:$0xff] %v9750_v39  ;;  %v9763_v51 = vmax.f32 %v3828_v63, %v3919_v24  ;;  %v3840_v35 = vmax.f32 %v9194_v48, %v3248_v12 }
 0x369   :  { %v9766_v14 = vmax.f32 %v3820_v22, %v3911_v29  ;;  %v3912_v20 = vmul.f32 0.2, %v3821_v6  ;;  %v3250_v49 = vpop.f32.mrf.mxu0 }
 0x36a   :  { %4101 = vst [vmem:[%s10702_s8 + $0xe8] sm:$0xff] %v9763_v51  ;;  %v3931_v18 = vmul.f32 0.2, %v3840_v35  ;;  %v3563_v9 = vpop.f32.mrf.mxu1  ;;  %v3841_v58 = vmax.f32 %v9205_v52, %v3250_v49 }
 0x36b   :  { %4093 = vst [vmem:[%s10702_s8 + $0xa8] sm:$0xff] %v9766_v14  ;;  %v9777_v63 = vmax.f32 %v3821_v6, %v3912_v20  ;;  %v3833_v48 = vmax.f32 %v9464_v57, %v3563_v9 }
 0x36c   :  { %v9780_v22 = vmax.f32 %v3840_v35, %v3931_v18  ;;  %v3932_v24 = vmul.f32 0.2, %v3841_v58  ;;  %v3565_v29 = vpop.f32.mrf.mxu1 }
 0x36d   :  { %4094 = vst [vmem:[%s10702_s8 + $0xb0] sm:$0xff] %v9777_v63  ;;  %v3924_v12 = vmul.f32 0.2, %v3833_v48  ;;  %v3834_v52 = vmax.f32 %v9470_v40, %v3565_v29  ;;  %v3254_v49 = vpop.f32.mrf.mxu0 }
 0x36e   :  { %4113 = vst [vmem:[%s10702_s8 + $0x148] sm:$0xff] %v9780_v22  ;;  %v9791_v6 = vmax.f32 %v3841_v58, %v3932_v24  ;;  %v3853_v57 = vmax.f32 %v9216_v55, %v3254_v49 }
 0x36f   :  { %v9794_v35 = vmax.f32 %v3833_v48, %v3924_v12  ;;  %v3925_v20 = vmul.f32 0.2, %v3834_v52  ;;  %v3256_v18 = vpop.f32.mrf.mxu0 }
 0x370   :  { %4114 = vst [vmem:[%s10702_s8 + $0x150] sm:$0xff] %v9791_v6  ;;  %v3944_v40 = vmul.f32 0.2, %v3853_v57  ;;  %v3569_v9 = vpop.f32.mrf.mxu1  ;;  %v3854_v29 = vmax.f32 %v9228_v7, %v3256_v18 }
 0x371   :  { %4106 = vst [vmem:[%s10702_s8 + $0x110] sm:$0xff] %v9794_v35  ;;  %v9805_v58 = vmax.f32 %v3834_v52, %v3925_v20  ;;  %v3846_v55 = vmax.f32 %v9476_v15, %v3569_v9 }
 0x372   :  { %v9808_v48 = vmax.f32 %v3853_v57, %v3944_v40  ;;  %v3945_v24 = vmul.f32 0.2, %v3854_v29  ;;  %v3571_v12 = vpop.f32.mrf.mxu1 }
 0x373   :  { %11268 = vst [vmem:[#allocation85_spill] sm:$0xff] %v9805_v58  ;;  %4107 = vst [vmem:[%s10702_s8 + $0x118] sm:$0xff] %v9805_v58  ;;  %v3937_v49 = vmul.f32 0.2, %v3846_v55  ;;  %v3847_v7 = vmax.f32 %v9481_v45, %v3571_v12  ;;  %v3260_v18 = vpop.f32.mrf.mxu0 }
 0x374   :  { %4126 = vst [vmem:[%s10702_s8 + $0x1b0] sm:$0xff] %v9808_v48  ;;  %v9819_v52 = vmax.f32 %v3854_v29, %v3945_v24  ;;  %v3866_v15 = vmax.f32 %v9239_v50, %v3260_v18 }
 0x375   :  { %v9822_v57 = vmax.f32 %v3846_v55, %v3937_v49  ;;  %v3938_v20 = vmul.f32 0.2, %v3847_v7  ;;  %v3262_v40 = vpop.f32.mrf.mxu0 }
 0x376   :  { %4127 = vst [vmem:[%s10702_s8 + $0x1b8] sm:$0xff] %v9819_v52  ;;  %v3957_v45 = vmul.f32 0.2, %v3866_v15  ;;  %v3575_v9 = vpop.f32.mrf.mxu1  ;;  %v3867_v12 = vmax.f32 %v9250_v36, %v3262_v40 }
 0x377   :  { %4119 = vst [vmem:[%s10702_s8 + $0x178] sm:$0xff] %v9822_v57  ;;  %v9833_v29 = vmax.f32 %v3847_v7, %v3938_v20  ;;  %v3859_v50 = vmax.f32 %v9486_v23, %v3575_v9 }
 0x378   :  { %v9836_v55 = vmax.f32 %v3866_v15, %v3957_v45  ;;  %v3958_v24 = vmul.f32 0.2, %v3867_v12  ;;  %v3577_v49 = vpop.f32.mrf.mxu1 }
 0x379   :  { %11269 = vst [vmem:[#allocation84_spill] sm:$0xff] %v9833_v29  ;;  %4120 = vst [vmem:[%s10702_s8 + $0x180] sm:$0xff] %v9833_v29  ;;  %v3950_v18 = vmul.f32 0.2, %v3859_v50  ;;  %v3860_v36 = vmax.f32 %v9500_v34, %v3577_v49  ;;  %v3266_v40 = vpop.f32.mrf.mxu0 }
 0x37a   :  { %4139 = vst [vmem:[%s10702_s8 + $0x218] sm:$0xff] %v9836_v55  ;;  %v9847_v7 = vmax.f32 %v3867_v12, %v3958_v24  ;;  %v3879_v23 = vmax.f32 %v9262_v19, %v3266_v40 }
 0x37b   :  { %v9850_v15 = vmax.f32 %v3859_v50, %v3950_v18  ;;  %v3951_v20 = vmul.f32 0.2, %v3860_v36  ;;  %v3581_v45 = vpop.f32.mrf.mxu1  ;;  %v3268_v9 = vpop.f32.mrf.mxu0 }
 0x37c   :  { %4140 = vst [vmem:[%s10702_s8 + $0x220] sm:$0xff] %v9847_v7  ;;  %v3970_v34 = vmul.f32 0.2, %v3879_v23  ;;  %v3872_v49 = vmax.f32 %v9512_v32, %v3581_v45  ;;  %v3880_v58 = vmax.f32 %v9273_v1, %v3268_v9 }
 0x37d   :  { %4132 = vst [vmem:[%s10702_s8 + $0x1e0] sm:$0xff] %v9850_v15  ;;  %v9862_v19 = vmax.f32 %v3860_v36, %v3951_v20  ;;  %v3583_v12 = vpop.f32.mrf.mxu1 }
 0x37e   :  { %v9864_v50 = vmax.f32 %v3879_v23, %v3970_v34  ;;  %v3963_v24 = vmul.f32 0.2, %v3872_v49  ;;  %v3971_v18 = vmul.f32 0.2, %v3880_v58  ;;  %v3873_v40 = vmax.f32 %v9527_v16, %v3583_v12  ;;  %v3444_v29 = vpop.f32.mrf.mxu0 }
 0x37f   :  { %4133 = vst [vmem:[%s10702_s8 + $0x1e8] sm:$0xff] %v9862_v19  ;;  %v3805_v1 = vmax.f32 %v9285_v31, %v3444_v29 }
 0x380   :  { %4152 = vst [vmem:[%s10702_s8 + $0x280] sm:$0xf] %v9864_v50  ;;  %v9876_v32 = vmax.f32 %v3872_v49, %v3963_v24  ;;  %v9878_v36 = vmax.f32 %v3880_v58, %v3971_v18  ;;  %v3964_v23 = vmul.f32 0.2, %v3873_v40  ;;  %v3587_v20 = vpop.f32.mrf.mxu1  ;;  %v3446_v16 = vpop.f32.mrf.mxu0  ;;  %5706 = vmatprep.subr.msk.mxu0 %vm144_vm1, %v9864_v50 }
 0x381   :  { %v3896_v45 = vmul.f32 0.2, %v3805_v1  ;;  %v3885_v9 = vmax.f32 %v9537_v38, %v3587_v20  ;;  %v3806_v31 = vmax.f32 %v9298_v41, %v3446_v16  ;;  %5707 = vmatpush1.msk.msra.mxu0 %vm144_vm1, %v9596_v2 }
 0x382   :  { %4145 = vst [vmem:[%s10702_s8 + $0x248] sm:$0xff] %v9876_v32  ;;  %4153 = vst [vmem:[%s10702_s8 + $0x288] sm:$0xf] %v9878_v36  ;;  %v9894_v58 = vmax.f32 %v3873_v40, %v3964_v23  ;;  %v3589_v29 = vpop.f32.mrf.mxu1  ;;  %4207 = vmatprep.subr.mxu0 %v9836_v55  ;;  %5720 = vmatpush1.msk.msra.mxu1 %vm144_vm1, %v9878_v36 }
 0x383   :  { %v9899_v41 = vmax.f32 %v3805_v1, %v3896_v45  ;;  %v3976_v38 = vmul.f32 0.2, %v3885_v9  ;;  %v3897_v34 = vmul.f32 0.2, %v3806_v31  ;;  %v3886_v49 = vmax.f32 %v9557_v21, %v3589_v29  ;;  %v3450_v12 = vpop.f32.mrf.mxu0  ;;  %4208 = vmatpush1.msra.mxu0 %v9580_v43  ;;  %4302 = vmatprep.subr.mxu1 %v9680_v61 }
 0x384   :  { %4146 = vst [vmem:[%s10702_s8 + $0x250] sm:$0xff] %v9894_v58  ;;  %v3818_v24 = vmax.f32 %v9313_v56, %v3450_v12  ;;  %4209 = vmatprep.subr.mxu0 %v9808_v48  ;;  %4303 = vmatpush1.msra.mxu1 %v9847_v7 }
 0x385   :  { %4078 = vst [vmem:[%s10702_s8 + $0x30] sm:$0xff] %v9899_v41  ;;  %v9915_v21 = vmax.f32 %v3885_v9, %v3976_v38  ;;  %v9917_v18 = vmax.f32 %v3806_v31, %v3897_v34  ;;  %v3977_v40 = vmul.f32 0.2, %v3886_v49  ;;  %v3765_v1 = vpop.f32.mrf.mxu1  ;;  %v3452_v23 = vpop.f32.mrf.mxu0  ;;  %4210 = vmatpush1.msra.mxu0 %v9564_v60  ;;  %4304 = vmatprep.subr.mxu1 %v9665_v42 }
 0x386   :  { %v3909_v56 = vmul.f32 0.2, %v3818_v24  ;;  %v3811_v20 = vmax.f32 %v9566_v27, %v3765_v1  ;;  %v3819_v16 = vmax.f32 %v9328_v54, %v3452_v23  ;;  %4211 = vmatprep.subr.mxu0 %v9780_v22  ;;  %4305 = vmatpush1.msra.mxu1 %v9819_v52 }
 0x387   :  { %4158 = vst [vmem:[%s10702_s8 + $0x2b0] sm:$0xf] %v9915_v21  ;;  %4079 = vst [vmem:[%s10702_s8 + $0x38] sm:$0xff] %v9917_v18  ;;  %v9933_v45 = vmax.f32 %v3886_v49, %v3977_v40  ;;  %v5943_v9 = vpop.f32.mrf.mxu1  ;;  %v3456_v27 = vpop.f32.mrf.mxu0  ;;  %4212 = vmatpush1.msra.mxu0 %v9543_v47  ;;  %4306 = vmatprep.subr.mxu1 %v9649_v44 }
 0x388   :  { %v9937_v54 = vmax.f32 %v3818_v24, %v3909_v56  ;;  %v3902_v31 = vmul.f32 0.2, %v3811_v20  ;;  %v3910_v29 = vmul.f32 0.2, %v3819_v16  ;;  %v3831_v38 = vmax.f32 %v9343_v3, %v3456_v27  ;;  %4213 = vmatprep.subr.mxu0 %v9750_v39  ;;  %4307 = vmatpush1.msra.mxu1 %v9791_v6 }
 0x389   :  { %4159 = vst [vmem:[%s10702_s8 + $0x2b8] sm:$0xf] %v9933_v45  ;;  %v3770_v34 = vpop.f32.mrf.mxu1  ;;  %v3458_v49 = vpop.f32.mrf.mxu0  ;;  %4214 = vmatpush1.msra.mxu0 %v9525_v26  ;;  %4308 = vmatprep.subr.mxu1 %v9632_v0 }
 0x38a   :  { %4091 = vst [vmem:[%s10702_s8 + $0x98] sm:$0xff] %v9937_v54  ;;  %v3993_v3 = vmax.f32 %v3811_v20, %v3902_v31  ;;  %v9952_v12 = vmax.f32 %v3819_v16, %v3910_v29  ;;  %v3922_v24 = vmul.f32 0.2, %v3831_v38  ;;  %v3824_v40 = vmax.f32 %v9587_v10, %v3770_v34  ;;  %4215 = vmatprep.subr.mxu0 %v9720_v46  ;;  %v11270_v16 = vld [vmem:[#allocation41_spill] sm:$0xff]  ;;  %v11271_v31 = vld [vmem:[#allocation70_spill] sm:$0xff]  ;;  %v11272_v34 = vld [vmem:[#allocation79_spill] sm:$0xff] }
 0x38b   :  { %4309 = vmatpush1.msra.mxu1 %v9763_v51  ;;  %v3832_v1 = vmax.f32 %v9358_v30, %v3458_v49  ;;  %v5946_v23 = vpop.f32.mrf.mxu1  ;;  %v3462_v56 = vpop.f32.mrf.mxu0  ;;  %4216 = vmatpush1.msra.mxu0 %v9509_v25 }
 0x38c   :  { %4310 = vmatprep.subr.mxu1 %v9618_v28  ;;  %4084 = vst [vmem:[%s10702_s8 + $0x60] sm:$0xff] %v3993_v3  ;;  %4092 = vst [vmem:[%s10702_s8 + $0xa0] sm:$0xff] %v9952_v12  ;;  %v9967_v10 = vmax.f32 %v3831_v38, %v3922_v24  ;;  %v3915_v20 = vmul.f32 0.2, %v3824_v40  ;;  %v3844_v30 = vmax.f32 %v11270_v16, %v3462_v56  ;;  %4217 = vmatprep.subr.mxu0 %v9690_v33  ;;  %v11273_v3 = vld [vmem:[#allocation40_spill] sm:$0xff]  ;;  %v11274_v16 = vld [vmem:[#allocation75_spill] sm:$0xff] }
 0x38d   :  { %4311 = vmatpush1.msra.mxu1 %v9731_v17  ;;  %v3923_v9 = vmul.f32 0.2, %v3832_v1  ;;  %v3775_v28 = vpop.f32.mrf.mxu1  ;;  %v3464_v27 = vpop.f32.mrf.mxu0  ;;  %4218 = vmatpush1.msra.mxu0 %v11271_v31 }
 0x38e   :  { %4312 = vmatprep.subr.mxu1 %v9605_v59  ;;  %4104 = vst [vmem:[%s10702_s8 + $0x100] sm:$0xff] %v9967_v10  ;;  %v4006_v29 = vmax.f32 %v3824_v40, %v3915_v20  ;;  %v3935_v38 = vmul.f32 0.2, %v3844_v30  ;;  %v3837_v49 = vmax.f32 %v11272_v34, %v3775_v28  ;;  %v3845_v24 = vmax.f32 %v11273_v3, %v3464_v27  ;;  %v11275_v28 = vld [vmem:[#allocation43_spill] sm:$0xff]  ;;  %v11276_v34 = vld [vmem:[#allocation76_spill] sm:$0xff]  ;;  %v11277_v3 = vld [vmem:[#allocation42_spill] sm:$0xff] }
 0x38f   :  { %5708 = vmatprep.subr.msk.mxu0 %vm144_vm1, %v9596_v2  ;;  %4313 = vmatpush1.msra.mxu1 %v9704_v4  ;;  %v9983_v23 = vmax.f32 %v3832_v1, %v3923_v9  ;;  %v5949_v56 = vpop.f32.mrf.mxu1  ;;  %v3468_v59 = vpop.f32.mrf.mxu0 }
 0x390   :  { %5709 = vmatpush1.msk.msra.mxu0 %vm144_vm1, %v11274_v16  ;;  %5721 = vmatprep.subr.msk.mxu1 %vm144_vm1, %v9878_v36  ;;  %4097 = vst [vmem:[%s10702_s8 + $0xc8] sm:$0xff] %v4006_v29  ;;  %v9992_v40 = vmax.f32 %v3844_v30, %v3935_v38  ;;  %v3928_v20 = vmul.f32 0.2, %v3837_v49  ;;  %v3936_v2 = vmul.f32 0.2, %v3845_v24  ;;  %v3857_v27 = vmax.f32 %v11275_v28, %v3468_v59  ;;  %v11278_v28 = vld [vmem:[#allocation73_spill] sm:$0xff] }
 0x391   :  { %4221 = vmatprep.subr.mxu0 %v9580_v43  ;;  %5722 = vmatpush1.msk.msra.mxu1 %vm144_vm1, %v9864_v50  ;;  %4105 = vst [vmem:[%s10702_s8 + $0x108] sm:$0xff] %v9983_v23  ;;  %v3780_v1 = vpop.f32.mrf.mxu1  ;;  %v3470_v9 = vpop.f32.mrf.mxu0 }
 0x392   :  { %4222 = vmatpush1.msra.mxu0 %v11276_v34  ;;  %4316 = vmatprep.subr.mxu1 %v9847_v7  ;;  %4117 = vst [vmem:[%s10702_s8 + $0x168] sm:$0xff] %v9992_v40  ;;  %v4019_v43 = vmax.f32 %v3837_v49, %v3928_v20  ;;  %v10008_v30 = vmax.f32 %v3845_v24, %v3936_v2  ;;  %v3948_v29 = vmul.f32 0.2, %v3857_v27  ;;  %v11279_v49 = vld [vmem:[#allocation47_spill] sm:$0xff] }
 0x393   :  { %v3850_v38 = vmax.f32 %v9616_v13, %v3780_v1  ;;  %4223 = vmatprep.subr.mxu0 %v9564_v60  ;;  %4317 = vmatpush1.msra.mxu1 %v9836_v55  ;;  %v3858_v56 = vmax.f32 %v11277_v3, %v3470_v9  ;;  %v5952_v59 = vpop.f32.mrf.mxu1  ;;  %v3474_v16 = vpop.f32.mrf.mxu0  ;;  %v11280_v9 = vld [vmem:[#allocation74_spill] sm:$0xff] }
 0x394   :  { %4224 = vmatpush1.msra.mxu0 %v11278_v28  ;;  %4318 = vmatprep.subr.mxu1 %v9819_v52  ;;  %4110 = vst [vmem:[%s10702_s8 + $0x130] sm:$0xff] %v4019_v43  ;;  %4118 = vst [vmem:[%s10702_s8 + $0x170] sm:$0xff] %v10008_v30  ;;  %v10023_v60 = vmax.f32 %v3857_v27, %v3948_v29  ;;  %v3870_v24 = vmax.f32 %v11279_v49, %v3474_v16  ;;  %v11281_v29 = vld [vmem:[#allocation46_spill] sm:$0xff]  ;;  %v11282_v28 = vld [vmem:[#allocation71_spill] sm:$0xff] }
 0x395   :  { %v3941_v13 = vmul.f32 0.2, %v3850_v38  ;;  %4225 = vmatprep.subr.mxu0 %v9543_v47  ;;  %4319 = vmatpush1.msra.mxu1 %v9808_v48  ;;  %v3949_v20 = vmul.f32 0.2, %v3858_v56  ;;  %v3785_v2 = vpop.f32.mrf.mxu1  ;;  %v3476_v1 = vpop.f32.mrf.mxu0  ;;  %v11283_v49 = vld [vmem:[#allocation48_spill] sm:$0xff] }
 0x396   :  { %4226 = vmatpush1.msra.mxu0 %v11280_v9  ;;  %4320 = vmatprep.subr.mxu1 %v9791_v6  ;;  %4130 = vst [vmem:[%s10702_s8 + $0x1d0] sm:$0xff] %v10023_v60  ;;  %v3961_v34 = vmul.f32 0.2, %v3870_v24  ;;  %v3863_v43 = vmax.f32 %v9629_v8, %v3785_v2  ;;  %v3871_v47 = vmax.f32 %v11281_v29, %v3476_v1  ;;  %v11284_v2 = vld [vmem:[#allocation23_spill] sm:$0xff]  ;;  %v11285_v9 = vld [vmem:[#allocation81_spill] sm:$0xff] }
 0x397   :  { %v4032_v27 = vmax.f32 %v3850_v38, %v3941_v13  ;;  %4227 = vmatprep.subr.mxu0 %v9525_v26  ;;  %4321 = vmatpush1.msra.mxu1 %v9780_v22  ;;  %v10038_v3 = vmax.f32 %v3858_v56, %v3949_v20  ;;  %v5955_v59 = vpop.f32.mrf.mxu1  ;;  %v3480_v16 = vpop.f32.mrf.mxu0 }
 0x398   :  { %4228 = vmatpush1.msra.mxu0 %v11282_v28  ;;  %4322 = vmatprep.subr.mxu1 %v9763_v51  ;;  %v10045_v38 = vmax.f32 %v3870_v24, %v3961_v34  ;;  %v3954_v8 = vmul.f32 0.2, %v3863_v43  ;;  %v3962_v13 = vmul.f32 0.2, %v3871_v47  ;;  %v3883_v26 = vmax.f32 %v11283_v49, %v3480_v16  ;;  %v11286_v34 = vld [vmem:[#allocation49_spill] sm:$0xff] }
 0x399   :  { %4123 = vst [vmem:[%s10702_s8 + $0x198] sm:$0xff] %v4032_v27  ;;  %4229 = vmatprep.subr.mxu0 %v9509_v25  ;;  %4323 = vmatpush1.msra.mxu1 %v9750_v39  ;;  %4131 = vst [vmem:[%s10702_s8 + $0x1d8] sm:$0xff] %v10038_v3  ;;  %v3790_v56 = vpop.f32.mrf.mxu1  ;;  %v3482_v20 = vpop.f32.mrf.mxu0  ;;  %v11289_v28 = vmov 1.0  }
 0x39a   :  { %4230 = vmatpush1.msra.mxu0 %v11284_v2  ;;  %4324 = vmatprep.subr.mxu1 %v9731_v17  ;;  %4143 = vst [vmem:[%s10702_s8 + $0x238] sm:$0xff] %v10045_v38  ;;  %v4045_v24 = vmax.f32 %v3863_v43, %v3954_v8  ;;  %v10060_v25 = vmax.f32 %v3871_v47, %v3962_v13  ;;  %v3974_v1 = vmul.f32 0.2, %v3883_v26  ;;  %v11287_v17 = vld [vmem:[#allocation22_spill] sm:$0xff]  ;;  %v11291_v2 = vld [vmem:[#allocation51_spill] sm:$0xff] }
 0x39b   :  { %v3876_v27 = vmax.f32 %v11285_v9, %v3790_v56  ;;  %4231 = vmatprep.subr.mxu0 %v11271_v31  ;;  %4325 = vmatpush1.msra.mxu1 %v9720_v46  ;;  %v3884_v29 = vmax.f32 %v11286_v34, %v3482_v20  ;;  %v5958_v59 = vpop.f32.mrf.mxu1  ;;  %v3658_v16 = vpop.f32.mrf.mxu0  ;;  %v11288_v43 = vld [vmem:[#allocation50_spill] sm:$0xff]  ;;  %v11290_v56 = vld [vmem:[#allocation83_spill] sm:$0xff] }
 0x39c   :  { %4232 = vmatpush1.msra.mxu0 %v11287_v17  ;;  %4326 = vmatprep.subr.mxu1 %v9704_v4  ;;  %4136 = vst [vmem:[%s10702_s8 + $0x200] sm:$0xff] %v4045_v24  ;;  %4144 = vst [vmem:[%s10702_s8 + $0x240] sm:$0xff] %v10060_v25  ;;  %v10075_v31 = vmax.f32 %v3883_v26, %v3974_v1  ;;  %v3809_v47 = vmax.f32 %v11288_v43, %v3658_v16  ;;  %v11292_v59 = vld [vmem:[#allocation52_spill] sm:$0xff] }
 0x39d   :  { %v3967_v46 = vmul.f32 0.2, %v3876_v27  ;;  %5710 = vmatprep.subr.msk.mxu0 %vm226_vm0, %v11289_v28  ;;  %4327 = vmatpush1.msra.mxu1 %v9690_v33  ;;  %v3975_v4 = vmul.f32 0.2, %v3884_v29  ;;  %v3795_v8 = vpop.f32.mrf.mxu1  ;;  %v3660_v13 = vpop.f32.mrf.mxu0 }
 0x39e   :  { %5711 = vmatpush2.msk.msra.mxu0 %vm226_vm0, %v11289_v28  ;;  %5723 = vmatprep.subr.msk.mxu1 %vm226_vm0, %v11289_v28  ;;  %4156 = vst [vmem:[%s10702_s8 + $0x2a0] sm:$0xf] %v10075_v31  ;;  %v3900_v26 = vmul.f32 0.2, %v3809_v47  ;;  %v3889_v20 = vmax.f32 %v11290_v56, %v3795_v8  ;;  %v3810_v33 = vmax.f32 %v11291_v2, %v3660_v13 }
 0x39f   :  { %v4058_v49 = vmax.f32 %v3876_v27, %v3967_v46  ;;  %5712 = vmatprep.subr.msk.mxu0 %vm144_vm1, %v9878_v36  ;;  %5724 = vmatpush2.msk.msra.mxu1 %vm226_vm0, %v11289_v28  ;;  %v10095_v24 = vmax.f32 %v3884_v29, %v3975_v4  ;;  %v3664_v1 = vpop.f32.mrf.mxu0  ;;  %v5961_v9 = vpop.f32.mrf.mxu1  ;;  %v11293_v46 = vld [vmem:[#allocation11_spill] sm:$0xff] }
 0x3a0   :  { %5713 = vmatpush2.msk.msra.mxu0 %vm144_vm1, %v9864_v50  ;;  %5725 = vmatprep.subr.msk.mxu1 %vm144_vm1, %v9715_v37  ;;  %v10104_v27 = vmax.f32 %v3809_v47, %v3900_v26  ;;  %v3980_v36 = vmul.f32 0.2, %v3889_v20  ;;  %v3901_v34 = vmul.f32 0.2, %v3810_v33  ;;  %v3822_v16 = vmax.f32 %v11292_v59, %v3664_v1  ;;  %v11299_v9 = vld [vmem:[#allocation8_spill] sm:$0xff]  ;;  %v11300_v59 = vld [vmem:[#allocation7_spill] sm:$0xff] }
 0x3a1   :  { %4149 = vst [vmem:[%s10702_s8 + $0x268] sm:$0xff] %v4058_v49  ;;  %4257 = vmatprep.subr.mxu0 %v9847_v7  ;;  %5726 = vmatpush2.msk.msra.mxu1 %vm144_vm1, %v9702_v62  ;;  %4157 = vst [vmem:[%s10702_s8 + $0x2a8] sm:$0xf] %v10095_v24  ;;  %v3666_v50 = vpop.f32.mrf.mxu0  ;;  %v11296_v49 = vld [vmem:[#allocation80_spill] sm:$0xff] }
 0x3a2   :  { %4258 = vmatpush2.msra.mxu0 %v9836_v55  ;;  %4352 = vmatprep.subr.mxu1 %v9688_v5  ;;  %4082 = vst [vmem:[%s10702_s8 + $0x50] sm:$0xff] %v10104_v27  ;;  %v4071_v29 = vmax.f32 %v3889_v20, %v3980_v36  ;;  %v10120_v7 = vmax.f32 %v3810_v33, %v3901_v34  ;;  %v3913_v17 = vmul.f32 0.2, %v3822_v16  ;;  %v11294_v55 = vld [vmem:[#allocation82_spill] sm:$0xff]  ;;  %v11297_v20 = vld [vmem:[#allocation9_spill] sm:$0xff] }
 0x3a3   :  { %v3823_v43 = vmax.f32 %v11293_v46, %v3666_v50  ;;  %4259 = vmatprep.subr.mxu0 %v9819_v52  ;;  %4353 = vmatpush2.msra.mxu1 %v9680_v61  ;;  %v3670_v47 = vpop.f32.mrf.mxu0  ;;  %v11295_v52 = vld [vmem:[#allocation10_spill] sm:$0xff] }
 0x3a4   :  { %4260 = vmatpush2.msra.mxu0 %v9808_v48  ;;  %4354 = vmatprep.subr.mxu1 %v11294_v55  ;;  %4162 = vst [vmem:[%s10702_s8 + $0x2d0] sm:$0xf] %v4071_v29  ;;  %4083 = vst [vmem:[%s10702_s8 + $0x58] sm:$0xff] %v10120_v7  ;;  %v10134_v4 = vmax.f32 %v3822_v16, %v3913_v17  ;;  %v3835_v13 = vmax.f32 %v11295_v52, %v3670_v47  ;;  %v11298_v33 = vld [vmem:[#allocation78_spill] sm:$0xff]  ;;  %v10196_v47 = vld [vmem:[%s10703_s4 + $0x10] sm:$0xff] }
 0x3a5   :  { %v3914_v8 = vmul.f32 0.2, %v3823_v43  ;;  %4261 = vmatprep.subr.mxu0 %v9791_v6  ;;  %4355 = vmatpush2.msra.mxu1 %v9665_v42  ;;  %v3672_v48 = vpop.f32.mrf.mxu0  ;;  %v11301_v46 = vld [vmem:[#allocation6_spill] sm:$0xff] }
 0x3a6   :  { %4262 = vmatpush2.msra.mxu0 %v9780_v22  ;;  %4356 = vmatprep.subr.mxu1 %v11296_v49  ;;  %4095 = vst [vmem:[%s10702_s8 + $0xb8] sm:$0xff] %v10134_v4  ;;  %v3926_v56 = vmul.f32 0.2, %v3835_v13  ;;  %v3836_v2 = vmax.f32 %v11297_v20, %v3672_v48  ;;  %v10153_v22 = vld [vmem:[%s10703_s4] sm:$0xff] }
 0x3a7   :  { %v10145_v26 = vmax.f32 %v3823_v43, %v3914_v8  ;;  %4263 = vmatprep.subr.mxu0 %v9763_v51  ;;  %4357 = vmatpush2.msra.mxu1 %v9649_v44  ;;  %v3676_v6 = vpop.f32.mrf.mxu0 }
 0x3a8   :  { %4264 = vmatpush2.msra.mxu0 %v9750_v39  ;;  %4358 = vmatprep.subr.mxu1 %v11298_v33  ;;  %v10161_v1 = vmax.f32 %v3835_v13, %v3926_v56  ;;  %v3927_v51 = vmul.f32 0.2, %v3836_v2  ;;  %v3848_v44 = vmax.f32 %v11299_v9, %v3676_v6  ;;  %v11302_v13 = vld [vmem:[#allocation5_spill] sm:$0xff]  ;;  %v11303_v6 = vld [vmem:[#allocation4_spill] sm:$0xff]  ;;  %v10228_v9 = vld [vmem:[%s10703_s4 + $0x28] sm:$0xff] }
 0x3a9   :  { %4096 = vst [vmem:[%s10702_s8 + $0xc0] sm:$0xff] %v10145_v26  ;;  %4359 = vmatpush2.msra.mxu1 %v9632_v0  ;;  %4391 = vmatprep.subr.mxu0 %v9952_v12  ;;  %v3678_v36 = vpop.f32.mrf.mxu0  ;;  %v10180_v0 = vld [vmem:[%s10703_s4 + $0x18] sm:$0xff] }
 0x3aa   :  { %4266 = vmatmul.mubr.f32.vlgmr.msra.gmra.mxu0 %v10153_v22  ;;  %4361 = vmatmul.mubr.f32.vlgmr.msra.gmra.mxu1 %v10153_v22  ;;  %4108 = vst [vmem:[%s10702_s8 + $0x120] sm:$0xff] %v10161_v1  ;;  %v10172_v39 = vmax.f32 %v3836_v2, %v3927_v51  ;;  %v3939_v34 = vmul.f32 0.2, %v3848_v44  ;;  %v3849_v16 = vmax.f32 %v11300_v59, %v3678_v36  ;;  %v11304_v59 = vld [vmem:[#allocation3_spill] sm:$0xff] }
 0x3ab   :  { %4392 = vmatpush1.msra.mxu0 %v9937_v54  ;;  %4486 = vmatprep.subr.mxu1 %v9777_v63  ;;  %v3682_v50 = vpop.f32.mrf.mxu0 }
 0x3ac   :  { %4393 = vmatprep.subr.mxu0 %v9917_v18  ;;  %4487 = vmatpush1.msra.mxu1 %v9766_v14  ;;  %4109 = vst [vmem:[%s10702_s8 + $0x128] sm:$0xff] %v10172_v39  ;;  %v10188_v29 = vmax.f32 %v3848_v44, %v3939_v34  ;;  %v3940_v17 = vmul.f32 0.2, %v3849_v16  ;;  %v3861_v43 = vmax.f32 %v11301_v46, %v3682_v50  ;;  %v10245_v50 = vld [vmem:[%s10703_s4 + $0x20] sm:$0xff] }
 0x3ad   :  { %4394 = vmatpush1.msra.mxu0 %v9899_v41  ;;  %4488 = vmatprep.subr.mxu1 %v9746_v53  ;;  %v3684_v8 = vpop.f32.mrf.mxu0 }
 0x3ae   :  { %5728 = vmatprep.mubr.msk.f32.mxu1 %vm4185_vm5, %v10180_v0  ;;  %5732 = vmatprep.subr.msk.mxu0 %vm144_vm1, %v10075_v31  ;;  %4121 = vst [vmem:[%s10702_s8 + $0x188] sm:$0xff] %v10188_v29  ;;  %v10206_v52 = vmax.f32 %v3849_v16, %v3940_v17  ;;  %v3952_v53 = vmul.f32 0.2, %v3861_v43  ;;  %v3862_v48 = vmax.f32 %v11302_v13, %v3684_v8  ;;  %v11305_v8 = vld [vmem:[#allocation2_spill] sm:$0xff] }
 0x3af   :  { %4489 = vmatpush1.msra.mxu1 %v9734_v11  ;;  %5715 = vmatprep.mubr.msk.f32.mxu0 %vm4185_vm5, %v10180_v0  ;;  %v3688_v56 = vpop.f32.mrf.mxu0 }
 0x3b0   :  { %4367 = vmatmul.mubr.f32.gmra.mxu1 %v10196_v47  ;;  %5733 = vmatpush1.msk.msra.mxu0 %vm144_vm1, %v9715_v37  ;;  %4122 = vst [vmem:[%s10702_s8 + $0x190] sm:$0xff] %v10206_v52  ;;  %v10219_v20 = vmax.f32 %v3861_v43, %v3952_v53  ;;  %v3953_v2 = vmul.f32 0.2, %v3862_v48  ;;  %v3874_v51 = vmax.f32 %v11303_v6, %v3688_v56 }
 0x3b1   :  { %5745 = vmatprep.subr.msk.mxu1 %vm144_vm1, %v9915_v21  ;;  %4272 = vmatmul.mubr.f32.gmra.mxu0 %v10196_v47  ;;  %v3690_v44 = vpop.f32.mrf.mxu0 }
 0x3b2   :  { %4397 = vmatprep.subr.mxu0 %v10045_v38  ;;  %5746 = vmatpush1.msk.msra.mxu1 %vm144_vm1, %v10095_v24  ;;  %4134 = vst [vmem:[%s10702_s8 + $0x1f0] sm:$0xff] %v10219_v20  ;;  %v10237_v36 = vmax.f32 %v3862_v48, %v3953_v2  ;;  %v3965_v34 = vmul.f32 0.2, %v3874_v51  ;;  %v3875_v16 = vmax.f32 %v11304_v59, %v3690_v44  ;;  %v11306_v2 = vld [vmem:[#allocation69_spill] sm:$0xff]  ;;  %v10289_v59 = vld [vmem:[%s10703_s4 + $0x30] sm:$0xff] }
 0x3b3   :  { %4398 = vmatpush1.msra.mxu0 %v9688_v5  ;;  %4492 = vmatprep.subr.mxu1 %v9876_v32  ;;  %v3694_v17 = vpop.f32.mrf.mxu0 }
 0x3b4   :  { %5729 = vmatprep.mubr.msk.f32.mxu1 %vm4185_vm5, %v10228_v9  ;;  %4399 = vmatprep.subr.mxu0 %v10023_v60  ;;  %4135 = vst [vmem:[%s10702_s8 + $0x1f8] sm:$0xff] %v10237_v36  ;;  %v10254_v46 = vmax.f32 %v3874_v51, %v3965_v34  ;;  %v3966_v43 = vmul.f32 0.2, %v3875_v16  ;;  %v3887_v53 = vmax.f32 %v11305_v8, %v3694_v17  ;;  %v10274_v51 = vld [vmem:[%s10703_s4 + $0x38] sm:$0xff]  ;;  %v10314_v17 = vld [vmem:[%s10703_s4 + $0x48] sm:$0x1] }
 0x3b5   :  { %4493 = vmatpush1.msra.mxu1 %v10060_v25  ;;  %5716 = vmatprep.mubr.msk.f32.mxu0 %vm4185_vm5, %v10228_v9  ;;  %v3696_v13 = vpop.f32.mrf.mxu0 }
 0x3b6   :  { %4373 = vmatmul.mubr.f32.gmra.mxu1 %v10245_v50  ;;  %4400 = vmatpush1.msra.mxu0 %v11294_v55  ;;  %4147 = vst [vmem:[%s10702_s8 + $0x258] sm:$0xff] %v10254_v46  ;;  %v10266_v48 = vmax.f32 %v3875_v16, %v3966_v43  ;;  %v3978_v56 = vmul.f32 0.2, %v3887_v53  ;;  %v3888_v6 = vmax.f32 %v11306_v2, %v3696_v13  ;;  %v10325_v43 = vld [vmem:[%s10703_s4 + $0x40] sm:$0x1] }
 0x3b7   :  { %4494 = vmatprep.subr.mxu1 %v9850_v15  ;;  %4278 = vmatmul.mubr.f32.gmra.mxu0 %v10245_v50 }
 0x3b8   :  { %4401 = vmatprep.subr.mxu0 %v9992_v40  ;;  %4495 = vmatpush1.msra.mxu1 %v10038_v3  ;;  %4148 = vst [vmem:[%s10702_s8 + $0x260] sm:$0xff] %v10266_v48  ;;  %v10282_v44 = vmax.f32 %v3887_v53, %v3978_v56  ;;  %v3979_v34 = vmul.f32 0.2, %v3888_v6 }
 0x3b9   :  { %4402 = vmatpush1.msra.mxu0 %v11296_v49  ;;  %4496 = vmatprep.subr.mxu1 %v9822_v57 }
 0x3ba   :  { %5730 = vmatprep.mubr.msk.f32.mxu1 %vm4185_vm5, %v10274_v51  ;;  %4403 = vmatprep.subr.mxu0 %v9967_v10  ;;  %4160 = vst [vmem:[%s10702_s8 + $0x2c0] sm:$0xf] %v10282_v44  ;;  %v10298_v16 = vmax.f32 %v3888_v6, %v3979_v34 }
 0x3bb   :  { %4497 = vmatpush1.msra.mxu1 %v10008_v30  ;;  %5717 = vmatprep.mubr.msk.f32.mxu0 %vm4185_vm5, %v10274_v51 }
 0x3bc   :  { %4379 = vmatmul.mubr.f32.gmra.mxu1 %v10289_v59  ;;  %4404 = vmatpush1.msra.mxu0 %v11298_v33  ;;  %4161 = vst [vmem:[%s10702_s8 + $0x2c8] sm:$0xf] %v10298_v16  ;;  %v6036_v33 = vld [vmem:[%s10702_s8 + $0x90] sm:$0xff] }
 0x3bd   :  { %4498 = vmatprep.subr.mxu1 %v9794_v35  ;;  %4284 = vmatmul.mubr.f32.gmra.mxu0 %v10289_v59 }
 0x3be   :  { %4405 = vmatprep.subr.mxu0 %v9937_v54  ;;  %4499 = vmatpush1.msra.mxu1 %v9983_v23 }
 0x3bf   :  { %4406 = vmatpush1.msra.mxu0 %v6036_v33  ;;  %4500 = vmatprep.subr.mxu1 %v9766_v14  ;;  %v6037_v14 = vld [vmem:[%s10702_s8 + $0x28] sm:$0xff] }
 0x3c0   :  { %5731 = vmatprep.mubr.msk.f32.mxu1 %vm4185_vm5, %v10314_v17  ;;  %4407 = vmatprep.subr.mxu0 %v9899_v41 }
 0x3c1   :  { %4501 = vmatpush1.msra.mxu1 %v9952_v12  ;;  %5718 = vmatprep.mubr.msk.f32.mxu0 %vm4185_vm5, %v10314_v17 }
 0x3c2   :  { %4385 = vmatmul.mubr.f32.gmra.mxu1 %v10325_v43  ;;  %4408 = vmatpush1.msra.mxu0 %v6037_v14 }
 0x3c3   :  { %4502 = vmatprep.subr.mxu1 %v9734_v11  ;;  %4290 = vmatmul.mubr.f32.gmra.mxu0 %v10325_v43  ;;  %v11307_v11 = vld [vmem:[#allocation84_spill] sm:$0xff] }
 0x3c4   :  { %5734 = vmatprep.subr.msk.mxu0 %vm144_vm1, %v9715_v37  ;;  %4503 = vmatpush1.msra.mxu1 %v9917_v18  ;;  %v6042_v37 = vld [vmem:[%s10702_s8 + $0x20] sm:$0xff] }
 0x3c5   :  { %5735 = vmatpush1.msk.msra.mxu0 %vm144_vm1, %v9702_v62  ;;  %5747 = vmatprep.subr.msk.mxu1 %vm144_vm1, %v10095_v24  ;;  %v6041_v62 = vld [vmem:[%s10702_s8 + $0x88] sm:$0xff] }
 0x3c6   :  { %4411 = vmatprep.subr.mxu0 %v9688_v5  ;;  %5748 = vmatpush1.msk.msra.mxu1 %vm144_vm1, %v10075_v31  ;;  %v6038_v5 = vld [vmem:[%s10702_s8 + $0x158] sm:$0xff] }
 0x3c7   :  { %4412 = vmatpush1.msra.mxu0 %v9680_v61  ;;  %4506 = vmatprep.subr.mxu1 %v10060_v25  ;;  %v6039_v61 = vld [vmem:[%s10702_s8 + $0xf8] sm:$0xff] }
 0x3c8   :  { %4413 = vmatprep.subr.mxu0 %v11294_v55  ;;  %4507 = vmatpush1.msra.mxu1 %v10045_v38 }
 0x3c9   :  { %4414 = vmatpush1.msra.mxu0 %v9665_v42  ;;  %4508 = vmatprep.subr.mxu1 %v10038_v3  ;;  %v6040_v42 = vld [vmem:[%s10702_s8 + $0xf0] sm:$0xff] }
 0x3ca   :  { %4415 = vmatprep.subr.mxu0 %v11296_v49  ;;  %4509 = vmatpush1.msra.mxu1 %v10023_v60 }
 0x3cb   :  { %4416 = vmatpush1.msra.mxu0 %v6038_v5  ;;  %4510 = vmatprep.subr.mxu1 %v10008_v30 }
 0x3cc   :  { %4417 = vmatprep.subr.mxu0 %v6039_v61  ;;  %4511 = vmatpush1.msra.mxu1 %v9992_v40 }
 0x3cd   :  { %4418 = vmatpush1.msra.mxu0 %v6040_v42  ;;  %4512 = vmatprep.subr.mxu1 %v9983_v23 }
 0x3ce   :  { %4419 = vmatprep.subr.mxu0 %v6036_v33  ;;  %4513 = vmatpush1.msra.mxu1 %v9967_v10 }
 0x3cf   :  { %4420 = vmatpush1.msra.mxu0 %v6041_v62  ;;  %4514 = vmatprep.subr.mxu1 %v9952_v12  ;;  %v11309_v12 = vmov 0.0  }
 0x3d0   :  { %4421 = vmatprep.subr.mxu0 %v6037_v14  ;;  %4515 = vmatpush1.msra.mxu1 %v9937_v54  ;;  %v6044_v54 = vld [vmem:[%s10702_s8 + $0x48] sm:$0xff] }
 0x3d1   :  { %4422 = vmatpush1.msra.mxu0 %v6042_v37  ;;  %4516 = vmatprep.subr.mxu1 %v9917_v18  ;;  %v6043_v18 = vld [vmem:[%s10703_s4 + $0x8] sm:$0xff] }
 0x3d2   :  { %5736 = vmatprep.subr.msk.mxu0 %vm226_vm0, %v11289_v28  ;;  %4517 = vmatpush1.msra.mxu1 %v9899_v41  ;;  %v11308_v41 = vld [vmem:[#allocation85_spill] sm:$0xff] }
 0x3d3   :  { %5737 = vmatpush2.msk.msra.mxu0 %vm226_vm0, %v11289_v28  ;;  %5749 = vmatprep.subr.msk.mxu1 %vm226_vm0, %v11289_v28 }
 0x3d4   :  { %5738 = vmatprep.subr.msk.mxu0 %vm144_vm1, %v10095_v24  ;;  %5750 = vmatpush2.msk.msra.mxu1 %vm226_vm0, %v11289_v28 }
 0x3d5   :  { %5739 = vmatpush2.msk.msra.mxu0 %vm144_vm1, %v10075_v31  ;;  %5751 = vmatprep.subr.msk.mxu1 %vm144_vm1, %v9933_v45 }
 0x3d6   :  { %4447 = vmatprep.subr.mxu0 %v10060_v25  ;;  %5752 = vmatpush2.msk.msra.mxu1 %vm144_vm1, %v9915_v21 }
 0x3d7   :  { %4448 = vmatpush2.msra.mxu0 %v10045_v38  ;;  %4542 = vmatprep.subr.mxu1 %v9894_v58 }
 0x3d8   :  { %4449 = vmatprep.subr.mxu0 %v10038_v3  ;;  %4543 = vmatpush2.msra.mxu1 %v9876_v32 }
 0x3d9   :  { %4450 = vmatpush2.msra.mxu0 %v10023_v60  ;;  %4544 = vmatprep.subr.mxu1 %v9862_v19 }
 0x3da   :  { %4451 = vmatprep.subr.mxu0 %v10008_v30  ;;  %4545 = vmatpush2.msra.mxu1 %v9850_v15 }
 0x3db   :  { %4452 = vmatpush2.msra.mxu0 %v9992_v40  ;;  %4546 = vmatprep.subr.mxu1 %v11307_v11 }
 0x3dc   :  { %4453 = vmatprep.subr.mxu0 %v9983_v23  ;;  %4547 = vmatpush2.msra.mxu1 %v9822_v57 }
 0x3dd   :  { %4454 = vmatpush2.msra.mxu0 %v9967_v10  ;;  %4548 = vmatprep.subr.mxu1 %v11308_v41 }
 0x3de   :  { %5740 = vmatprep.mubr.msk.f32.mxu0 %vm4185_vm5, %v6043_v18  ;;  %4549 = vmatpush2.msra.mxu1 %v9794_v35 }
 0x3df   :  { %5753 = vmatprep.mubr.msk.f32.mxu1 %vm4185_vm5, %v6043_v18  ;;  %4581 = vmatprep.subr.mxu0 %v10145_v26 }
 0x3e0   :  { %4456 = vmatmul.mubr.f32.vlgmr.msra.gmra.mxu0 %v10153_v22  ;;  %4551 = vmatmul.mubr.f32.vlgmr.msra.gmra.mxu1 %v10153_v22 }
 0x3e1   :  { %4582 = vmatpush1.msra.mxu0 %v10134_v4  ;;  %5754 = vmatprep.mubr.msk.f32.mxu1 %vm4185_vm5, %v10180_v0 }
 0x3e2   :  { %4583 = vmatprep.subr.mxu0 %v10120_v7  ;;  %5741 = vmatprep.mubr.msk.f32.mxu0 %vm4185_vm5, %v10180_v0 }
 0x3e3   :  { %4584 = vmatpush1.msra.mxu0 %v10104_v27 }
 0x3e4   :  { %5758 = vmatprep.subr.msk.mxu0 %vm144_vm1, %v10282_v44  ;;  %4557 = vmatmul.mubr.f32.gmra.mxu1 %v10196_v47 }
 0x3e5   :  { %5759 = vmatpush1.msk.msra.mxu0 %vm144_vm1, %v9933_v45  ;;  %5755 = vmatprep.mubr.msk.f32.mxu1 %vm4185_vm5, %v10228_v9 }
 0x3e6   :  { %4462 = vmatmul.mubr.f32.gmra.mxu0 %v10196_v47  ;;  %4587 = vmatprep.subr.mxu0 %v10254_v46 }
 0x3e7   :  { %4588 = vmatpush1.msra.mxu0 %v9894_v58  ;;  %5742 = vmatprep.mubr.msk.f32.mxu0 %vm4185_vm5, %v10228_v9 }
 0x3e8   :  { %4589 = vmatprep.subr.mxu0 %v10219_v20  ;;  %4563 = vmatmul.mubr.f32.gmra.mxu1 %v10245_v50 }
 0x3e9   :  { %4590 = vmatpush1.msra.mxu0 %v9862_v19  ;;  %5756 = vmatprep.mubr.msk.f32.mxu1 %vm4185_vm5, %v10274_v51 }
 0x3ea   :  { %4468 = vmatmul.mubr.f32.gmra.mxu0 %v10245_v50  ;;  %4591 = vmatprep.subr.mxu0 %v10188_v29 }
 0x3eb   :  { %4592 = vmatpush1.msra.mxu0 %v11307_v11  ;;  %5743 = vmatprep.mubr.msk.f32.mxu0 %vm4185_vm5, %v10274_v51 }
 0x3ec   :  { %4593 = vmatprep.subr.mxu0 %v10161_v1  ;;  %4569 = vmatmul.mubr.f32.gmra.mxu1 %v10289_v59 }
 0x3ed   :  { %4594 = vmatpush1.msra.mxu0 %v11308_v41  ;;  %5757 = vmatprep.mubr.msk.f32.mxu1 %vm4185_vm5, %v10314_v17 }
 0x3ee   :  { %4474 = vmatmul.mubr.f32.gmra.mxu0 %v10289_v59  ;;  %4595 = vmatprep.subr.mxu0 %v10134_v4 }
 0x3ef   :  { %4596 = vmatpush1.msra.mxu0 %v9777_v63  ;;  %5744 = vmatprep.mubr.msk.f32.mxu0 %vm4185_vm5, %v10314_v17 }
 0x3f0   :  { %4597 = vmatprep.subr.mxu0 %v10104_v27  ;;  %4575 = vmatmul.mubr.f32.gmra.mxu1 %v10325_v43 }
 0x3f1   :  { %4598 = vmatpush1.msra.mxu0 %v6044_v54  ;;  %4791 = vmatprep.mubr.f32.mxu1 %v11309_v12 }
 0x3f2   :  { %4480 = vmatmul.mubr.f32.gmra.mxu0 %v10325_v43  ;;  %5760 = vmatprep.subr.msk.mxu0 %vm144_vm1, %v9933_v45 }
 0x3f3   :  { %5761 = vmatpush1.msk.msra.mxu0 %vm144_vm1, %v9915_v21  ;;  %5766 = vmatprep.mubr.msk.f32.mxu0 %vm4185_vm5, %v6043_v18 }
 0x3f4   :  { %4601 = vmatprep.subr.mxu0 %v9894_v58  ;;  %v6045_v58 = vld [vmem:[%s10702_s8 + $0xa8] sm:$0xff] }
 0x3f5   :  { %4602 = vmatpush1.msra.mxu0 %v9876_v32 }
 0x3f6   :  { %4603 = vmatprep.subr.mxu0 %v9862_v19 }
 0x3f7   :  { %4604 = vmatpush1.msra.mxu0 %v9850_v15  ;;  %v6046_v15 = vld [vmem:[%s10702_s8 + $0x40] sm:$0xff] }
 0x3f8   :  { %4605 = vmatprep.subr.mxu0 %v11307_v11 }
 0x3f9   :  { %4606 = vmatpush1.msra.mxu0 %v9822_v57 }
 0x3fa   :  { %4607 = vmatprep.subr.mxu0 %v11308_v41 }
 0x3fb   :  { %4608 = vmatpush1.msra.mxu0 %v9794_v35 }
 0x3fc   :  { %4609 = vmatprep.subr.mxu0 %v9777_v63 }
 0x3fd   :  { %4610 = vmatpush1.msra.mxu0 %v6045_v58 }
 0x3fe   :  { %4611 = vmatprep.subr.mxu0 %v6044_v54 }
 0x3ff   :  { %4612 = vmatpush1.msra.mxu0 %v6046_v15 }
 0x400   :  { %5762 = vmatprep.subr.msk.mxu0 %vm226_vm0, %v11289_v28 }
 0x401   :  { %5763 = vmatpush2.msk.msra.mxu0 %vm226_vm0, %v11289_v28 }
 0x402   :  { %5764 = vmatprep.subr.msk.mxu0 %vm144_vm1, %v10298_v16 }
 0x403   :  { %5765 = vmatpush2.msk.msra.mxu0 %vm144_vm1, %v10282_v44 }
 0x404   :  { %4637 = vmatprep.subr.mxu0 %v10266_v48 }
 0x405   :  { %4638 = vmatpush2.msra.mxu0 %v10254_v46 }
 0x406   :  { %4639 = vmatprep.subr.mxu0 %v10237_v36 }
 0x407   :  { %4640 = vmatpush2.msra.mxu0 %v10219_v20  ;;  %v10559_v20 = vld [vmem:[%s10704_s5 + $0x8] sm:$0x7f] }
 0x408   :  { %4641 = vmatprep.subr.mxu0 %v10206_v52  ;;  %v4701_v52 = vld [vmem:[%s10704_s5] sm:$0xff] }
 0x409   :  { %4642 = vmatpush2.msra.mxu0 %v10188_v29 }
 0x40a   :  { %4643 = vmatprep.subr.mxu0 %v10172_v39 }
 0x40b   :  { %4644 = vmatpush2.msra.mxu0 %v10161_v1 }
 0x40c   :  { %4646 = vmatmul.mubr.f32.vlgmr.msra.gmra.mxu0 %v10153_v22  ;;  %5988 = vmatprep.subr.msk.mxu0 %vm226_vm0, %v11289_v28 }
 0x40d   :  { %5767 = vmatprep.mubr.msk.f32.mxu0 %vm4185_vm5, %v10180_v0  ;;  %5989 = vmatpush3.msk.msra.mxu0 %vm226_vm0, %v11289_v28 }
 0x410   :  { %4652 = vmatmul.mubr.f32.gmra.mxu0 %v10196_v47 }
 0x411   :  { %5768 = vmatprep.mubr.msk.f32.mxu0 %vm4185_vm5, %v10228_v9 }
 0x414   :  { %4658 = vmatmul.mubr.f32.gmra.mxu0 %v10245_v50 }
 0x415   :  { %5769 = vmatprep.mubr.msk.f32.mxu0 %vm4185_vm5, %v10274_v51 }
 0x418   :  { %4664 = vmatmul.mubr.f32.gmra.mxu0 %v10289_v59 }
 0x419   :  { %5770 = vmatprep.mubr.msk.f32.mxu0 %vm4185_vm5, %v10314_v17 }
 0x41c   :  { %4670 = vmatmul.mubr.f32.gmra.mxu0 %v10325_v43 }
 0x46a   :  { %v4362_v63 = vpop.f32.mrf.mxu1  ;;  %v4267_v35 = vpop.f32.mrf.mxu0 }
 0x46c   :  { %v4364_v57 = vpop.f32.mrf.mxu1  ;;  %v4269_v19 = vpop.f32.mrf.mxu0 }
 0x46d   :  { %v10541_v29 = vmax.f32 %v4362_v63, %v4364_v57  ;;  %v10546_v47 = vmax.f32 %v4267_v35, %v4269_v19 }
 0x470   :  { %v4368_v32 = vpop.f32.mrf.mxu1 }
 0x471   :  { %v4273_v21 = vpop.f32.mrf.mxu0 }
 0x472   :  { %v4370_v45 = vpop.f32.mrf.mxu1 }
 0x473   :  { %v4275_v10 = vpop.f32.mrf.mxu0  ;;  %v10535_v39 = vmax.f32 %v4368_v32, %v4370_v45 }
 0x474   :  { %v10538_v0 = vmax.f32 %v4273_v21, %v4275_v10 }
 0x476   :  { %v4374_v23 = vpop.f32.mrf.mxu1 }
 0x477   :  { %v4279_v40 = vpop.f32.mrf.mxu0 }
 0x478   :  { %v4376_v30 = vpop.f32.mrf.mxu1 }
 0x479   :  { %v4281_v60 = vpop.f32.mrf.mxu0  ;;  %v10527_v22 = vmax.f32 %v4374_v23, %v4376_v30 }
 0x47a   :  { %v10531_v1 = vmax.f32 %v4279_v40, %v4281_v60 }
 0x47c   :  { %v4380_v3 = vpop.f32.mrf.mxu1 }
 0x47d   :  { %v4285_v38 = vpop.f32.mrf.mxu0 }
 0x47e   :  { %v4382_v25 = vpop.f32.mrf.mxu1 }
 0x47f   :  { %v4287_v31 = vpop.f32.mrf.mxu0  ;;  %v10519_v7 = vmax.f32 %v4380_v3, %v4382_v25  ;;  %v4703_v25 = vld [vmem:[%s10705_s6] sm:$0xff] }
 0x480   :  { %v10523_v49 = vmax.f32 %v4285_v38, %v4287_v31  ;;  %v4704_v31 = vld [vmem:[%s10705_s6 + $0x8] sm:$0x7f] }
 0x482   :  { %v4386_v28 = vpop.f32.mrf.mxu1 }
 0x483   :  { %v4291_v24 = vpop.f32.mrf.mxu0 }
 0x484   :  { %v4388_v27 = vpop.f32.mrf.mxu1 }
 0x485   :  { %v10521_v55 = vmax.f32 %v4386_v28, %v4388_v27  ;;  %v4293_v4 = vpop.f32.mrf.mxu0  ;;  %v5237_v28 = vld [vmem:[%s10706_s7] sm:$0xff] }
 0x486   :  { %v10525_v26 = vmax.f32 %v4291_v24, %v4293_v4  ;;  %6010 = vmatprep.mubr.msk.f32.mxu0 %vm5239_vm7, %v5237_v28 }
 0x487   :  { %5771 = vmatprep.subr.msk.mxu1 %vm226_vm0, %v10521_v55 }
 0x488   :  { %5772 = vmatpush1.msk.msra.mxu1 %vm226_vm0, %v10525_v26 }
 0x489   :  { %4751 = vmatprep.subr.mxu1 %v10519_v7 }
 0x48a   :  { %4752 = vmatpush1.msra.mxu1 %v10523_v49 }
 0x48b   :  { %4753 = vmatprep.subr.mxu1 %v10527_v22 }
 0x48c   :  { %4754 = vmatpush1.msra.mxu1 %v10531_v1 }
 0x48d   :  { %4755 = vmatprep.subr.mxu1 %v10535_v39 }
 0x48e   :  { %4756 = vmatpush1.msra.mxu1 %v10538_v0 }
 0x48f   :  { %4757 = vmatprep.subr.mxu1 %v10541_v29 }
 0x490   :  { %4758 = vmatpush1.msra.mxu1 %v10546_v47 }
 0x491   :  { %5773 = vmatmul.mubr.msk.f32.vlgmr.msra.gmra.mxu1 %vm4705_vm6, %v4701_v52 }
 0x492   :  { %4797 = vmatprep.mubr.f32.mxu1 %v11309_v12 }
 0x495   :  { %5774 = vmatmul.mubr.msk.f32.gmra.mxu1 %vm4705_vm6, %v10559_v20 }
 0x496   :  { %4868 = vmatprep.mubr.f32.mxu1 %v11309_v12 }
 0x4a0   :  { %v4552_v9 = vpop.f32.mrf.mxu1  ;;  %v4457_v36 = vpop.f32.mrf.mxu0 }
 0x4a2   :  { %v4554_v50 = vpop.f32.mrf.mxu1  ;;  %v4459_v46 = vpop.f32.mrf.mxu0 }
 0x4a3   :  { %v10583_v54 = vmax.f32 %v4552_v9, %v4554_v50  ;;  %v4686_v58 = vmax.f32 %v4457_v36, %v4459_v46 }
 0x4a4   :  { %v4558_v8 = vpop.f32.mrf.mxu1 }
 0x4a6   :  { %v4463_v53 = vpop.f32.mrf.mxu0  ;;  %v4560_v13 = vpop.f32.mrf.mxu1 }
 0x4a7   :  { %v10577_v41 = vmax.f32 %v4558_v8, %v4560_v13 }
 0x4a8   :  { %v4465_v48 = vpop.f32.mrf.mxu0  ;;  %v4564_v56 = vpop.f32.mrf.mxu1 }
 0x4a9   :  { %v10580_v18 = vmax.f32 %v4463_v53, %v4465_v48 }
 0x4aa   :  { %v4469_v2 = vpop.f32.mrf.mxu0  ;;  %v4566_v6 = vpop.f32.mrf.mxu1 }
 0x4ab   :  { %v10572_v37 = vmax.f32 %v4564_v56, %v4566_v6 }
 0x4ac   :  { %v4471_v51 = vpop.f32.mrf.mxu0  ;;  %v4570_v44 = vpop.f32.mrf.mxu1 }
 0x4ad   :  { %v10574_v11 = vmax.f32 %v4469_v2, %v4471_v51 }
 0x4ae   :  { %v4475_v34 = vpop.f32.mrf.mxu0  ;;  %v4572_v59 = vpop.f32.mrf.mxu1 }
 0x4af   :  { %v10566_v5 = vmax.f32 %v4570_v44, %v4572_v59 }
 0x4b0   :  { %v4477_v16 = vpop.f32.mrf.mxu0  ;;  %v4576_v17 = vpop.f32.mrf.mxu1 }
 0x4b1   :  { %v10568_v42 = vmax.f32 %v4475_v34, %v4477_v16 }
 0x4b2   :  { %v4481_v33 = vpop.f32.mrf.mxu0  ;;  %v4578_v43 = vpop.f32.mrf.mxu1 }
 0x4b3   :  { %v10564_v14 = vmax.f32 %v4576_v17, %v4578_v43 }
 0x4b4   :  { %v4483_v61 = vpop.f32.mrf.mxu0 }
 0x4b5   :  { %v4690_v62 = vmax.f32 %v4481_v33, %v4483_v61  ;;  %5775 = vmatprep.subr.msk.mxu1 %vm226_vm0, %v10564_v14 }
 0x4b7   :  { %5776 = vmatpush1.msk.msra.mxu1 %vm226_vm0, %v4690_v62 }
 0x4b8   :  { %4828 = vmatprep.subr.mxu1 %v10566_v5 }
 0x4b9   :  { %4829 = vmatpush1.msra.mxu1 %v10568_v42 }
 0x4ba   :  { %4830 = vmatprep.subr.mxu1 %v10572_v37 }
 0x4bb   :  { %4831 = vmatpush1.msra.mxu1 %v10574_v11 }
 0x4bc   :  { %4832 = vmatprep.subr.mxu1 %v10577_v41 }
 0x4bd   :  { %4833 = vmatpush1.msra.mxu1 %v10580_v18 }
 0x4be   :  { %4834 = vmatprep.subr.mxu1 %v10583_v54 }
 0x4bf   :  { %4835 = vmatpush1.msra.mxu1 %v4686_v58 }
 0x4c0   :  { %5777 = vmatmul.mubr.msk.f32.vlgmr.msra.gmra.mxu1 %vm4705_vm6, %v4701_v52 }
 0x4c1   :  { %4874 = vmatprep.mubr.f32.mxu1 %v11309_v12 }
 0x4c4   :  { %5778 = vmatmul.mubr.msk.f32.gmra.mxu1 %vm4705_vm6, %v10559_v20 }
 0x4c5   :  { %5972 = vmatprep.mubr.msk.f32.mxu1 %vm4705_vm6, %v4701_v52 }
 0x4cc   :  { %v4647_v15 = vpop.f32.mrf.mxu0 }
 0x4ce   :  { %v4649_v63 = vpop.f32.mrf.mxu0 }
 0x4cf   :  { %v4696_v38 = vmax.f32 %v4647_v15, %v4649_v63 }
 0x4d0   :  { %v4653_v35 = vpop.f32.mrf.mxu0 }
 0x4d2   :  { %v4655_v57 = vpop.f32.mrf.mxu0 }
 0x4d3   :  { %v4697_v3 = vmax.f32 %v4653_v35, %v4655_v57 }
 0x4d4   :  { %v4659_v19 = vpop.f32.mrf.mxu0 }
 0x4d6   :  { %v4661_v32 = vpop.f32.mrf.mxu0 }
 0x4d7   :  { %v4698_v60 = vmax.f32 %v4659_v19, %v4661_v32  ;;  %v5238_v19 = vld [vmem:[%s10706_s7 + $0x8] sm:$0x3] }
 0x4d8   :  { %v4665_v21 = vpop.f32.mrf.mxu0 }
 0x4da   :  { %v4667_v45 = vpop.f32.mrf.mxu0 }
 0x4db   :  { %v4699_v30 = vmax.f32 %v4665_v21, %v4667_v45 }
 0x4dc   :  { %v4671_v10 = vpop.f32.mrf.mxu0 }
 0x4de   :  { %v4673_v23 = vpop.f32.mrf.mxu0 }
 0x4df   :  { %v4700_v40 = vmax.f32 %v4671_v10, %v4673_v23 }
 0x4e1   :  { %5962 = vmatprep.subr.msk.mxu1 %vm226_vm0, %v4700_v40 }
 0x4e2   :  { %5963 = vmatpush3.msk.msra.mxu1 %vm226_vm0, %v4700_v40 }
 0x4e3   :  { %5964 = vmatprep.subr.mxu1 %v4699_v30 }
 0x4e4   :  { %5965 = vmatpush3.msra.mxu1 %v4699_v30 }
 0x4e5   :  { %5966 = vmatprep.subr.mxu1 %v4698_v60 }
 0x4e6   :  { %5967 = vmatpush3.msra.mxu1 %v4698_v60 }
 0x4e7   :  { %5968 = vmatprep.subr.mxu1 %v4697_v3 }
 0x4e8   :  { %5969 = vmatpush3.msra.mxu1 %v4697_v3 }
 0x4e9   :  { %5970 = vmatprep.subr.mxu1 %v4696_v38 }
 0x4ea   :  { %5971 = vmatpush3.msra.mxu1 %v4696_v38 }
 0x4eb   :  { %5782 = vmatprep.subr.msk.mxu1 %vm226_vm0, %v10521_v55  ;;  %5973 = vmatmul.mubr.msk.f32.vlgmr.msra.gmra.mxu1 %vm4705_vm6, %v10559_v20 }
 0x4ec   :  { %5783 = vmatpush1.msk.msra.mxu1 %vm226_vm0, %v10525_v26  ;;  %5026 = vmatprep.mubr.f32.mxu1 %v11309_v12 }
 0x4ed   :  { %4986 = vmatprep.subr.mxu1 %v10519_v7 }
 0x4ee   :  { %4987 = vmatpush1.msra.mxu1 %v10523_v49 }
 0x4ef   :  { %4988 = vmatprep.subr.mxu1 %v10527_v22 }
 0x4f0   :  { %4989 = vmatpush1.msra.mxu1 %v10531_v1 }
 0x4f1   :  { %4990 = vmatprep.subr.mxu1 %v10535_v39 }
 0x4f2   :  { %4991 = vmatpush1.msra.mxu1 %v10538_v0 }
 0x4f3   :  { %4992 = vmatprep.subr.mxu1 %v10541_v29 }
 0x4f4   :  { %4993 = vmatpush1.msra.mxu1 %v10546_v47 }
 0x4f5   :  { %5784 = vmatmul.mubr.msk.f32.vlgmr.msra.gmra.mxu1 %vm4705_vm6, %v4703_v25  ;;  %5786 = vmatprep.subr.msk.mxu1 %vm226_vm0, %v10564_v14 }
 0x4f6   :  { %5787 = vmatpush1.msk.msra.mxu1 %vm226_vm0, %v4690_v62  ;;  %5032 = vmatprep.mubr.f32.mxu1 %v11309_v12 }
 0x4f7   :  { %5063 = vmatprep.subr.mxu1 %v10566_v5 }
 0x4f8   :  { %5064 = vmatpush1.msra.mxu1 %v10568_v42 }
 0x4f9   :  { %5785 = vmatmul.mubr.msk.f32.gmra.mxu1 %vm4705_vm6, %v4704_v31  ;;  %5065 = vmatprep.subr.mxu1 %v10572_v37 }
 0x4fa   :  { %5066 = vmatpush1.msra.mxu1 %v10574_v11  ;;  %5103 = vmatprep.mubr.f32.mxu1 %v11309_v12 }
 0x4fb   :  { %5067 = vmatprep.subr.mxu1 %v10577_v41 }
 0x4fc   :  { %5068 = vmatpush1.msra.mxu1 %v10580_v18 }
 0x4fd   :  { %5069 = vmatprep.subr.mxu1 %v10583_v54 }
 0x4fe   :  { %5070 = vmatpush1.msra.mxu1 %v4686_v58 }
 0x4ff   :  { %5788 = vmatmul.mubr.msk.f32.vlgmr.msra.gmra.mxu1 %vm4705_vm6, %v4703_v25  ;;  %5975 = vmatprep.subr.msk.mxu1 %vm226_vm0, %v4700_v40 }
 0x500   :  { %5976 = vmatpush3.msk.msra.mxu1 %vm226_vm0, %v4700_v40  ;;  %5109 = vmatprep.mubr.f32.mxu1 %v11309_v12 }
 0x501   :  { %5977 = vmatprep.subr.mxu1 %v4699_v30 }
 0x502   :  { %5978 = vmatpush3.msra.mxu1 %v4699_v30 }
 0x503   :  { %5789 = vmatmul.mubr.msk.f32.gmra.mxu1 %vm4705_vm6, %v4704_v31  ;;  %5979 = vmatprep.subr.mxu1 %v4698_v60 }
 0x504   :  { %5980 = vmatpush3.msra.mxu1 %v4698_v60  ;;  %5985 = vmatprep.mubr.msk.f32.mxu1 %vm4705_vm6, %v4703_v25 }
 0x505   :  { %5981 = vmatprep.subr.mxu1 %v4697_v3 }
 0x506   :  { %5982 = vmatpush3.msra.mxu1 %v4697_v3 }
 0x507   :  { %5983 = vmatprep.subr.mxu1 %v4696_v38 }
 0x508   :  { %5984 = vmatpush3.msra.mxu1 %v4696_v38 }
 0x509   :  { %5986 = vmatmul.mubr.msk.f32.vlgmr.msra.gmra.mxu1 %vm4705_vm6, %v4704_v31 }
 0x551   :  { %v4793_v12 = vpop.f32.mrf.mxu1 }
 0x553   :  { %v4795_v24 = vpop.f32.mrf.mxu1 }
 0x555   :  { %v4799_v27 = vpop.f32.mrf.mxu1 }
 0x557   :  { %v4801_v7 = vpop.f32.mrf.mxu1 }
 0x580   :  { %v4870_v55 = vpop.f32.mrf.mxu1 }
 0x582   :  { %v4872_v4 = vpop.f32.mrf.mxu1 }
 0x584   :  { %v4876_v49 = vpop.f32.mrf.mxu1 }
 0x586   :  { %v4878_v26 = vpop.f32.mrf.mxu1 }
 0x5ab   :  { %v5974_v22 = vpop.f32.mrf.mxu1 }
 0x5ad   :  { %v4947_v1 = vpop.f32.mrf.mxu1 }
 0x5b5   :  { %v5028_v39 = vpop.f32.mrf.mxu1 }
 0x5b6   :  { %v5191_v0 = vmax.f32 %v4793_v12, %v5028_v39 }
 0x5b7   :  { %v5030_v29 = vpop.f32.mrf.mxu1 }
 0x5b8   :  { %v5201_v47 = vmul.f32 0.2, %v5191_v0  ;;  %v5192_v52 = vmax.f32 %v4795_v24, %v5030_v29 }
 0x5b9   :  { %v5034_v20 = vpop.f32.mrf.mxu1 }
 0x5ba   :  { %v10643_v9 = vmax.f32 %v5191_v0, %v5201_v47  ;;  %v5202_v36 = vmul.f32 0.2, %v5192_v52  ;;  %v5196_v50 = vmax.f32 %v4799_v27, %v5034_v20 }
 0x5bb   :  { %v5036_v46 = vpop.f32.mrf.mxu1 }
 0x5bc   :  { %5221 = vst [vmem:[%s10707_s9] sm:$0xff] %v10643_v9  ;;  %v5212_v8 = vmax.f32 %v5192_v52, %v5202_v36  ;;  %v5206_v53 = vmul.f32 0.2, %v5196_v50  ;;  %v5197_v13 = vmax.f32 %v4801_v7, %v5036_v46 }
 0x5be   :  { %5222 = vst [vmem:[%s10707_s9 + $0x8] sm:$0xff] %v5212_v8  ;;  %v5216_v48 = vmax.f32 %v5196_v50, %v5206_v53  ;;  %v5207_v56 = vmul.f32 0.2, %v5197_v13 }
 0x5bf   :  { %v5105_v2 = vpop.f32.mrf.mxu1 }
 0x5c0   :  { %5226 = vst [vmem:[%s10707_s9 + $0x28] sm:$0x7f] %v5216_v48  ;;  %v5217_v6 = vmax.f32 %v5197_v13, %v5207_v56  ;;  %v5193_v51 = vmax.f32 %v4870_v55, %v5105_v2 }
 0x5c1   :  { %v5107_v44 = vpop.f32.mrf.mxu1 }
 0x5c2   :  { %5227 = vst [vmem:[%s10707_s9 + $0x30] sm:$0x7f] %v5217_v6  ;;  %v5203_v34 = vmul.f32 0.2, %v5193_v51  ;;  %v5194_v59 = vmax.f32 %v4872_v4, %v5107_v44 }
 0x5c3   :  { %v5111_v16 = vpop.f32.mrf.mxu1 }
 0x5c4   :  { %v5213_v17 = vmax.f32 %v5193_v51, %v5203_v34  ;;  %v5204_v33 = vmul.f32 0.2, %v5194_v59  ;;  %v5198_v43 = vmax.f32 %v4876_v49, %v5111_v16 }
 0x5c5   :  { %v5113_v14 = vpop.f32.mrf.mxu1 }
 0x5c6   :  { %5223 = vst [vmem:[%s10707_s9 + $0x10] sm:$0xff] %v5213_v17  ;;  %v5214_v5 = vmax.f32 %v5194_v59, %v5204_v33  ;;  %v5208_v61 = vmul.f32 0.2, %v5198_v43  ;;  %v5199_v42 = vmax.f32 %v4878_v26, %v5113_v14 }
 0x5c8   :  { %5224 = vst [vmem:[%s10707_s9 + $0x18] sm:$0xff] %v5214_v5  ;;  %v5218_v62 = vmax.f32 %v5198_v43, %v5208_v61  ;;  %v5209_v37 = vmul.f32 0.2, %v5199_v42 }
 0x5c9   :  { %v5987_v11 = vpop.f32.mrf.mxu1 }
 0x5ca   :  { %5228 = vst [vmem:[%s10707_s9 + $0x38] sm:$0x7f] %v5218_v62  ;;  %v5219_v41 = vmax.f32 %v5199_v42, %v5209_v37  ;;  %v5200_v18 = vmax.f32 %v5974_v22, %v5987_v11 }
 0x5cb   :  { %v5182_v54 = vpop.f32.mrf.mxu1 }
 0x5cc   :  { %5229 = vst [vmem:[%s10707_s9 + $0x40] sm:$0x7f] %v5219_v41  ;;  %v5210_v58 = vmul.f32 0.2, %v5200_v18  ;;  %v5195_v15 = vmax.f32 %v4947_v1, %v5182_v54 }
 0x5ce   :  { %v5220_v63 = vmax.f32 %v5200_v18, %v5210_v58  ;;  %v5205_v35 = vmul.f32 0.2, %v5195_v15 }
 0x5d0   :  { %5230 = vst [vmem:[%s10707_s9 + $0x48] sm:$0x7f] %v5220_v63  ;;  %v5215_v57 = vmax.f32 %v5195_v15, %v5205_v35  ;;  %5990 = vmatprep.subr.msk.mxu0 %vm5231_vm8, %v5220_v63 }
 0x5d1   :  { %5991 = vmatpush3.msk.msra.mxu0 %vm5231_vm8, %v5220_v63 }
 0x5d2   :  { %5225 = vst [vmem:[%s10707_s9 + $0x20] sm:$0xff] %v5215_v57  ;;  %5992 = vmatprep.subr.mxu0 %v5215_v57 }
 0x5d3   :  { %5993 = vmatpush3.msra.mxu0 %v5215_v57 }
 0x5d4   :  { %5994 = vmatprep.subr.msk.mxu0 %vm5231_vm8, %v5219_v41 }
 0x5d5   :  { %5995 = vmatpush3.msk.msra.mxu0 %vm5231_vm8, %v5219_v41 }
 0x5d6   :  { %5996 = vmatprep.subr.mxu0 %v5214_v5 }
 0x5d7   :  { %5997 = vmatpush3.msra.mxu0 %v5214_v5 }
 0x5d8   :  { %5998 = vmatprep.subr.msk.mxu0 %vm5231_vm8, %v5218_v62 }
 0x5d9   :  { %5999 = vmatpush3.msk.msra.mxu0 %vm5231_vm8, %v5218_v62 }
 0x5da   :  { %6000 = vmatprep.subr.mxu0 %v5213_v17 }
 0x5db   :  { %6001 = vmatpush3.msra.mxu0 %v5213_v17 }
 0x5dc   :  { %6002 = vmatprep.subr.msk.mxu0 %vm5231_vm8, %v5217_v6 }
 0x5dd   :  { %6003 = vmatpush3.msk.msra.mxu0 %vm5231_vm8, %v5217_v6 }
 0x5de   :  { %6004 = vmatprep.subr.mxu0 %v5212_v8 }
 0x5df   :  { %6005 = vmatpush3.msra.mxu0 %v5212_v8 }
 0x5e0   :  { %6006 = vmatprep.subr.msk.mxu0 %vm5231_vm8, %v5216_v48 }
 0x5e1   :  { %6007 = vmatpush3.msk.msra.mxu0 %vm5231_vm8, %v5216_v48 }
 0x5e2   :  { %6008 = vmatprep.subr.mxu0 %v10643_v9 }
 0x5e3   :  { %6009 = vmatpush3.msra.mxu0 %v10643_v9 }
 0x5e4   :  { %6011 = vmatmul.mubr.msk.f32.vlgmr.msra.gmra.mxu0 %vm5239_vm7, %v5238_v19 }
 0x6a4   :  { %v6012_v32 = vpop.f32.mrf.mxu0 }
 0x6a5   :  { %5322 = vst [vmem:[%s10708_s10 + $0x8] sm:$0x3] %v6012_v32 }
 0x6a6   :  { %v5312_v21 = vpop.f32.mrf.mxu0 }
 0x6a7   :  { %5321 = vst [vmem:[%s10708_s10] sm:$0xff] %v5312_v21 }

</bundles_post_ra>
